<compile_context>
chip_gen: v7x
topology: tpu7x:2x2x1
jax: 0.10.0
libtpu: 0.0.40
codegen_flags: <defaults>
</compile_context>

<pallas_src>
import math

import jax
import jax.numpy as jnp
from jax import lax
from jax.experimental import pallas as pl
from jax.experimental.pallas import tpu as pltpu


def _round_up(v, m):
    return ((v + m - 1) // m) * m


# ----------------------------------------------------------------------------
# Pallas kernels (hot path)
# ----------------------------------------------------------------------------
def _sa_conv_kernel(msg_ref, wA_ref, b1_ref, w2_ref, bout_ref, o_ref):
    """PointNetConv message MLP + max aggregation over K neighbors.

    msg_ref : (K, TP, Din)           bf16, neighbor-major per-edge messages (true Din, no pad)
    wA_ref  : (Din, Hpad + Dout_pad) bf16, fused [w1 | ws]
    b1_ref  : (1, Hpad)              f32
    w2_ref  : (Hpad, Dout_pad)       bf16
    bout_ref: (1, Dout_pad)          f32, b2 + bs (applied AFTER the max; exact by monotonicity)
    o_ref   : (TP, Dout_pad)         bf16/f32, max-aggregated per-center features
    """
    k, tp, din = msg_ref.shape
    hpad, dout_pad = w2_ref.shape

    m2 = msg_ref[...].reshape(k * tp, din)                               # layout-free merge
    z = jnp.dot(m2, wA_ref[...], preferred_element_type=jnp.float32)     # one MXU pass: w1 & ws
    h = jnp.maximum(z[:, :hpad] + b1_ref[...], 0.0)                      # ResMLP hidden (f32)
    sc = z[:, hpad:]                                                     # shortcut branch (f32)
    y = jnp.dot(h.astype(jnp.bfloat16), w2_ref[...],
                preferred_element_type=jnp.float32) + sc                 # per-edge pre-bias
    mx = jnp.max(y.reshape(k, tp, dout_pad), axis=0)                     # max over K (VPU)
    o_ref[...] = jnp.maximum(mx + bout_ref[...], 0.0).astype(o_ref.dtype)


def sa_conv_pallas(msg, p, out_dtype):
    """msg: [K, P, Din] bf16 (P = B * num_centers). Returns [P, Dout] in out_dtype."""
    K, P, Din = msg.shape
    wA, b1p, w2p = p["wA"], p["b1p"], p["w2p"]
    hpad, dout_pad = w2p.shape
    dout = p["b2bs"].shape[1]
    boutp = jnp.pad(p["b2bs"], ((0, 0), (0, dout_pad - dout)))           # tiny, per-call

    TP = min(128, _round_up(P, 8))          # centers per tile -> TP*K matmul rows
    P_pad = _round_up(P, TP)
    msg_p = msg if P_pad == P else jnp.pad(msg, ((0, 0), (0, P_pad - P), (0, 0)))

    full = lambda arr: pl.BlockSpec(arr.shape, lambda i: (0, 0))
    out = pl.pallas_call(
        _sa_conv_kernel,
        out_shape=jax.ShapeDtypeStruct((P_pad, dout_pad), out_dtype),
        grid_spec=pltpu.PrefetchScalarGridSpec(
            num_scalar_prefetch=0,
            grid=(P_pad // TP,),
            in_specs=[
                pl.BlockSpec((K, TP, Din), lambda i: (0, i, 0)),
                full(wA), full(b1p), full(w2p), full(boutp),
            ],
            out_specs=pl.BlockSpec((TP, dout_pad), lambda i: (i, 0)),
        ),
        compiler_params=pltpu.CompilerParams(
            dimension_semantics=("parallel",),
            vmem_limit_bytes=48 * 1024 * 1024,
        ),
    )(msg_p, wA, b1p, w2p, boutp)
    return out[:P, :dout]


def _global_head_kernel(x_ref, w1_ref, b1_ref, w2_ref, b2_ref, w3_ref, b3_ref,
                        o_ref, gmax_ref):
    """Fused global_max_pool + global_mlp, tiled over (B, M).

    x_ref : (TB, TM, 512) last-SA features (f32); o_ref : (TB, cond_pad).
    global_mlp = Sequential(ResMLP(512,512,512), ReLU, Linear(512, condition_dim));
    ResMLP shortcut is Identity (in_channels == out_channels).
    """
    mj = pl.program_id(1)

    @pl.when(mj == 0)
    def _():
        gmax_ref[...] = jnp.full(gmax_ref.shape, jnp.finfo(jnp.float32).min,
                                 dtype=gmax_ref.dtype)

    gmax_ref[...] = jnp.maximum(gmax_ref[...], jnp.max(x_ref[...], axis=1))

    @pl.when(mj == pl.num_programs(1) - 1)
    def _():
        g = gmax_ref[...]                                               # (TB, 512) f32
        h = jnp.maximum(
            jnp.dot(g.astype(jnp.bfloat16), w1_ref[...],
                    preferred_element_type=jnp.float32) + b1_ref[...], 0.0)
        r = jnp.dot(h.astype(jnp.bfloat16), w2_ref[...],
                    preferred_element_type=jnp.float32) + b2_ref[...] + g
        r = jnp.maximum(r, 0.0)
        o_ref[...] = jnp.dot(r.astype(jnp.bfloat16), w3_ref[...],
                             preferred_element_type=jnp.float32) + b3_ref[...]


def global_head_pallas(x4, p):
    B, M, D = x4.shape                      # D == 512
    cpad = p["w3p"].shape[1]
    cond = p["b3"].shape[1]
    b3p = jnp.pad(p["b3"], ((0, 0), (0, cpad - cond)))

    # Stream big M blocks (toward HBM roofline); keep a block <= ~8 MiB so two buffers fit.
    TM = min(512, _round_up(M, 8))
    M_pad = _round_up(M, TM)
    tb_cap = max(8, (8 * 1024 * 1024) // (TM * D * 4))
    tb_cap = max(8, (tb_cap // 8) * 8)
    TB = max(8, min(_round_up(B, 8), min(64, tb_cap)))
    B_pad = _round_up(B, TB)

    NEG = jnp.finfo(jnp.float32).min
    x4p = jnp.pad(x4, ((0, B_pad - B), (0, 0), (0, 0)))
    x4p = jnp.pad(x4p, ((0, 0), (0, M_pad - M), (0, 0)), constant_values=NEG)

    full = lambda arr: pl.BlockSpec(arr.shape, lambda b, m: (0, 0))
    out = pl.pallas_call(
        _global_head_kernel,
        out_shape=jax.ShapeDtypeStruct((B_pad, cpad), jnp.float32),
        grid_spec=pltpu.PrefetchScalarGridSpec(
            num_scalar_prefetch=0,
            grid=(B_pad // TB, M_pad // TM),
            in_specs=[
                pl.BlockSpec((TB, TM, D), lambda b, m: (b, m, 0)),
                full(p["w1"]), full(p["b1"]), full(p["w2"]), full(p["b2"]),
                full(p["w3p"]), full(b3p),
            ],
            out_specs=pl.BlockSpec((TB, cpad), lambda b, m: (b, 0)),
            scratch_shapes=[pltpu.VMEM((TB, D), jnp.float32)],
        ),
        compiler_params=pltpu.CompilerParams(
            dimension_semantics=("parallel", "arbitrary"),
            vmem_limit_bytes=48 * 1024 * 1024,
        ),
    )(x4p, p["w1"], p["b1"], p["w2"], p["b2"], p["w3p"], b3p)
    return out[:B, :cond]


# ----------------------------------------------------------------------------
# One-time weight preparation (pad / fuse / cast once, not per forward call)
# ----------------------------------------------------------------------------
def prepare_params(params):
    prep = {}
    for name in ("sa1", "sa2", "sa3", "sa4"):
        p = params[name]
        din, hidden = p["w1"].shape
        dout = p["w2"].shape[1]
        hpad = _round_up(hidden, 128)
        dpad = _round_up(dout, 128)
        w1p = jnp.zeros((din, hpad), jnp.float32).at[:, :hidden].set(p["w1"])
        wsp = jnp.zeros((din, dpad), jnp.float32).at[:, :dout].set(p["ws"])
        prep[name] = dict(
            wA=jnp.concatenate([w1p, wsp], axis=1).astype(jnp.bfloat16),  # (Din, Hpad+Dpad)
            b1p=jnp.pad(p["b1"], ((0, 0), (0, hpad - hidden))),           # (1, Hpad) f32
            w2p=(jnp.zeros((hpad, dpad), jnp.float32)
                 .at[:hidden, :dout].set(p["w2"]).astype(jnp.bfloat16)),  # (Hpad, Dpad)
            b2bs=p["b2"] + p["bs"],                                       # (1, Dout) f32
        )
    g = params["global"]
    cond = g["w3"].shape[1]
    cpad = _round_up(cond, 128)
    prep["global"] = dict(
        w1=g["w1"].astype(jnp.bfloat16), b1=g["b1"],
        w2=g["w2"].astype(jnp.bfloat16), b2=g["b2"],
        w3p=(jnp.zeros((g["w3"].shape[0], cpad), jnp.float32)
             .at[:, :cond].set(g["w3"]).astype(jnp.bfloat16)),
        b3=g["b3"],
    )
    return prep


# ----------------------------------------------------------------------------
# Plain-JAX glue: fps, knn, message building (shared by Pallas path and reference)
# ----------------------------------------------------------------------------
def _fps_single(pos, m):
    """Farthest point sampling of m points from pos [N,3]; deterministic start at 0.
    # TODO(synk): torch_geometric.fps uses a random start point (random_start=True)."""
    n = pos.shape[0]

    def body(i, carry):
        dists, idxs, last = carry
        d = jnp.sum((pos - pos[last]) ** 2, axis=-1)
        dists = jnp.minimum(dists, d)
        nxt = jnp.argmax(dists).astype(jnp.int32)
        return dists, idxs.at[i].set(nxt), nxt

    dists0 = jnp.full((n,), jnp.inf, jnp.float32)
    idxs0 = jnp.zeros((m,), jnp.int32)  # first selected index = 0
    _, idxs, _ = lax.fori_loop(1, m, body, (dists0, idxs0, jnp.int32(0)))
    return idxs


def _knn_single(pos, centers, k):
    """MXU-friendly squared distances: |c|^2 + |p|^2 - 2 c.p^T."""
    d2 = (jnp.sum(centers * centers, axis=-1, keepdims=True)
          + jnp.sum(pos * pos, axis=-1)[None, :]
          - 2.0 * jnp.dot(centers, pos.T, preferred_element_type=jnp.float32))
    _, nbr = lax.top_k(-d2, k)
    return nbr  # [M, k]


def sa_module(x, pos, p, ratio, k, conv_fn, out_dtype):
    """SA_Module.forward in dense layout: fps -> knn -> PointNetConv(ResMLP+ReLU, aggr='max')."""
    B, N, _ = pos.shape
    m = max(1, math.ceil(ratio * N))
    k_eff = min(k, N)  # knn returns at most N neighbors per query point

    idx = jax.vmap(lambda pp: _fps_single(pp, m))(pos)                        # [B, m]
    centers = jnp.take_along_axis(pos, idx[..., None], axis=1)                # [B, m, 3]
    nbr = jax.vmap(lambda pp, cc: _knn_single(pp, cc, k_eff))(pos, centers)   # [B, m, k]
    nbr_t = jnp.swapaxes(nbr, 1, 2)                                           # [B, k, m]

    xh = x.astype(jnp.bfloat16)
    x_j = jax.vmap(lambda xx, nn_: xx[nn_])(xh, nbr_t)                        # [B, k, m, C]
    pos_j = jax.vmap(lambda pp, nn_: pp[nn_])(pos, nbr_t)                     # [B, k, m, 3]
    rel = (pos_j - centers[:, None, :, :]).astype(jnp.bfloat16)               # [B, k, m, 3]
    msg = jnp.concatenate([x_j, rel], axis=-1)                                # [B, k, m, C+3] bf16
    # TODO(synk): PointNetConv(add_self_loops=True) also injects PyG's bipartite "self-loop"
    # edges (src i -> dst i for i < m); skipped since knn already pairs each center with itself.

    # Neighbor-major layout (K, B*m, Din) so the kernel's reshape/max are layout-free.
    msg_km = jnp.swapaxes(msg, 0, 1).reshape(k_eff, B * m, msg.shape[-1])
    x_out = conv_fn(msg_km, p, out_dtype)                                     # (B*m, Dout)
    return x_out.reshape(B, m, x_out.shape[-1]), centers


_LAYER_DTYPES = (jnp.bfloat16, jnp.bfloat16, jnp.bfloat16, jnp.float32)


def _encoder_forward(params, x, pos, conv_fn, head_fn):
    h, p = x, pos
    for name, dt in zip(("sa1", "sa2", "sa3", "sa4"), _LAYER_DTYPES):
        h, p = sa_module(h, p, params[name], ratio=0.5, k=16, conv_fn=conv_fn, out_dtype=dt)
    # TODO(synk): reference calls global_max_pool(x4, batch3) with a length-mismatched batch
    # vector; in the dense equal-batch layout the intended pooling is max over x4's point axis.
    return head_fn(h, params["global"])


def condition_encoder(prepared_params, x, pos):
    return _encoder_forward(prepared_params, x, pos, sa_conv_pallas, global_head_pallas)


# ----------------------------------------------------------------------------
# Pure-JAX reference (same math: bf16 matmul inputs, f32 accumulation, per-layer dtypes)
# ----------------------------------------------------------------------------
def _sa_conv_ref(msg, p, out_dtype):
    K, P, Din = msg.shape
    m2 = msg.reshape(K * P, Din)                                        # already bf16
    h = jax.nn.relu(jnp.dot(m2, p["w1"].astype(jnp.bfloat16),
                            preferred_element_type=jnp.float32) + p["b1"])
    sc = jnp.dot(m2, p["ws"].astype(jnp.bfloat16),
                 preferred_element_type=jnp.float32) + p["bs"]
    y = jax.nn.relu(jnp.dot(h.astype(jnp.bfloat16), p["w2"].astype(jnp.bfloat16),
                            preferred_element_type=jnp.float32) + p["b2"] + sc)
    return jnp.max(y.reshape(K, P, -1), axis=0).astype(out_dtype)


def _global_head_ref(x4, p):
    g = jnp.max(x4, axis=1)
    h = jax.nn.relu(jnp.dot(g.astype(jnp.bfloat16), p["w1"].astype(jnp.bfloat16),
                            preferred_element_type=jnp.float32) + p["b1"])
    r = jax.nn.relu(jnp.dot(h.astype(jnp.bfloat16), p["w2"].astype(jnp.bfloat16),
                            preferred_element_type=jnp.float32) + p["b2"] + g)
    return jnp.dot(r.astype(jnp.bfloat16), p["w3"].astype(jnp.bfloat16),
                   preferred_element_type=jnp.float32) + p["b3"]


def condition_encoder_ref(raw_params, x, pos):
    return _encoder_forward(raw_params, x, pos, _sa_conv_ref, _global_head_ref)


# ----------------------------------------------------------------------------
# Deterministic parameter init (shapes from the PyTorch __init__)
# ----------------------------------------------------------------------------
def init_params(key, in_channels, condition_dim):
    keys = iter(jax.random.split(key, 64))

    def linear(fan_in, fan_out):
        kw, kb = next(keys), next(keys)
        lim = 1.0 / math.sqrt(fan_in)
        w = jax.random.uniform(kw, (fan_in, fan_out), jnp.float32, -lim, lim)
        b = jax.random.uniform(kb, (1, fan_out), jnp.float32, -lim, lim)
        return w, b

    def sa(cin, cout):
        d = cin + 3  # mlp_channels[0] == cin + 3 in the reference
        w1, b1 = linear(d, d)        # ResMLP hidden Linear
        w2, b2 = linear(d, cout)     # ResMLP output Linear
        ws, bs = linear(d, cout)     # shortcut Linear (d != cout)
        return dict(w1=w1, b1=b1, w2=w2, b2=b2, ws=ws, bs=bs)

    params = {
        "sa1": sa(in_channels, 64),
        "sa2": sa(64, 128),
        "sa3": sa(128, 256),
        "sa4": sa(256, 512),
    }
    wg1, bg1 = linear(512, 512)
    wg2, bg2 = linear(512, 512)
    wg3, bg3 = linear(512, condition_dim)
    params["global"] = dict(w1=wg1, b1=bg1, w2=wg2, b2=bg2, w3=wg3, b3=bg3)
    return params


# ----------------------------------------------------------------------------
if __name__ == "__main__":
    key = jax.random.PRNGKey(0)
    kx, kp, kw = jax.random.split(key, 3)

    B, N, C_IN, COND_DIM = 2, 32, 4, 128
    x = jax.random.normal(kx, (B, N, C_IN), jnp.float32)
    pos = jax.random.normal(kp, (B, N, 3), jnp.float32)
    params = init_params(kw, C_IN, COND_DIM)
    prepped = jax.block_until_ready(prepare_params(params))   # one-time weight pad/fuse/cast

    encoder = jax.jit(condition_encoder)
    out = jax.block_until_ready(encoder(prepped, x, pos))
    assert out.shape == (B, COND_DIM), out.shape
    assert bool(jnp.all(jnp.isfinite(out)))

    ref = jax.block_until_ready(jax.jit(condition_encoder_ref)(params, x, pos))
    assert bool(jnp.allclose(out, ref, rtol=2e-2, atol=2e-2)), (
        float(jnp.max(jnp.abs(out - ref)))
    )

    print("KERNEL_OK")
</pallas_src>

<mosaic_0001>
module attributes {stable_mosaic.version = 11 : i64} {
  func.func @_sa_conv_kernel(%arg0: i32, %arg1: memref<16x32x7xbf16, #tpu.memory_space<vmem>>, %arg2: memref<7x256xbf16, #tpu.memory_space<vmem>>, %arg3: memref<1x128xf32, #tpu.memory_space<vmem>>, %arg4: memref<128x128xbf16, #tpu.memory_space<vmem>>, %arg5: memref<1x128xf32, #tpu.memory_space<vmem>>, %arg6: memref<32x128xbf16, #tpu.memory_space<vmem>>) attributes {dimension_semantics = [#tpu.dimension_semantics<parallel>], iteration_bounds = array<i64: 1>, scalar_prefetch = 0 : i64, scratch_operands = 0 : i64, tpu.core_type = #tpu.core_type<tc>, window_params = [{transform_indices = @transform_0, window_bounds = array<i64: 16, 32, 7>}, {pipeline_mode = #tpu.pipeline_mode<synchronous>, transform_indices = @transform_1, window_bounds = array<i64: 7, 256>}, {pipeline_mode = #tpu.pipeline_mode<synchronous>, transform_indices = @transform_2, window_bounds = array<i64: 1, 128>}, {pipeline_mode = #tpu.pipeline_mode<synchronous>, transform_indices = @transform_3, window_bounds = array<i64: 128, 128>}, {pipeline_mode = #tpu.pipeline_mode<synchronous>, transform_indices = @transform_4, window_bounds = array<i64: 1, 128>}, {transform_indices = @transform_5, window_bounds = array<i64: 32, 128>}]} {
    %c0 = arith.constant 0 : index
    %c0_0 = arith.constant 0 : index
    %c0_1 = arith.constant 0 : index
    %0 = vector.load %arg1[%c0, %c0_0, %c0_1] : memref<16x32x7xbf16, #tpu.memory_space<vmem>>, vector<16x32x7xbf16>
    %1 = vector.shape_cast %0 : vector<16x32x7xbf16> to vector<512x7xbf16>
    %c0_2 = arith.constant 0 : index
    %c0_3 = arith.constant 0 : index
    %2 = vector.load %arg2[%c0_2, %c0_3] : memref<7x256xbf16, #tpu.memory_space<vmem>>, vector<7x256xbf16>
    %cst = arith.constant dense<0.000000e+00> : vector<512x256xf32>
    %3 = tpu.matmul %1, %2, %cst {dimension_numbers = #tpu.dot_dimension_numbers<[1], [0], [0], [1], [0, 0, 1, 1], [], []>} : vector<512x7xbf16>, vector<7x256xbf16>, vector<512x256xf32> -> vector<512x256xf32>
    %4 = vector.extract_strided_slice %3 {offsets = [0, 0], sizes = [512, 128], strides = [1, 1]} : vector<512x256xf32> to vector<512x128xf32>
    %c0_4 = arith.constant 0 : index
    %c0_5 = arith.constant 0 : index
    %5 = vector.load %arg3[%c0_4, %c0_5] : memref<1x128xf32, #tpu.memory_space<vmem>>, vector<1x128xf32>
    %6 = vector.broadcast %5 : vector<1x128xf32> to vector<512x128xf32>
    %7 = arith.addf %4, %6 : vector<512x128xf32>
    %cst_6 = arith.constant 0.000000e+00 : f32
    %8 = vector.broadcast %cst_6 : f32 to vector<512x128xf32>
    %9 = arith.maximumf %7, %8 : vector<512x128xf32>
    %10 = vector.extract_strided_slice %3 {offsets = [0, 128], sizes = [512, 128], strides = [1, 1]} : vector<512x256xf32> to vector<512x128xf32>
    %11 = arith.truncf %9 : vector<512x128xf32> to vector<512x128xbf16>
    %c0_7 = arith.constant 0 : index
    %c0_8 = arith.constant 0 : index
    %12 = vector.load %arg4[%c0_7, %c0_8] : memref<128x128xbf16, #tpu.memory_space<vmem>>, vector<128x128xbf16>
    %cst_9 = arith.constant dense<0.000000e+00> : vector<512x128xf32>
    %13 = tpu.matmul %11, %12, %cst_9 {dimension_numbers = #tpu.dot_dimension_numbers<[1], [0], [0], [1], [0, 0, 1, 1], [], []>} : vector<512x128xbf16>, vector<128x128xbf16>, vector<512x128xf32> -> vector<512x128xf32>
    %14 = arith.addf %13, %10 : vector<512x128xf32>
    %15 = vector.shape_cast %14 : vector<512x128xf32> to vector<16x32x128xf32>
    %cst_10 = arith.constant dense<0xFF800000> : vector<32x128xf32>
    %16 = vector.multi_reduction <maximumf>, %15, %cst_10 [0] : vector<16x32x128xf32> to vector<32x128xf32>
    %c0_11 = arith.constant 0 : index
    %c0_12 = arith.constant 0 : index
    %17 = vector.load %arg5[%c0_11, %c0_12] : memref<1x128xf32, #tpu.memory_space<vmem>>, vector<1x128xf32>
    %18 = vector.broadcast %17 : vector<1x128xf32> to vector<32x128xf32>
    %19 = arith.addf %16, %18 : vector<32x128xf32>
    %cst_13 = arith.constant 0.000000e+00 : f32
    %20 = vector.broadcast %cst_13 : f32 to vector<32x128xf32>
    %21 = arith.maximumf %19, %20 : vector<32x128xf32>
    %22 = arith.truncf %21 : vector<32x128xf32> to vector<32x128xbf16>
    %c0_14 = arith.constant 0 : index
    %c0_15 = arith.constant 0 : index
    %23 = vector.load %arg6[%c0_14, %c0_15] : memref<32x128xbf16, #tpu.memory_space<vmem>>, vector<32x128xbf16>
    tpu.vector_store %arg6[%c0_14, %c0_15], %22 {strides = array<i32>} : memref<32x128xbf16, #tpu.memory_space<vmem>>, vector<32x128xbf16>,
    return
  }
  func.func @transform_0(%arg0: i32) -> (i32, i32, i32) {
    %c0_i32 = arith.constant 0 : i32
    %c0_i32_0 = arith.constant 0 : i32
    %c0_i32_1 = arith.constant 0 : i32
    return %c0_i32, %arg0, %c0_i32_0 : i32, i32, i32
  }
  func.func @transform_1(%arg0: i32) -> (i32, i32) {
    %c0_i32 = arith.constant 0 : i32
    %c0_i32_0 = arith.constant 0 : i32
    %c0_i32_1 = arith.constant 0 : i32
    return %c0_i32, %c0_i32_0 : i32, i32
  }
  func.func @transform_2(%arg0: i32) -> (i32, i32) {
    %c0_i32 = arith.constant 0 : i32
    %c0_i32_0 = arith.constant 0 : i32
    %c0_i32_1 = arith.constant 0 : i32
    return %c0_i32, %c0_i32_0 : i32, i32
  }
  func.func @transform_3(%arg0: i32) -> (i32, i32) {
    %c0_i32 = arith.constant 0 : i32
    %c0_i32_0 = arith.constant 0 : i32
    %c0_i32_1 = arith.constant 0 : i32
    return %c0_i32, %c0_i32_0 : i32, i32
  }
  func.func @transform_4(%arg0: i32) -> (i32, i32) {
    %c0_i32 = arith.constant 0 : i32
    %c0_i32_0 = arith.constant 0 : i32
    %c0_i32_1 = arith.constant 0 : i32
    return %c0_i32, %c0_i32_0 : i32, i32
  }
  func.func @transform_5(%arg0: i32) -> (i32, i32) {
    %c0_i32 = arith.constant 0 : i32
    %c0_i32_0 = arith.constant 0 : i32
    return %arg0, %c0_i32 : i32, i32
  }
}

module attributes {stable_mosaic.version = 11 : i64} {
  func.func @_sa_conv_kernel(%arg0: i32, %arg1: memref<16x16x67xbf16, #tpu.memory_space<vmem>>, %arg2: memref<67x256xbf16, #tpu.memory_space<vmem>>, %arg3: memref<1x128xf32, #tpu.memory_space<vmem>>, %arg4: memref<128x128xbf16, #tpu.memory_space<vmem>>, %arg5: memref<1x128xf32, #tpu.memory_space<vmem>>, %arg6: memref<16x128xbf16, #tpu.memory_space<vmem>>) attributes {dimension_semantics = [#tpu.dimension_semantics<parallel>], iteration_bounds = array<i64: 1>, scalar_prefetch = 0 : i64, scratch_operands = 0 : i64, tpu.core_type = #tpu.core_type<tc>, window_params = [{transform_indices = @transform_0, window_bounds = array<i64: 16, 16, 67>}, {pipeline_mode = #tpu.pipeline_mode<synchronous>, transform_indices = @transform_1, window_bounds = array<i64: 67, 256>}, {pipeline_mode = #tpu.pipeline_mode<synchronous>, transform_indices = @transform_2, window_bounds = array<i64: 1, 128>}, {pipeline_mode = #tpu.pipeline_mode<synchronous>, transform_indices = @transform_3, window_bounds = array<i64: 128, 128>}, {pipeline_mode = #tpu.pipeline_mode<synchronous>, transform_indices = @transform_4, window_bounds = array<i64: 1, 128>}, {transform_indices = @transform_5, window_bounds = array<i64: 16, 128>}]} {
    %c0 = arith.constant 0 : index
    %c0_0 = arith.constant 0 : index
    %c0_1 = arith.constant 0 : index
    %0 = vector.load %arg1[%c0, %c0_0, %c0_1] : memref<16x16x67xbf16, #tpu.memory_space<vmem>>, vector<16x16x67xbf16>
    %1 = vector.shape_cast %0 : vector<16x16x67xbf16> to vector<256x67xbf16>
    %c0_2 = arith.constant 0 : index
    %c0_3 = arith.constant 0 : index
    %2 = vector.load %arg2[%c0_2, %c0_3] : memref<67x256xbf16, #tpu.memory_space<vmem>>, vector<67x256xbf16>
    %cst = arith.constant dense<0.000000e+00> : vector<256x256xf32>
    %3 = tpu.matmul %1, %2, %cst {dimension_numbers = #tpu.dot_dimension_numbers<[1], [0], [0], [1], [0, 0, 1, 1], [], []>} : vector<256x67xbf16>, vector<67x256xbf16>, vector<256x256xf32> -> vector<256x256xf32>
    %4 = vector.extract_strided_slice %3 {offsets = [0, 0], sizes = [256, 128], strides = [1, 1]} : vector<256x256xf32> to vector<256x128xf32>
    %c0_4 = arith.constant 0 : index
    %c0_5 = arith.constant 0 : index
    %5 = vector.load %arg3[%c0_4, %c0_5] : memref<1x128xf32, #tpu.memory_space<vmem>>, vector<1x128xf32>
    %6 = vector.broadcast %5 : vector<1x128xf32> to vector<256x128xf32>
    %7 = arith.addf %4, %6 : vector<256x128xf32>
    %cst_6 = arith.constant 0.000000e+00 : f32
    %8 = vector.broadcast %cst_6 : f32 to vector<256x128xf32>
    %9 = arith.maximumf %7, %8 : vector<256x128xf32>
    %10 = vector.extract_strided_slice %3 {offsets = [0, 128], sizes = [256, 128], strides = [1, 1]} : vector<256x256xf32> to vector<256x128xf32>
    %11 = arith.truncf %9 : vector<256x128xf32> to vector<256x128xbf16>
    %c0_7 = arith.constant 0 : index
    %c0_8 = arith.constant 0 : index
    %12 = vector.load %arg4[%c0_7, %c0_8] : memref<128x128xbf16, #tpu.memory_space<vmem>>, vector<128x128xbf16>
    %cst_9 = arith.constant dense<0.000000e+00> : vector<256x128xf32>
    %13 = tpu.matmul %11, %12, %cst_9 {dimension_numbers = #tpu.dot_dimension_numbers<[1], [0], [0], [1], [0, 0, 1, 1], [], []>} : vector<256x128xbf16>, vector<128x128xbf16>, vector<256x128xf32> -> vector<256x128xf32>
    %14 = arith.addf %13, %10 : vector<256x128xf32>
    %15 = vector.shape_cast %14 : vector<256x128xf32> to vector<16x16x128xf32>
    %cst_10 = arith.constant dense<0xFF800000> : vector<16x128xf32>
    %16 = vector.multi_reduction <maximumf>, %15, %cst_10 [0] : vector<16x16x128xf32> to vector<16x128xf32>
    %c0_11 = arith.constant 0 : index
    %c0_12 = arith.constant 0 : index
    %17 = vector.load %arg5[%c0_11, %c0_12] : memref<1x128xf32, #tpu.memory_space<vmem>>, vector<1x128xf32>
    %18 = vector.broadcast %17 : vector<1x128xf32> to vector<16x128xf32>
    %19 = arith.addf %16, %18 : vector<16x128xf32>
    %cst_13 = arith.constant 0.000000e+00 : f32
    %20 = vector.broadcast %cst_13 : f32 to vector<16x128xf32>
    %21 = arith.maximumf %19, %20 : vector<16x128xf32>
    %22 = arith.truncf %21 : vector<16x128xf32> to vector<16x128xbf16>
    %c0_14 = arith.constant 0 : index
    %c0_15 = arith.constant 0 : index
    %23 = vector.load %arg6[%c0_14, %c0_15] : memref<16x128xbf16, #tpu.memory_space<vmem>>, vector<16x128xbf16>
    tpu.vector_store %arg6[%c0_14, %c0_15], %22 {strides = array<i32>} : memref<16x128xbf16, #tpu.memory_space<vmem>>, vector<16x128xbf16>,
    return
  }
  func.func @transform_0(%arg0: i32) -> (i32, i32, i32) {
    %c0_i32 = arith.constant 0 : i32
    %c0_i32_0 = arith.constant 0 : i32
    %c0_i32_1 = arith.constant 0 : i32
    return %c0_i32, %arg0, %c0_i32_0 : i32, i32, i32
  }
  func.func @transform_1(%arg0: i32) -> (i32, i32) {
    %c0_i32 = arith.constant 0 : i32
    %c0_i32_0 = arith.constant 0 : i32
    %c0_i32_1 = arith.constant 0 : i32
    return %c0_i32, %c0_i32_0 : i32, i32
  }
  func.func @transform_2(%arg0: i32) -> (i32, i32) {
    %c0_i32 = arith.constant 0 : i32
    %c0_i32_0 = arith.constant 0 : i32
    %c0_i32_1 = arith.constant 0 : i32
    return %c0_i32, %c0_i32_0 : i32, i32
  }
  func.func @transform_3(%arg0: i32) -> (i32, i32) {
    %c0_i32 = arith.constant 0 : i32
    %c0_i32_0 = arith.constant 0 : i32
    %c0_i32_1 = arith.constant 0 : i32
    return %c0_i32, %c0_i32_0 : i32, i32
  }
  func.func @transform_4(%arg0: i32) -> (i32, i32) {
    %c0_i32 = arith.constant 0 : i32
    %c0_i32_0 = arith.constant 0 : i32
    %c0_i32_1 = arith.constant 0 : i32
    return %c0_i32, %c0_i32_0 : i32, i32
  }
  func.func @transform_5(%arg0: i32) -> (i32, i32) {
    %c0_i32 = arith.constant 0 : i32
    %c0_i32_0 = arith.constant 0 : i32
    return %arg0, %c0_i32 : i32, i32
  }
}

module attributes {stable_mosaic.version = 11 : i64} {
  func.func @_sa_conv_kernel(%arg0: i32, %arg1: memref<8x8x131xbf16, #tpu.memory_space<vmem>>, %arg2: memref<131x512xbf16, #tpu.memory_space<vmem>>, %arg3: memref<1x256xf32, #tpu.memory_space<vmem>>, %arg4: memref<256x256xbf16, #tpu.memory_space<vmem>>, %arg5: memref<1x256xf32, #tpu.memory_space<vmem>>, %arg6: memref<8x256xbf16, #tpu.memory_space<vmem>>) attributes {dimension_semantics = [#tpu.dimension_semantics<parallel>], iteration_bounds = array<i64: 1>, scalar_prefetch = 0 : i64, scratch_operands = 0 : i64, tpu.core_type = #tpu.core_type<tc>, window_params = [{transform_indices = @transform_0, window_bounds = array<i64: 8, 8, 131>}, {pipeline_mode = #tpu.pipeline_mode<synchronous>, transform_indices = @transform_1, window_bounds = array<i64: 131, 512>}, {pipeline_mode = #tpu.pipeline_mode<synchronous>, transform_indices = @transform_2, window_bounds = array<i64: 1, 256>}, {pipeline_mode = #tpu.pipeline_mode<synchronous>, transform_indices = @transform_3, window_bounds = array<i64: 256, 256>}, {pipeline_mode = #tpu.pipeline_mode<synchronous>, transform_indices = @transform_4, window_bounds = array<i64: 1, 256>}, {transform_indices = @transform_5, window_bounds = array<i64: 8, 256>}]} {
    %c0 = arith.constant 0 : index
    %c0_0 = arith.constant 0 : index
    %c0_1 = arith.constant 0 : index
    %0 = vector.load %arg1[%c0, %c0_0, %c0_1] : memref<8x8x131xbf16, #tpu.memory_space<vmem>>, vector<8x8x131xbf16>
    %1 = vector.shape_cast %0 : vector<8x8x131xbf16> to vector<64x131xbf16>
    %c0_2 = arith.constant 0 : index
    %c0_3 = arith.constant 0 : index
    %2 = vector.load %arg2[%c0_2, %c0_3] : memref<131x512xbf16, #tpu.memory_space<vmem>>, vector<131x512xbf16>
    %cst = arith.constant dense<0.000000e+00> : vector<64x512xf32>
    %3 = tpu.matmul %1, %2, %cst {dimension_numbers = #tpu.dot_dimension_numbers<[1], [0], [0], [1], [0, 0, 1, 1], [], []>} : vector<64x131xbf16>, vector<131x512xbf16>, vector<64x512xf32> -> vector<64x512xf32>
    %4 = vector.extract_strided_slice %3 {offsets = [0, 0], sizes = [64, 256], strides = [1, 1]} : vector<64x512xf32> to vector<64x256xf32>
    %c0_4 = arith.constant 0 : index
    %c0_5 = arith.constant 0 : index
    %5 = vector.load %arg3[%c0_4, %c0_5] : memref<1x256xf32, #tpu.memory_space<vmem>>, vector<1x256xf32>
    %6 = vector.broadcast %5 : vector<1x256xf32> to vector<64x256xf32>
    %7 = arith.addf %4, %6 : vector<64x256xf32>
    %cst_6 = arith.constant 0.000000e+00 : f32
    %8 = vector.broadcast %cst_6 : f32 to vector<64x256xf32>
    %9 = arith.maximumf %7, %8 : vector<64x256xf32>
    %10 = vector.extract_strided_slice %3 {offsets = [0, 256], sizes = [64, 256], strides = [1, 1]} : vector<64x512xf32> to vector<64x256xf32>
    %11 = arith.truncf %9 : vector<64x256xf32> to vector<64x256xbf16>
    %c0_7 = arith.constant 0 : index
    %c0_8 = arith.constant 0 : index
    %12 = vector.load %arg4[%c0_7, %c0_8] : memref<256x256xbf16, #tpu.memory_space<vmem>>, vector<256x256xbf16>
    %cst_9 = arith.constant dense<0.000000e+00> : vector<64x256xf32>
    %13 = tpu.matmul %11, %12, %cst_9 {dimension_numbers = #tpu.dot_dimension_numbers<[1], [0], [0], [1], [0, 0, 1, 1], [], []>} : vector<64x256xbf16>, vector<256x256xbf16>, vector<64x256xf32> -> vector<64x256xf32>
    %14 = arith.addf %13, %10 : vector<64x256xf32>
    %15 = vector.shape_cast %14 : vector<64x256xf32> to vector<8x8x256xf32>
    %cst_10 = arith.constant dense<0xFF800000> : vector<8x256xf32>
    %16 = vector.multi_reduction <maximumf>, %15, %cst_10 [0] : vector<8x8x256xf32> to vector<8x256xf32>
    %c0_11 = arith.constant 0 : index
    %c0_12 = arith.constant 0 : index
    %17 = vector.load %arg5[%c0_11, %c0_12] : memref<1x256xf32, #tpu.memory_space<vmem>>, vector<1x256xf32>
    %18 = vector.broadcast %17 : vector<1x256xf32> to vector<8x256xf32>
    %19 = arith.addf %16, %18 : vector<8x256xf32>
    %cst_13 = arith.constant 0.000000e+00 : f32
    %20 = vector.broadcast %cst_13 : f32 to vector<8x256xf32>
    %21 = arith.maximumf %19, %20 : vector<8x256xf32>
    %22 = arith.truncf %21 : vector<8x256xf32> to vector<8x256xbf16>
    %c0_14 = arith.constant 0 : index
    %c0_15 = arith.constant 0 : index
    %23 = vector.load %arg6[%c0_14, %c0_15] : memref<8x256xbf16, #tpu.memory_space<vmem>>, vector<8x256xbf16>
    tpu.vector_store %arg6[%c0_14, %c0_15], %22 {strides = array<i32>} : memref<8x256xbf16, #tpu.memory_space<vmem>>, vector<8x256xbf16>,
    return
  }
  func.func @transform_0(%arg0: i32) -> (i32, i32, i32) {
    %c0_i32 = arith.constant 0 : i32
    %c0_i32_0 = arith.constant 0 : i32
    %c0_i32_1 = arith.constant 0 : i32
    return %c0_i32, %arg0, %c0_i32_0 : i32, i32, i32
  }
  func.func @transform_1(%arg0: i32) -> (i32, i32) {
    %c0_i32 = arith.constant 0 : i32
    %c0_i32_0 = arith.constant 0 : i32
    %c0_i32_1 = arith.constant 0 : i32
    return %c0_i32, %c0_i32_0 : i32, i32
  }
  func.func @transform_2(%arg0: i32) -> (i32, i32) {
    %c0_i32 = arith.constant 0 : i32
    %c0_i32_0 = arith.constant 0 : i32
    %c0_i32_1 = arith.constant 0 : i32
    return %c0_i32, %c0_i32_0 : i32, i32
  }
  func.func @transform_3(%arg0: i32) -> (i32, i32) {
    %c0_i32 = arith.constant 0 : i32
    %c0_i32_0 = arith.constant 0 : i32
    %c0_i32_1 = arith.constant 0 : i32
    return %c0_i32, %c0_i32_0 : i32, i32
  }
  func.func @transform_4(%arg0: i32) -> (i32, i32) {
    %c0_i32 = arith.constant 0 : i32
    %c0_i32_0 = arith.constant 0 : i32
    %c0_i32_1 = arith.constant 0 : i32
    return %c0_i32, %c0_i32_0 : i32, i32
  }
  func.func @transform_5(%arg0: i32) -> (i32, i32) {
    %c0_i32 = arith.constant 0 : i32
    %c0_i32_0 = arith.constant 0 : i32
    return %arg0, %c0_i32 : i32, i32
  }
}

module attributes {stable_mosaic.version = 11 : i64} {
  func.func @_global_head_kernel(%arg0: i32, %arg1: i32, %arg2: memref<8x8x512xf32, #tpu.memory_space<vmem>>, %arg3: memref<512x512xbf16, #tpu.memory_space<vmem>>, %arg4: memref<1x512xf32, #tpu.memory_space<vmem>>, %arg5: memref<512x512xbf16, #tpu.memory_space<vmem>>, %arg6: memref<1x512xf32, #tpu.memory_space<vmem>>, %arg7: memref<512x128xbf16, #tpu.memory_space<vmem>>, %arg8: memref<1x128xf32, #tpu.memory_space<vmem>>, %arg9: memref<8x128xf32, #tpu.memory_space<vmem>>, %arg10: memref<8x512xf32, #tpu.memory_space<vmem>>) attributes {dimension_semantics = [#tpu.dimension_semantics<parallel>, #tpu.dimension_semantics<arbitrary>], iteration_bounds = array<i64: 1, 1>, scalar_prefetch = 0 : i64, scratch_operands = 1 : i64, tpu.core_type = #tpu.core_type<tc>, window_params = [{transform_indices = @transform_0, window_bounds = array<i64: 8, 8, 512>}, {pipeline_mode = #tpu.pipeline_mode<synchronous>, transform_indices = @transform_1, window_bounds = array<i64: 512, 512>}, {pipeline_mode = #tpu.pipeline_mode<synchronous>, transform_indices = @transform_2, window_bounds = array<i64: 1, 512>}, {pipeline_mode = #tpu.pipeline_mode<synchronous>, transform_indices = @transform_3, window_bounds = array<i64: 512, 512>}, {pipeline_mode = #tpu.pipeline_mode<synchronous>, transform_indices = @transform_4, window_bounds = array<i64: 1, 512>}, {pipeline_mode = #tpu.pipeline_mode<synchronous>, transform_indices = @transform_5, window_bounds = array<i64: 512, 128>}, {pipeline_mode = #tpu.pipeline_mode<synchronous>, transform_indices = @transform_6, window_bounds = array<i64: 1, 128>}, {transform_indices = @transform_7, window_bounds = array<i64: 8, 128>}]} {
    %c0_i32 = arith.constant 0 : i32
    %0 = arith.cmpi eq, %arg1, %c0_i32 : i32
    %1 = arith.extui %0 : i1 to i32
    %c0_i32_0 = arith.constant 0 : i32
    %2 = arith.cmpi ne, %1, %c0_i32_0 : i32
    scf.if %2 {
      %cst_9 = arith.constant -3.40282347E+38 : f32
      %11 = vector.broadcast %cst_9 : f32 to vector<8x512xf32>
      %c0_10 = arith.constant 0 : index
      %c0_11 = arith.constant 0 : index
      %12 = vector.load %arg10[%c0_10, %c0_11] : memref<8x512xf32, #tpu.memory_space<vmem>>, vector<8x512xf32>
      tpu.vector_store %arg10[%c0_10, %c0_11], %11 {strides = array<i32>} : memref<8x512xf32, #tpu.memory_space<vmem>>, vector<8x512xf32>,
    } else {
    }
    %c0 = arith.constant 0 : index
    %c0_1 = arith.constant 0 : index
    %3 = vector.load %arg10[%c0, %c0_1] : memref<8x512xf32, #tpu.memory_space<vmem>>, vector<8x512xf32>
    %c0_2 = arith.constant 0 : index
    %c0_3 = arith.constant 0 : index
    %c0_4 = arith.constant 0 : index
    %4 = vector.load %arg2[%c0_2, %c0_3, %c0_4] : memref<8x8x512xf32, #tpu.memory_space<vmem>>, vector<8x8x512xf32>
    %cst = arith.constant dense<0xFF800000> : vector<8x512xf32>
    %5 = vector.multi_reduction <maximumf>, %4, %cst [1] : vector<8x8x512xf32> to vector<8x512xf32>
    %6 = arith.maximumf %3, %5 : vector<8x512xf32>
    %c0_5 = arith.constant 0 : index
    %c0_6 = arith.constant 0 : index
    %7 = vector.load %arg10[%c0_5, %c0_6] : memref<8x512xf32, #tpu.memory_space<vmem>>, vector<8x512xf32>
    tpu.vector_store %arg10[%c0_5, %c0_6], %6 {strides = array<i32>} : memref<8x512xf32, #tpu.memory_space<vmem>>, vector<8x512xf32>,
    %c0_i32_7 = arith.constant 0 : i32
    %8 = arith.cmpi eq, %arg1, %c0_i32_7 : i32
    %9 = arith.extui %8 : i1 to i32
    %c0_i32_8 = arith.constant 0 : i32
    %10 = arith.cmpi ne, %9, %c0_i32_8 : i32
    scf.if %10 {
      %c0_9 = arith.constant 0 : index
      %c0_10 = arith.constant 0 : index
      %11 = vector.load %arg10[%c0_9, %c0_10] : memref<8x512xf32, #tpu.memory_space<vmem>>, vector<8x512xf32>
      %12 = arith.truncf %11 : vector<8x512xf32> to vector<8x512xbf16>
      %c0_11 = arith.constant 0 : index
      %c0_12 = arith.constant 0 : index
      %13 = vector.load %arg3[%c0_11, %c0_12] : memref<512x512xbf16, #tpu.memory_space<vmem>>, vector<512x512xbf16>
      %cst_13 = arith.constant dense<0.000000e+00> : vector<8x512xf32>
      %14 = tpu.matmul %12, %13, %cst_13 {dimension_numbers = #tpu.dot_dimension_numbers<[1], [0], [0], [1], [0, 0, 1, 1], [], []>} : vector<8x512xbf16>, vector<512x512xbf16>, vector<8x512xf32> -> vector<8x512xf32>
      %c0_14 = arith.constant 0 : index
      %c0_15 = arith.constant 0 : index
      %15 = vector.load %arg4[%c0_14, %c0_15] : memref<1x512xf32, #tpu.memory_space<vmem>>, vector<1x512xf32>
      %16 = vector.broadcast %15 : vector<1x512xf32> to vector<8x512xf32>
      %17 = arith.addf %14, %16 : vector<8x512xf32>
      %cst_16 = arith.constant 0.000000e+00 : f32
      %18 = vector.broadcast %cst_16 : f32 to vector<8x512xf32>
      %19 = arith.maximumf %17, %18 : vector<8x512xf32>
      %20 = arith.truncf %19 : vector<8x512xf32> to vector<8x512xbf16>
      %c0_17 = arith.constant 0 : index
      %c0_18 = arith.constant 0 : index
      %21 = vector.load %arg5[%c0_17, %c0_18] : memref<512x512xbf16, #tpu.memory_space<vmem>>, vector<512x512xbf16>
      %cst_19 = arith.constant dense<0.000000e+00> : vector<8x512xf32>
      %22 = tpu.matmul %20, %21, %cst_19 {dimension_numbers = #tpu.dot_dimension_numbers<[1], [0], [0], [1], [0, 0, 1, 1], [], []>} : vector<8x512xbf16>, vector<512x512xbf16>, vector<8x512xf32> -> vector<8x512xf32>
      %c0_20 = arith.constant 0 : index
      %c0_21 = arith.constant 0 : index
      %23 = vector.load %arg6[%c0_20, %c0_21] : memref<1x512xf32, #tpu.memory_space<vmem>>, vector<1x512xf32>
      %24 = vector.broadcast %23 : vector<1x512xf32> to vector<8x512xf32>
      %25 = arith.addf %22, %24 : vector<8x512xf32>
      %26 = arith.addf %25, %11 : vector<8x512xf32>
      %cst_22 = arith.constant 0.000000e+00 : f32
      %27 = vector.broadcast %cst_22 : f32 to vector<8x512xf32>
      %28 = arith.maximumf %26, %27 : vector<8x512xf32>
      %29 = arith.truncf %28 : vector<8x512xf32> to vector<8x512xbf16>
      %c0_23 = arith.constant 0 : index
      %c0_24 = arith.constant 0 : index
      %30 = vector.load %arg7[%c0_23, %c0_24] : memref<512x128xbf16, #tpu.memory_space<vmem>>, vector<512x128xbf16>
      %cst_25 = arith.constant dense<0.000000e+00> : vector<8x128xf32>
      %31 = tpu.matmul %29, %30, %cst_25 {dimension_numbers = #tpu.dot_dimension_numbers<[1], [0], [0], [1], [0, 0, 1, 1], [], []>} : vector<8x512xbf16>, vector<512x128xbf16>, vector<8x128xf32> -> vector<8x128xf32>
      %c0_26 = arith.constant 0 : index
      %c0_27 = arith.constant 0 : index
      %32 = vector.load %arg8[%c0_26, %c0_27] : memref<1x128xf32, #tpu.memory_space<vmem>>, vector<1x128xf32>
      %33 = vector.broadcast %32 : vector<1x128xf32> to vector<8x128xf32>
      %34 = arith.addf %31, %33 : vector<8x128xf32>
      %c0_28 = arith.constant 0 : index
      %c0_29 = arith.constant 0 : index
      %35 = vector.load %arg9[%c0_28, %c0_29] : memref<8x128xf32, #tpu.memory_space<vmem>>, vector<8x128xf32>
      tpu.vector_store %arg9[%c0_28, %c0_29], %34 {strides = array<i32>} : memref<8x128xf32, #tpu.memory_space<vmem>>, vector<8x128xf32>,
    } else {
    }
    return
  }
  func.func @transform_0(%arg0: i32, %arg1: i32) -> (i32, i32, i32) {
    %c0_i32 = arith.constant 0 : i32
    %c0_i32_0 = arith.constant 0 : i32
    return %arg0, %arg1, %c0_i32 : i32, i32, i32
  }
  func.func @transform_1(%arg0: i32, %arg1: i32) -> (i32, i32) {
    %c0_i32 = arith.constant 0 : i32
    %c0_i32_0 = arith.constant 0 : i32
    %c0_i32_1 = arith.constant 0 : i32
    return %c0_i32, %c0_i32_0 : i32, i32
  }
  func.func @transform_2(%arg0: i32, %arg1: i32) -> (i32, i32) {
    %c0_i32 = arith.constant 0 : i32
    %c0_i32_0 = arith.constant 0 : i32
    %c0_i32_1 = arith.constant 0 : i32
    return %c0_i32, %c0_i32_0 : i32, i32
  }
  func.func @transform_3(%arg0: i32, %arg1: i32) -> (i32, i32) {
    %c0_i32 = arith.constant 0 : i32
    %c0_i32_0 = arith.constant 0 : i32
    %c0_i32_1 = arith.constant 0 : i32
    return %c0_i32, %c0_i32_0 : i32, i32
  }
  func.func @transform_4(%arg0: i32, %arg1: i32) -> (i32, i32) {
    %c0_i32 = arith.constant 0 : i32
    %c0_i32_0 = arith.constant 0 : i32
    %c0_i32_1 = arith.constant 0 : i32
    return %c0_i32, %c0_i32_0 : i32, i32
  }
  func.func @transform_5(%arg0: i32, %arg1: i32) -> (i32, i32) {
    %c0_i32 = arith.constant 0 : i32
    %c0_i32_0 = arith.constant 0 : i32
    %c0_i32_1 = arith.constant 0 : i32
    return %c0_i32, %c0_i32_0 : i32, i32
  }
  func.func @transform_6(%arg0: i32, %arg1: i32) -> (i32, i32) {
    %c0_i32 = arith.constant 0 : i32
    %c0_i32_0 = arith.constant 0 : i32
    %c0_i32_1 = arith.constant 0 : i32
    return %c0_i32, %c0_i32_0 : i32, i32
  }
  func.func @transform_7(%arg0: i32, %arg1: i32) -> (i32, i32) {
    %c0_i32 = arith.constant 0 : i32
    %c0_i32_0 = arith.constant 0 : i32
    return %arg0, %c0_i32 : i32, i32
  }
}

module attributes {stable_mosaic.version = 11 : i64} {
  func.func @_sa_conv_kernel(%arg0: i32, %arg1: memref<4x8x259xbf16, #tpu.memory_space<vmem>>, %arg2: memref<259x896xbf16, #tpu.memory_space<vmem>>, %arg3: memref<1x384xf32, #tpu.memory_space<vmem>>, %arg4: memref<384x512xbf16, #tpu.memory_space<vmem>>, %arg5: memref<1x512xf32, #tpu.memory_space<vmem>>, %arg6: memref<8x512xf32, #tpu.memory_space<vmem>>) attributes {dimension_semantics = [#tpu.dimension_semantics<parallel>], iteration_bounds = array<i64: 1>, scalar_prefetch = 0 : i64, scratch_operands = 0 : i64, tpu.core_type = #tpu.core_type<tc>, window_params = [{transform_indices = @transform_0, window_bounds = array<i64: 4, 8, 259>}, {pipeline_mode = #tpu.pipeline_mode<synchronous>, transform_indices = @transform_1, window_bounds = array<i64: 259, 896>}, {pipeline_mode = #tpu.pipeline_mode<synchronous>, transform_indices = @transform_2, window_bounds = array<i64: 1, 384>}, {pipeline_mode = #tpu.pipeline_mode<synchronous>, transform_indices = @transform_3, window_bounds = array<i64: 384, 512>}, {pipeline_mode = #tpu.pipeline_mode<synchronous>, transform_indices = @transform_4, window_bounds = array<i64: 1, 512>}, {transform_indices = @transform_5, window_bounds = array<i64: 8, 512>}]} {
    %c0 = arith.constant 0 : index
    %c0_0 = arith.constant 0 : index
    %c0_1 = arith.constant 0 : index
    %0 = vector.load %arg1[%c0, %c0_0, %c0_1] : memref<4x8x259xbf16, #tpu.memory_space<vmem>>, vector<4x8x259xbf16>
    %1 = vector.shape_cast %0 : vector<4x8x259xbf16> to vector<32x259xbf16>
    %c0_2 = arith.constant 0 : index
    %c0_3 = arith.constant 0 : index
    %2 = vector.load %arg2[%c0_2, %c0_3] : memref<259x896xbf16, #tpu.memory_space<vmem>>, vector<259x896xbf16>
    %cst = arith.constant dense<0.000000e+00> : vector<32x896xf32>
    %3 = tpu.matmul %1, %2, %cst {dimension_numbers = #tpu.dot_dimension_numbers<[1], [0], [0], [1], [0, 0, 1, 1], [], []>} : vector<32x259xbf16>, vector<259x896xbf16>, vector<32x896xf32> -> vector<32x896xf32>
    %4 = vector.extract_strided_slice %3 {offsets = [0, 0], sizes = [32, 384], strides = [1, 1]} : vector<32x896xf32> to vector<32x384xf32>
    %c0_4 = arith.constant 0 : index
    %c0_5 = arith.constant 0 : index
    %5 = vector.load %arg3[%c0_4, %c0_5] : memref<1x384xf32, #tpu.memory_space<vmem>>, vector<1x384xf32>
    %6 = vector.broadcast %5 : vector<1x384xf32> to vector<32x384xf32>
    %7 = arith.addf %4, %6 : vector<32x384xf32>
    %cst_6 = arith.constant 0.000000e+00 : f32
    %8 = vector.broadcast %cst_6 : f32 to vector<32x384xf32>
    %9 = arith.maximumf %7, %8 : vector<32x384xf32>
    %10 = vector.extract_strided_slice %3 {offsets = [0, 384], sizes = [32, 512], strides = [1, 1]} : vector<32x896xf32> to vector<32x512xf32>
    %11 = arith.truncf %9 : vector<32x384xf32> to vector<32x384xbf16>
    %c0_7 = arith.constant 0 : index
    %c0_8 = arith.constant 0 : index
    %12 = vector.load %arg4[%c0_7, %c0_8] : memref<384x512xbf16, #tpu.memory_space<vmem>>, vector<384x512xbf16>
    %cst_9 = arith.constant dense<0.000000e+00> : vector<32x512xf32>
    %13 = tpu.matmul %11, %12, %cst_9 {dimension_numbers = #tpu.dot_dimension_numbers<[1], [0], [0], [1], [0, 0, 1, 1], [], []>} : vector<32x384xbf16>, vector<384x512xbf16>, vector<32x512xf32> -> vector<32x512xf32>
    %14 = arith.addf %13, %10 : vector<32x512xf32>
    %15 = vector.shape_cast %14 : vector<32x512xf32> to vector<4x8x512xf32>
    %cst_10 = arith.constant dense<0xFF800000> : vector<8x512xf32>
    %16 = vector.multi_reduction <maximumf>, %15, %cst_10 [0] : vector<4x8x512xf32> to vector<8x512xf32>
    %c0_11 = arith.constant 0 : index
    %c0_12 = arith.constant 0 : index
    %17 = vector.load %arg5[%c0_11, %c0_12] : memref<1x512xf32, #tpu.memory_space<vmem>>, vector<1x512xf32>
    %18 = vector.broadcast %17 : vector<1x512xf32> to vector<8x512xf32>
    %19 = arith.addf %16, %18 : vector<8x512xf32>
    %cst_13 = arith.constant 0.000000e+00 : f32
    %20 = vector.broadcast %cst_13 : f32 to vector<8x512xf32>
    %21 = arith.maximumf %19, %20 : vector<8x512xf32>
    %c0_14 = arith.constant 0 : index
    %c0_15 = arith.constant 0 : index
    %22 = vector.load %arg6[%c0_14, %c0_15] : memref<8x512xf32, #tpu.memory_space<vmem>>, vector<8x512xf32>
    tpu.vector_store %arg6[%c0_14, %c0_15], %21 {strides = array<i32>} : memref<8x512xf32, #tpu.memory_space<vmem>>, vector<8x512xf32>,
    return
  }
  func.func @transform_0(%arg0: i32) -> (i32, i32, i32) {
    %c0_i32 = arith.constant 0 : i32
    %c0_i32_0 = arith.constant 0 : i32
    %c0_i32_1 = arith.constant 0 : i32
    return %c0_i32, %arg0, %c0_i32_0 : i32, i32, i32
  }
  func.func @transform_1(%arg0: i32) -> (i32, i32) {
    %c0_i32 = arith.constant 0 : i32
    %c0_i32_0 = arith.constant 0 : i32
    %c0_i32_1 = arith.constant 0 : i32
    return %c0_i32, %c0_i32_0 : i32, i32
  }
  func.func @transform_2(%arg0: i32) -> (i32, i32) {
    %c0_i32 = arith.constant 0 : i32
    %c0_i32_0 = arith.constant 0 : i32
    %c0_i32_1 = arith.constant 0 : i32
    return %c0_i32, %c0_i32_0 : i32, i32
  }
  func.func @transform_3(%arg0: i32) -> (i32, i32) {
    %c0_i32 = arith.constant 0 : i32
    %c0_i32_0 = arith.constant 0 : i32
    %c0_i32_1 = arith.constant 0 : i32
    return %c0_i32, %c0_i32_0 : i32, i32
  }
  func.func @transform_4(%arg0: i32) -> (i32, i32) {
    %c0_i32 = arith.constant 0 : i32
    %c0_i32_0 = arith.constant 0 : i32
    %c0_i32_1 = arith.constant 0 : i32
    return %c0_i32, %c0_i32_0 : i32, i32
  }
  func.func @transform_5(%arg0: i32) -> (i32, i32) {
    %c0_i32 = arith.constant 0 : i32
    %c0_i32_0 = arith.constant 0 : i32
    return %arg0, %c0_i32 : i32, i32
  }
}

</mosaic_0001>

<bundles_post_ra>
// kernel: custom-call.32
= control target key start
LH: loop header
LB: loop body
LE: loop exit
PB: predicated region body
PF: predicated region fallthrough
CT: control target
= control target key end

     0   :  { %s6_s0 = inlined_call_operand.vmem [shape: f32[2,32], index: 0, kind: output, shape index: {}]  }

// kernel: custom-call.33
= control target key start
LH: loop header
LB: loop body
LE: loop exit
PB: predicated region body
PF: predicated region fallthrough
CT: control target
= control target key end

     0   :  { %s6_s0 = inlined_call_operand.vmem [shape: f32[2,16], index: 0, kind: output, shape index: {}]  }

// kernel: condition_encoder.5
= control target key start
LH: loop header
LB: loop body
LE: loop exit
PB: predicated region body
PF: predicated region fallthrough
CT: control target
= control target key end

     0   :  { %vm348_vm0 = vcmask 1042432   ;;  %vm349_vm1 = vcmask 1043456   ;;  %v1591_v1 = vmov 65535   ;;  %v1592_v3 = vmov 0   ;;  %s2104_s1 = inlined_call_operand.vmem [shape: bf16[7,256], index: 1, kind: input, shape index: {}]   ;;  %s2105_s0 = inlined_call_operand.vmem [shape: bf16[16,32,7], index: 0, kind: input, shape index: {}]   ;;  %s2106_s3 = inlined_call_operand.vmem [shape: bf16[128,128], index: 3, kind: input, shape index: {}]   ;;  %s2107_s2 = inlined_call_operand.vmem [shape: f32[1,128], index: 2, kind: input, shape index: {}]   ;;  %s2108_s4 = inlined_call_operand.vmem [shape: f32[1,128], index: 4, kind: input, shape index: {}]   ;;  %s2109_s5 = inlined_call_operand.vmem [shape: bf16[32,128], index: 5, kind: output, shape index: {}]  }
   0x1   :  { %v85_v0 = vld [vmem:[%s2104_s1] sm:$0xff]  ;;  %v350_v2 = vsel %vm348_vm0, 4294967295, %v1591_v1  ;;  %390 = vmatprep.mubr.bf16.mxu0 %v1592_v3  ;;  %630 = vmatprep.mubr.bf16.mxu1 %v1592_v3  ;;  %vm251_vm2 = vcmask 56320   ;;  %v1552_v10 = vld [vmem:[%s2105_s0 + $0x8] sm:$0xff]   ;;  %v1553_v11 = vld [vmem:[%s2105_s0 + $0x10] sm:$0xff]  }
   0x2   :  { %v1363_v4 = vcombine.high %v85_v0, %v85_v0  ;;  %v351_v5 = vsel %vm349_vm1, %v350_v2, 0  ;;  %v1362_v6 = vcombine.low %v85_v0, %v85_v0  ;;  %v1551_v9 = vld [vmem:[%s2105_s0] sm:$0xff]   ;;  %v1554_v12 = vld [vmem:[%s2105_s0 + $0x18] sm:$0xff]   ;;  %v1573_v15 = vld [vmem:[%s2105_s0 + $0xc8] sm:$0xff]  }
   0x3   :  { %v1571_v13 = vld [vmem:[%s2105_s0 + $0xc0] sm:$0xff]   ;;  %v1556_v16 = vld [vmem:[%s2105_s0 + $0x28] sm:$0xff]   ;;  %v1575_v17 = vld [vmem:[%s2105_s0 + $0xd0] sm:$0xff]  }
   0x4   :  { %v356_v7 = vand.u32 %v1363_v4, %v351_v5  ;;  %v353_v8 = vand.u32 %v1362_v6, %v351_v5  ;;  %v1555_v14 = vld [vmem:[%s2105_s0 + $0x20] sm:$0xff]   ;;  %v1557_v18 = vld [vmem:[%s2105_s0 + $0x30] sm:$0xff]   ;;  %v1577_v19 = vld [vmem:[%s2105_s0 + $0xd8] sm:$0xff]  }
   0x5   :  { %v1558_v20 = vld [vmem:[%s2105_s0 + $0x38] sm:$0xff]   ;;  %v1579_v21 = vld [vmem:[%s2105_s0 + $0xe0] sm:$0xff]   ;;  %v1582_v23 = vld [vmem:[%s2106_s3 + $0x8] sm:$0xff]  }
   0x6   :  { %358 = vmatprep.subr.bf16.mxu0 %v356_v7  ;;  %1545 = vmatprep.subr.bf16.mxu1 %v356_v7  ;;  %v1580_v22 = vld [vmem:[%s2106_s3] sm:$0xff]   ;;  %v1581_v25 = vld [vmem:[%s2105_s0 + $0xe8] sm:$0xff]   ;;  %v1583_v26 = vld [vmem:[%s2106_s3 + $0x10] sm:$0xff]  }
   0x7   :  { %359 = vmatpush1.bf16.msra.mxu0 %v353_v8  ;;  %1546 = vmatpush1.bf16.msra.mxu1 %v353_v8  ;;  %v1559_v24 = vld [vmem:[%s2105_s0 + $0x40] sm:$0xff]   ;;  %v1585_v27 = vld [vmem:[%s2106_s3 + $0x18] sm:$0xff]   ;;  %v1560_v28 = vld [vmem:[%s2105_s0 + $0x48] sm:$0xff]  }
   0x8   :  { %1465 = vmatprep.subr.bf16.mxu1 %v1580_v22  ;;  %v1584_v29 = vld [vmem:[%s2105_s0 + $0xf0] sm:$0xff]   ;;  %v1586_v31 = vld [vmem:[%s2106_s3 + $0x20] sm:$0xff]   ;;  %v1587_v32 = vld [vmem:[%s2105_s0 + $0xf8] sm:$0xff]  }
   0x9   :  { %v1561_v30 = vld [vmem:[%s2105_s0 + $0x50] sm:$0xff]   ;;  %v1562_v33 = vld [vmem:[%s2105_s0 + $0x58] sm:$0xff]   ;;  %v1588_v34 = vld [vmem:[%s2106_s3 + $0x28] sm:$0xff]  }
   0xa   :  { %1364 = vmatmul.mubr.msk.bf16.vlgmr.msra.gmra.mrb[0].mxu0 %vm251_vm2, %v1551_v9  ;;  %1388 = vmatmul.mubr.msk.bf16.vlgmr.msra.gmra.mrb[0].mxu1 %vm251_vm2, %v1571_v13  ;;  %v1589_v35 = vld [vmem:[%s2106_s3 + $0x30] sm:$0xff]   ;;  %v1563_v36 = vld [vmem:[%s2105_s0 + $0x60] sm:$0xff]   ;;  %v1590_v37 = vld [vmem:[%s2106_s3 + $0x38] sm:$0xff]  }
   0xb   :  { %400 = vmatprep.mubr.bf16.mxu0 %v1592_v3  ;;  %640 = vmatprep.mubr.bf16.mxu1 %v1592_v3  ;;  %v1564_v38 = vld [vmem:[%s2105_s0 + $0x68] sm:$0xff]   ;;  %v1565_v39 = vld [vmem:[%s2105_s0 + $0x70] sm:$0xff]   ;;  %v1566_v40 = vld [vmem:[%s2105_s0 + $0x78] sm:$0xff]  }
   0xc   :  { %1466 = vmatpush3.bf16.msra.mxu1 %v1580_v22  ;;  %v1567_v41 = vld [vmem:[%s2105_s0 + $0x80] sm:$0xff]   ;;  %v1568_v42 = vld [vmem:[%s2105_s0 + $0x88] sm:$0xff]   ;;  %v1569_v43 = vld [vmem:[%s2105_s0 + $0x90] sm:$0xff]  }
   0xd   :  { %1467 = vmatprep.subr.bf16.mxu1 %v1582_v23  ;;  %v1570_v44 = vld [vmem:[%s2105_s0 + $0x98] sm:$0xff]   ;;  %v1572_v45 = vld [vmem:[%s2105_s0 + $0xa0] sm:$0xff]   ;;  %v1574_v46 = vld [vmem:[%s2105_s0 + $0xa8] sm:$0xff]  }
   0xe   :  { %v1576_v47 = vld [vmem:[%s2105_s0 + $0xb0] sm:$0xff]   ;;  %v1578_v48 = vld [vmem:[%s2105_s0 + $0xb8] sm:$0xff]   ;;  %v1813_v49 = vld [vmem:[%s2107_s2] ss:$0 sm:$0xff] }
  0x10   :  { %1468 = vmatpush3.bf16.msra.mxu1 %v1582_v23 }
  0x11   :  { %1469 = vmatprep.subr.bf16.mxu1 %v1583_v26 }
  0x12   :  { %1365 = vmatmul.mubr.msk.bf16.gmra.mrb[4].mxu0 %vm251_vm2, %v1552_v10  ;;  %1389 = vmatmul.mubr.msk.bf16.gmra.mrb[4].mxu1 %vm251_vm2, %v1573_v15 }
  0x13   :  { %410 = vmatprep.mubr.bf16.mxu0 %v1592_v3  ;;  %650 = vmatprep.mubr.bf16.mxu1 %v1592_v3 }
  0x14   :  { %1470 = vmatpush3.bf16.msra.mxu1 %v1583_v26 }
  0x15   :  { %1471 = vmatprep.subr.bf16.mxu1 %v1585_v27 }
  0x18   :  { %1472 = vmatpush3.bf16.msra.mxu1 %v1585_v27 }
  0x19   :  { %1473 = vmatprep.subr.bf16.mxu1 %v1586_v31 }
  0x1a   :  { %1366 = vmatmul.mubr.msk.bf16.gmra.mrb[8].mxu0 %vm251_vm2, %v1553_v11  ;;  %1390 = vmatmul.mubr.msk.bf16.gmra.mrb[8].mxu1 %vm251_vm2, %v1575_v17 }
  0x1b   :  { %420 = vmatprep.mubr.bf16.mxu0 %v1592_v3  ;;  %660 = vmatprep.mubr.bf16.mxu1 %v1592_v3 }
  0x1c   :  { %1474 = vmatpush3.bf16.msra.mxu1 %v1586_v31 }
  0x1d   :  { %1475 = vmatprep.subr.bf16.mxu1 %v1588_v34 }
  0x20   :  { %1476 = vmatpush3.bf16.msra.mxu1 %v1588_v34 }
  0x21   :  { %1477 = vmatprep.subr.bf16.mxu1 %v1589_v35 }
  0x22   :  { %1367 = vmatmul.mubr.msk.bf16.gmra.mrb[12].mxu0 %vm251_vm2, %v1554_v12  ;;  %1391 = vmatmul.mubr.msk.bf16.gmra.mrb[12].mxu1 %vm251_vm2, %v1577_v19 }
  0x23   :  { %430 = vmatprep.mubr.bf16.mxu0 %v1592_v3  ;;  %670 = vmatprep.mubr.bf16.mxu1 %v1592_v3 }
  0x24   :  { %1478 = vmatpush3.bf16.msra.mxu1 %v1589_v35 }
  0x25   :  { %1479 = vmatprep.subr.bf16.mxu1 %v1590_v37 }
  0x28   :  { %1480 = vmatpush3.bf16.msra.mxu1 %v1590_v37 }
  0x2a   :  { %1368 = vmatmul.mubr.msk.bf16.gmra.mrb[16].mxu0 %vm251_vm2, %v1555_v14  ;;  %1392 = vmatmul.mubr.msk.bf16.gmra.mrb[16].mxu1 %vm251_vm2, %v1579_v21 }
  0x2b   :  { %440 = vmatprep.mubr.bf16.mxu0 %v1592_v3  ;;  %680 = vmatprep.mubr.bf16.mxu1 %v1592_v3 }
  0x32   :  { %1369 = vmatmul.mubr.msk.bf16.gmra.mrb[20].mxu0 %vm251_vm2, %v1556_v16  ;;  %1393 = vmatmul.mubr.msk.bf16.gmra.mrb[20].mxu1 %vm251_vm2, %v1581_v25 }
  0x33   :  { %450 = vmatprep.mubr.bf16.mxu0 %v1592_v3  ;;  %690 = vmatprep.mubr.bf16.mxu1 %v1592_v3 }
  0x3a   :  { %1370 = vmatmul.mubr.msk.bf16.gmra.mrb[24].mxu0 %vm251_vm2, %v1557_v18  ;;  %1394 = vmatmul.mubr.msk.bf16.gmra.mrb[24].mxu1 %vm251_vm2, %v1584_v29 }
  0x3b   :  { %460 = vmatprep.mubr.bf16.mxu0 %v1592_v3  ;;  %700 = vmatprep.mubr.bf16.mxu1 %v1592_v3 }
  0x42   :  { %1371 = vmatmul.mubr.msk.bf16.gmra.mrb[28].mxu0 %vm251_vm2, %v1558_v20  ;;  %1395 = vmatmul.mubr.msk.bf16.gmra.mrb[28].mxu1 %vm251_vm2, %v1587_v32 }
  0x43   :  { %470 = vmatprep.mubr.bf16.mxu0 %v1592_v3 }
  0x4a   :  { %1372 = vmatmul.mubr.msk.bf16.gmra.mrb[32].mxu0 %vm251_vm2, %v1559_v24 }
  0x4b   :  { %480 = vmatprep.mubr.bf16.mxu0 %v1592_v3 }
  0x52   :  { %1373 = vmatmul.mubr.msk.bf16.gmra.mrb[36].mxu0 %vm251_vm2, %v1560_v28 }
  0x53   :  { %490 = vmatprep.mubr.bf16.mxu0 %v1592_v3 }
  0x5a   :  { %1374 = vmatmul.mubr.msk.bf16.gmra.mrb[40].mxu0 %vm251_vm2, %v1561_v30 }
  0x5b   :  { %500 = vmatprep.mubr.bf16.mxu0 %v1592_v3 }
  0x62   :  { %1375 = vmatmul.mubr.msk.bf16.gmra.mrb[44].mxu0 %vm251_vm2, %v1562_v33 }
  0x63   :  { %510 = vmatprep.mubr.bf16.mxu0 %v1592_v3 }
  0x6a   :  { %1376 = vmatmul.mubr.msk.bf16.gmra.mrb[48].mxu0 %vm251_vm2, %v1563_v36 }
  0x6b   :  { %520 = vmatprep.mubr.bf16.mxu0 %v1592_v3 }
  0x72   :  { %1377 = vmatmul.mubr.msk.bf16.gmra.mrb[52].mxu0 %vm251_vm2, %v1564_v38 }
  0x73   :  { %530 = vmatprep.mubr.bf16.mxu0 %v1592_v3 }
  0x7a   :  { %1378 = vmatmul.mubr.msk.bf16.gmra.mrb[56].mxu0 %vm251_vm2, %v1565_v39 }
  0x7b   :  { %540 = vmatprep.mubr.bf16.mxu0 %v1592_v3 }
  0x82   :  { %1379 = vmatmul.mubr.msk.bf16.gmra.mrb[60].mxu0 %vm251_vm2, %v1566_v40 }
  0x83   :  { %550 = vmatprep.mubr.bf16.mxu0 %v1592_v3 }
  0x8a   :  { %1380 = vmatmul.mubr.msk.bf16.gmra.mrb[64].mxu0 %vm251_vm2, %v1567_v41 }
  0x8b   :  { %560 = vmatprep.mubr.bf16.mxu0 %v1592_v3 }
  0x92   :  { %1381 = vmatmul.mubr.msk.bf16.gmra.mrb[68].mxu0 %vm251_vm2, %v1568_v42 }
  0x93   :  { %570 = vmatprep.mubr.bf16.mxu0 %v1592_v3 }
  0x9a   :  { %1382 = vmatmul.mubr.msk.bf16.gmra.mrb[72].mxu0 %vm251_vm2, %v1569_v43 }
  0x9b   :  { %580 = vmatprep.mubr.bf16.mxu0 %v1592_v3 }
  0xa2   :  { %1383 = vmatmul.mubr.msk.bf16.gmra.mrb[76].mxu0 %vm251_vm2, %v1570_v44 }
  0xa3   :  { %590 = vmatprep.mubr.bf16.mxu0 %v1592_v3 }
  0xaa   :  { %1384 = vmatmul.mubr.msk.bf16.gmra.mrb[80].mxu0 %vm251_vm2, %v1572_v45 }
  0xab   :  { %600 = vmatprep.mubr.bf16.mxu0 %v1592_v3 }
  0xb2   :  { %1385 = vmatmul.mubr.msk.bf16.gmra.mrb[84].mxu0 %vm251_vm2, %v1574_v46 }
  0xb3   :  { %610 = vmatprep.mubr.bf16.mxu0 %v1592_v3 }
  0xba   :  { %1386 = vmatmul.mubr.msk.bf16.gmra.mrb[88].mxu0 %vm251_vm2, %v1576_v47 }
  0xbb   :  { %620 = vmatprep.mubr.bf16.mxu0 %v1592_v3 }
  0xc2   :  { %1387 = vmatmul.mubr.msk.bf16.gmra.mrb[92].mxu0 %vm251_vm2, %v1578_v48 }
  0xdd   :  { %v392_v50 = vpop.f32.mrb[0].mxu0  ;;  %v632_v21 = vpop.f32.mrb[0].mxu1 }
  0xde   :  { %v718_v51 = vadd.f32 %v1813_v49, %v392_v50  ;;  %v1816_v52 = vpop.f32.mrb[1].mxu0  ;;  %v1839_v22 = vpop.f32.mrb[1].mxu1  ;;  %v766_v24 = vadd.f32 %v1813_v49, %v632_v21 }
  0xdf   :  { %v396_v53 = vpop.f32.mrb[2].mxu0  ;;  %2110 = vst [vmem:[#allocation2_spill] sm:$0xff] %v1839_v22  ;;  %v636_v25 = vpop.f32.mrb[2].mxu1 }
  0xe0   :  { %v719_v54 = vadd.f32 %v1813_v49, %v396_v53  ;;  %v1819_v55 = vpop.f32.mrb[3].mxu0  ;;  %v782_v56 = vmax.f32 %v718_v51, 0.0  ;;  %v767_v27 = vadd.f32 %v1813_v49, %v636_v25  ;;  %v1843_v28 = vpop.f32.mrb[3].mxu1  ;;  %v830_v31 = vmax.f32 %v766_v24, 0.0 }
  0xe1   :  { %2111 = vst [vmem:[#allocation3_spill] sm:$0xff] %v1843_v28 }
  0xe2   :  { %v783_v57 = vmax.f32 %v719_v54, 0.0  ;;  %v831_v33 = vmax.f32 %v767_v27, 0.0 }
  0xe4   :  { %v846_v58 = vpack.c.bf16 %v783_v57, %v782_v56  ;;  %v1851_v36 = vpack.c.bf16 %v831_v33, %v830_v31 }
  0xe5   :  { %v402_v59 = vpop.f32.mrb[4].mxu0  ;;  %v642_v39 = vpop.f32.mrb[4].mxu1 }
  0xe6   :  { %v720_v60 = vadd.f32 %v1813_v49, %v402_v59  ;;  %v1822_v61 = vpop.f32.mrb[5].mxu0  ;;  %1481 = vmatprep.mubr.bf16.mxu1 %v846_v58  ;;  %v1853_v40 = vpop.f32.mrb[5].mxu1  ;;  %v768_v42 = vadd.f32 %v1813_v49, %v642_v39 }
  0xe7   :  { %v406_v62 = vpop.f32.mrb[6].mxu0  ;;  %2112 = vst [vmem:[#allocation4_spill] sm:$0xff] %v1853_v40  ;;  %v646_v43 = vpop.f32.mrb[6].mxu1 }
  0xe8   :  { %v721_v63 = vadd.f32 %v1813_v49, %v406_v62  ;;  %v1825_v0 = vpop.f32.mrb[7].mxu0  ;;  %v784_v1 = vmax.f32 %v720_v60, 0.0  ;;  %v769_v45 = vadd.f32 %v1813_v49, %v646_v43  ;;  %v1857_v46 = vpop.f32.mrb[7].mxu1  ;;  %v832_v50 = vmax.f32 %v768_v42, 0.0 }
  0xe9   :  { %2113 = vst [vmem:[#allocation5_spill] sm:$0xff] %v1857_v46 }
  0xea   :  { %v785_v2 = vmax.f32 %v721_v63, 0.0  ;;  %v833_v53 = vmax.f32 %v769_v45, 0.0 }
  0xec   :  { %v847_v3 = vpack.c.bf16 %v785_v2, %v784_v1  ;;  %v1865_v57 = vpack.c.bf16 %v833_v53, %v832_v50 }
  0xed   :  { %v412_v4 = vpop.f32.mrb[8].mxu0  ;;  %v652_v60 = vpop.f32.mrb[8].mxu1 }
  0xee   :  { %v722_v5 = vadd.f32 %v1813_v49, %v412_v4  ;;  %v1828_v6 = vpop.f32.mrb[9].mxu0  ;;  %1482 = vmatmul.mubr.bf16.vlgmr.msra.gmra.mrb[32].mxu1 %v847_v3  ;;  %v1867_v62 = vpop.f32.mrb[9].mxu1  ;;  %v770_v1 = vadd.f32 %v1813_v49, %v652_v60 }
  0xef   :  { %v416_v7 = vpop.f32.mrb[10].mxu0  ;;  %2114 = vst [vmem:[#allocation6_spill] sm:$0xff] %v1867_v62  ;;  %v656_v2 = vpop.f32.mrb[10].mxu1 }
  0xf0   :  { %v723_v8 = vadd.f32 %v1813_v49, %v416_v7  ;;  %v1831_v9 = vpop.f32.mrb[11].mxu0  ;;  %v786_v10 = vmax.f32 %v722_v5, 0.0  ;;  %v771_v4 = vadd.f32 %v1813_v49, %v656_v2  ;;  %v1871_v5 = vpop.f32.mrb[11].mxu1 }
  0xf1   :  { %2115 = vst [vmem:[#allocation7_spill] sm:$0xff] %v1871_v5 }
  0xf2   :  { %v787_v11 = vmax.f32 %v723_v8, 0.0 }
  0xf4   :  { %v848_v12 = vpack.c.bf16 %v787_v11, %v786_v10  ;;  %v834_v10 = vmax.f32 %v770_v1, 0.0 }
  0xf5   :  { %v422_v13 = vpop.f32.mrb[12].mxu0 }
  0xf6   :  { %v724_v14 = vadd.f32 %v1813_v49, %v422_v13  ;;  %v1834_v15 = vpop.f32.mrb[13].mxu0  ;;  %1485 = vmatprep.mubr.bf16.mxu1 %v848_v12  ;;  %v835_v12 = vmax.f32 %v771_v4, 0.0 }
  0xf7   :  { %v426_v16 = vpop.f32.mrb[14].mxu0 }
  0xf8   :  { %v725_v17 = vadd.f32 %v1813_v49, %v426_v16  ;;  %v1837_v18 = vpop.f32.mrb[15].mxu0  ;;  %v788_v19 = vmax.f32 %v724_v14, 0.0  ;;  %v1879_v16 = vpack.c.bf16 %v835_v12, %v834_v10 }
  0xfa   :  { %v789_v20 = vmax.f32 %v725_v17, 0.0 }
  0xfc   :  { %v849_v23 = vpack.c.bf16 %v789_v20, %v788_v19  ;;  %v662_v20 = vpop.f32.mrb[12].mxu1 }
  0xfd   :  { %v432_v26 = vpop.f32.mrb[16].mxu0  ;;  %v1881_v21 = vpop.f32.mrb[13].mxu1  ;;  %v772_v24 = vadd.f32 %v1813_v49, %v662_v20 }
  0xfe   :  { %v726_v29 = vadd.f32 %v1813_v49, %v432_v26  ;;  %v1846_v30 = vpop.f32.mrb[17].mxu0  ;;  %1486 = vmatmul.mubr.bf16.gmra.mrb[36].mxu1 %v849_v23  ;;  %2116 = vst [vmem:[#allocation8_spill] sm:$0xff] %v1881_v21  ;;  %v666_v25 = vpop.f32.mrb[14].mxu1 }
  0xff   :  { %v436_v32 = vpop.f32.mrb[18].mxu0  ;;  %v773_v27 = vadd.f32 %v1813_v49, %v666_v25  ;;  %v836_v33 = vmax.f32 %v772_v24, 0.0 }
 0x100   :  { %v727_v34 = vadd.f32 %v1813_v49, %v436_v32  ;;  %v1849_v35 = vpop.f32.mrb[19].mxu0  ;;  %v790_v37 = vmax.f32 %v726_v29, 0.0  ;;  %v1885_v29 = vpop.f32.mrb[15].mxu1 }
 0x101   :  { %2117 = vst [vmem:[#allocation9_spill] sm:$0xff] %v1885_v29 }
 0x102   :  { %v791_v38 = vmax.f32 %v727_v34, 0.0 }
 0x104   :  { %v850_v41 = vpack.c.bf16 %v791_v38, %v790_v37  ;;  %v837_v37 = vmax.f32 %v773_v27, 0.0 }
 0x105   :  { %v442_v44 = vpop.f32.mrb[20].mxu0 }
 0x106   :  { %v728_v47 = vadd.f32 %v1813_v49, %v442_v44  ;;  %v1860_v48 = vpop.f32.mrb[21].mxu0  ;;  %1489 = vmatprep.mubr.bf16.mxu1 %v850_v41  ;;  %v1893_v41 = vpack.c.bf16 %v837_v37, %v836_v33  ;;  %v672_v44 = vpop.f32.mrb[16].mxu1 }
 0x107   :  { %v446_v51 = vpop.f32.mrb[22].mxu0  ;;  %v1895_v45 = vpop.f32.mrb[17].mxu1  ;;  %v774_v50 = vadd.f32 %v1813_v49, %v672_v44 }
 0x108   :  { %v729_v54 = vadd.f32 %v1813_v49, %v446_v51  ;;  %v1863_v56 = vpop.f32.mrb[23].mxu0  ;;  %v792_v58 = vmax.f32 %v728_v47, 0.0  ;;  %2118 = vst [vmem:[#allocation10_spill] sm:$0xff] %v1895_v45  ;;  %v676_v51 = vpop.f32.mrb[18].mxu1 }
 0x10a   :  { %v793_v59 = vmax.f32 %v729_v54, 0.0  ;;  %v775_v54 = vadd.f32 %v1813_v49, %v676_v51 }
 0x10c   :  { %v851_v63 = vpack.c.bf16 %v793_v59, %v792_v58  ;;  %v1899_v58 = vpop.f32.mrb[19].mxu1  ;;  %v839_v2 = vmax.f32 %v775_v54, 0.0 }
 0x10d   :  { %v452_v3 = vpop.f32.mrb[24].mxu0  ;;  %2119 = vst [vmem:[#allocation11_spill] sm:$0xff] %v1899_v58 }
 0x10e   :  { %v730_v7 = vadd.f32 %v1813_v49, %v452_v3  ;;  %v1874_v8 = vpop.f32.mrb[25].mxu0  ;;  %1490 = vmatmul.mubr.bf16.gmra.mrb[40].mxu1 %v851_v63  ;;  %v838_v63 = vmax.f32 %v774_v50, 0.0  ;;  %v682_v3 = vpop.f32.mrb[20].mxu1 }
 0x10f   :  { %v456_v11 = vpop.f32.mrb[26].mxu0  ;;  %v776_v10 = vadd.f32 %v1813_v49, %v682_v3 }
 0x110   :  { %v731_v13 = vadd.f32 %v1813_v49, %v456_v11  ;;  %v1877_v14 = vpop.f32.mrb[27].mxu0  ;;  %v794_v17 = vmax.f32 %v730_v7, 0.0  ;;  %v1908_v11 = vpop.f32.mrb[21].mxu1  ;;  %v1910_v12 = vpack.c.bf16 %v839_v2, %v838_v63 }
 0x111   :  { %2120 = vst [vmem:[#allocation12_spill] sm:$0xff] %v1908_v11  ;;  %v840_v20 = vmax.f32 %v776_v10, 0.0 }
 0x112   :  { %v795_v19 = vmax.f32 %v731_v13, 0.0  ;;  %v686_v13 = vpop.f32.mrb[22].mxu1 }
 0x113   :  { %v1913_v24 = vpop.f32.mrb[23].mxu1 }
 0x114   :  { %v852_v23 = vpack.c.bf16 %v795_v19, %v794_v17  ;;  %2121 = vst [vmem:[#allocation13_spill] sm:$0xff] %v1913_v24 }
 0x115   :  { %v462_v26 = vpop.f32.mrb[28].mxu0 }
 0x116   :  { %v732_v31 = vadd.f32 %v1813_v49, %v462_v26  ;;  %v1888_v32 = vpop.f32.mrb[29].mxu0  ;;  %1493 = vmatprep.mubr.bf16.mxu1 %v852_v23  ;;  %v777_v23 = vadd.f32 %v1813_v49, %v686_v13 }
 0x117   :  { %v466_v34 = vpop.f32.mrb[30].mxu0 }
 0x118   :  { %v733_v38 = vadd.f32 %v1813_v49, %v466_v34  ;;  %v1891_v39 = vpop.f32.mrb[31].mxu0  ;;  %v796_v42 = vmax.f32 %v732_v31, 0.0  ;;  %v841_v26 = vmax.f32 %v777_v23, 0.0 }
 0x11a   :  { %v797_v43 = vmax.f32 %v733_v38, 0.0  ;;  %v1918_v34 = vpack.c.bf16 %v841_v26, %v840_v20  ;;  %v692_v38 = vpop.f32.mrb[24].mxu1 }
 0x11b   :  { %v778_v44 = vadd.f32 %v1813_v49, %v692_v38 }
 0x11c   :  { %v853_v47 = vpack.c.bf16 %v797_v43, %v796_v42 }
 0x11d   :  { %v472_v53 = vpop.f32.mrb[32].mxu0  ;;  %v842_v54 = vmax.f32 %v778_v44, 0.0 }
 0x11e   :  { %v734_v59 = vadd.f32 %v1813_v49, %v472_v53  ;;  %v1902_v60 = vpop.f32.mrb[33].mxu0  ;;  %1494 = vmatmul.mubr.bf16.gmra.mrb[44].mxu1 %v853_v47  ;;  %v1924_v47 = vpop.f32.mrb[25].mxu1 }
 0x11f   :  { %v476_v1 = vpop.f32.mrb[34].mxu0  ;;  %2122 = vst [vmem:[#allocation14_spill] sm:$0xff] %v1924_v47  ;;  %v696_v50 = vpop.f32.mrb[26].mxu1 }
 0x120   :  { %v735_v4 = vadd.f32 %v1813_v49, %v476_v1  ;;  %v1905_v7 = vpop.f32.mrb[35].mxu0  ;;  %v798_v17 = vmax.f32 %v734_v59, 0.0  ;;  %v779_v59 = vadd.f32 %v1813_v49, %v696_v50  ;;  %v1927_v63 = vpop.f32.mrb[27].mxu1 }
 0x121   :  { %2123 = vst [vmem:[#allocation15_spill] sm:$0xff] %v1927_v63  ;;  %v702_v26 = vpop.f32.mrb[28].mxu1 }
 0x122   :  { %v799_v19 = vmax.f32 %v735_v4, 0.0  ;;  %v843_v2 = vmax.f32 %v779_v59, 0.0 }
 0x124   :  { %v854_v25 = vpack.c.bf16 %v799_v19, %v798_v17  ;;  %v1932_v13 = vpack.c.bf16 %v843_v2, %v842_v54 }
 0x125   :  { %v482_v27 = vpop.f32.mrb[36].mxu0 }
 0x126   :  { %v736_v31 = vadd.f32 %v1813_v49, %v482_v27  ;;  %v1916_v33 = vpop.f32.mrb[37].mxu0  ;;  %1497 = vmatprep.mubr.bf16.mxu1 %v854_v25  ;;  %v780_v27 = vadd.f32 %v1813_v49, %v702_v26 }
 0x127   :  { %v486_v37 = vpop.f32.mrb[38].mxu0 }
 0x128   :  { %v737_v42 = vadd.f32 %v1813_v49, %v486_v37  ;;  %v1921_v43 = vpop.f32.mrb[39].mxu0  ;;  %v800_v51 = vmax.f32 %v736_v31, 0.0  ;;  %v1938_v31 = vpop.f32.mrb[29].mxu1  ;;  %v844_v44 = vmax.f32 %v780_v27, 0.0 }
 0x129   :  { %2124 = vst [vmem:[#allocation16_spill] sm:$0xff] %v1938_v31  ;;  %v706_v38 = vpop.f32.mrb[30].mxu1 }
 0x12a   :  { %v801_v53 = vmax.f32 %v737_v42, 0.0  ;;  %v781_v50 = vadd.f32 %v1813_v49, %v706_v38 }
 0x12c   :  { %v855_v1 = vpack.c.bf16 %v801_v53, %v800_v51  ;;  %v1941_v51 = vpop.f32.mrb[31].mxu1 }
 0x12d   :  { %v492_v3 = vpop.f32.mrb[40].mxu0  ;;  %2125 = vst [vmem:[#allocation17_spill] sm:$0xff] %v1941_v51 }
 0x12e   :  { %v738_v4 = vadd.f32 %v1813_v49, %v492_v3  ;;  %v1930_v10 = vpop.f32.mrb[41].mxu0  ;;  %1498 = vmatmul.mubr.bf16.gmra.mrb[48].mxu1 %v855_v1  ;;  %v845_v1 = vmax.f32 %v781_v50, 0.0 }
 0x12f   :  { %v496_v17 = vpop.f32.mrb[42].mxu0 }
 0x130   :  { %v739_v19 = vadd.f32 %v1813_v49, %v496_v17  ;;  %v1935_v20 = vpop.f32.mrb[43].mxu0  ;;  %v802_v23 = vmax.f32 %v738_v4, 0.0  ;;  %v1949_v4 = vpack.c.bf16 %v845_v1, %v844_v44 }
 0x132   :  { %v803_v25 = vmax.f32 %v739_v19, 0.0 }
 0x134   :  { %v856_v37 = vpack.c.bf16 %v803_v25, %v802_v23 }
 0x135   :  { %v502_v42 = vpop.f32.mrb[44].mxu0 }
 0x136   :  { %v740_v53 = vadd.f32 %v1813_v49, %v502_v42  ;;  %v1944_v54 = vpop.f32.mrb[45].mxu0  ;;  %1501 = vmatprep.mubr.bf16.mxu1 %v856_v37 }
 0x137   :  { %v506_v59 = vpop.f32.mrb[46].mxu0 }
 0x138   :  { %v741_v2 = vadd.f32 %v1813_v49, %v506_v59  ;;  %v1947_v3 = vpop.f32.mrb[47].mxu0  ;;  %v804_v17 = vmax.f32 %v740_v53, 0.0 }
 0x13a   :  { %v805_v19 = vmax.f32 %v741_v2, 0.0 }
 0x13c   :  { %v857_v23 = vpack.c.bf16 %v805_v19, %v804_v17 }
 0x13d   :  { %v512_v25 = vpop.f32.mrb[48].mxu0 }
 0x13e   :  { %v742_v26 = vadd.f32 %v1813_v49, %v512_v25  ;;  %v1952_v27 = vpop.f32.mrb[49].mxu0  ;;  %1502 = vmatmul.mubr.bf16.gmra.mrb[52].mxu1 %v857_v23 }
 0x13f   :  { %v516_v38 = vpop.f32.mrb[50].mxu0 }
 0x140   :  { %v743_v37 = vadd.f32 %v1813_v49, %v516_v38  ;;  %v1955_v42 = vpop.f32.mrb[51].mxu0  ;;  %v806_v50 = vmax.f32 %v742_v26, 0.0 }
 0x142   :  { %v807_v59 = vmax.f32 %v743_v37, 0.0 }
 0x144   :  { %v858_v63 = vpack.c.bf16 %v807_v59, %v806_v50 }
 0x145   :  { %v522_v51 = vpop.f32.mrb[52].mxu0 }
 0x146   :  { %v744_v44 = vadd.f32 %v1813_v49, %v522_v51  ;;  %v1958_v53 = vpop.f32.mrb[53].mxu0  ;;  %1505 = vmatprep.mubr.bf16.mxu1 %v858_v63 }
 0x147   :  { %v526_v1 = vpop.f32.mrb[54].mxu0 }
 0x148   :  { %v745_v2 = vadd.f32 %v1813_v49, %v526_v1  ;;  %v1961_v17 = vpop.f32.mrb[55].mxu0  ;;  %v808_v19 = vmax.f32 %v744_v44, 0.0 }
 0x14a   :  { %v809_v23 = vmax.f32 %v745_v2, 0.0 }
 0x14c   :  { %v859_v25 = vpack.c.bf16 %v809_v23, %v808_v19 }
 0x14d   :  { %v532_v38 = vpop.f32.mrb[56].mxu0 }
 0x14e   :  { %v746_v47 = vadd.f32 %v1813_v49, %v532_v38  ;;  %v1964_v26 = vpop.f32.mrb[57].mxu0  ;;  %1506 = vmatmul.mubr.bf16.gmra.mrb[56].mxu1 %v859_v25 }
 0x14f   :  { %v536_v37 = vpop.f32.mrb[58].mxu0 }
 0x150   :  { %v747_v51 = vadd.f32 %v1813_v49, %v536_v37  ;;  %v1967_v50 = vpop.f32.mrb[59].mxu0  ;;  %v810_v63 = vmax.f32 %v746_v47, 0.0 }
 0x152   :  { %v811_v59 = vmax.f32 %v747_v51, 0.0 }
 0x154   :  { %v860_v31 = vpack.c.bf16 %v811_v59, %v810_v63 }
 0x155   :  { %v542_v1 = vpop.f32.mrb[60].mxu0 }
 0x156   :  { %v748_v58 = vadd.f32 %v1813_v49, %v542_v1  ;;  %v1970_v44 = vpop.f32.mrb[61].mxu0  ;;  %1509 = vmatprep.mubr.bf16.mxu1 %v860_v31 }
 0x157   :  { %v546_v2 = vpop.f32.mrb[62].mxu0 }
 0x158   :  { %v749_v19 = vadd.f32 %v1813_v49, %v546_v2  ;;  %v1973_v23 = vpop.f32.mrb[63].mxu0  ;;  %v812_v25 = vmax.f32 %v748_v58, 0.0 }
 0x15a   :  { %v813_v38 = vmax.f32 %v749_v19, 0.0 }
 0x15c   :  { %v861_v24 = vpack.c.bf16 %v813_v38, %v812_v25 }
 0x15d   :  { %v552_v37 = vpop.f32.mrb[64].mxu0 }
 0x15e   :  { %v750_v45 = vadd.f32 %v1813_v49, %v552_v37  ;;  %v1976_v47 = vpop.f32.mrb[65].mxu0  ;;  %1510 = vmatmul.mubr.bf16.gmra.mrb[60].mxu1 %v861_v24 }
 0x15f   :  { %v556_v51 = vpop.f32.mrb[66].mxu0 }
 0x160   :  { %v751_v63 = vadd.f32 %v1813_v49, %v556_v51  ;;  %v1979_v59 = vpop.f32.mrb[67].mxu0  ;;  %v814_v31 = vmax.f32 %v750_v45, 0.0 }
 0x162   :  { %v815_v1 = vmax.f32 %v751_v63, 0.0 }
 0x164   :  { %v862_v11 = vpack.c.bf16 %v815_v1, %v814_v31 }
 0x165   :  { %v562_v2 = vpop.f32.mrb[68].mxu0 }
 0x166   :  { %v752_v5 = vadd.f32 %v1813_v49, %v562_v2  ;;  %v1982_v58 = vpop.f32.mrb[69].mxu0  ;;  %1513 = vmatprep.mubr.bf16.mxu1 %v862_v11 }
 0x167   :  { %v566_v19 = vpop.f32.mrb[70].mxu0 }
 0x168   :  { %v753_v25 = vadd.f32 %v1813_v49, %v566_v19  ;;  %v1985_v38 = vpop.f32.mrb[71].mxu0  ;;  %v816_v24 = vmax.f32 %v752_v5, 0.0 }
 0x16a   :  { %v817_v37 = vmax.f32 %v753_v25, 0.0 }
 0x16c   :  { %v863_v29 = vpack.c.bf16 %v817_v37, %v816_v24 }
 0x16d   :  { %v572_v51 = vpop.f32.mrb[72].mxu0 }
 0x16e   :  { %v754_v62 = vadd.f32 %v1813_v49, %v572_v51  ;;  %v1988_v45 = vpop.f32.mrb[73].mxu0  ;;  %1514 = vmatmul.mubr.bf16.gmra.mrb[64].mxu1 %v863_v29 }
 0x16f   :  { %v576_v63 = vpop.f32.mrb[74].mxu0 }
 0x170   :  { %v755_v31 = vadd.f32 %v1813_v49, %v576_v63  ;;  %v1991_v1 = vpop.f32.mrb[75].mxu0  ;;  %v818_v11 = vmax.f32 %v754_v62, 0.0 }
 0x171   :  { %2126 = vst [vmem:[#allocation18_spill] sm:$0xff] %v1991_v1 }
 0x172   :  { %v819_v2 = vmax.f32 %v755_v31, 0.0 }
 0x174   :  { %v864_v21 = vpack.c.bf16 %v819_v2, %v818_v11 }
 0x175   :  { %v582_v19 = vpop.f32.mrb[76].mxu0 }
 0x176   :  { %v756_v28 = vadd.f32 %v1813_v49, %v582_v19  ;;  %v1994_v5 = vpop.f32.mrb[77].mxu0  ;;  %1517 = vmatprep.mubr.bf16.mxu1 %v864_v21 }
 0x177   :  { %v586_v25 = vpop.f32.mrb[78].mxu0 }
 0x178   :  { %v757_v24 = vadd.f32 %v1813_v49, %v586_v25  ;;  %v1997_v37 = vpop.f32.mrb[79].mxu0  ;;  %v820_v29 = vmax.f32 %v756_v28, 0.0 }
 0x17a   :  { %v821_v51 = vmax.f32 %v757_v24, 0.0 }
 0x17c   :  { %v865_v46 = vpack.c.bf16 %v821_v51, %v820_v29 }
 0x17d   :  { %v592_v63 = vpop.f32.mrb[80].mxu0 }
 0x17e   :  { %v758_v22 = vadd.f32 %v1813_v49, %v592_v63  ;;  %v2000_v62 = vpop.f32.mrb[81].mxu0  ;;  %1518 = vmatmul.mubr.bf16.gmra.mrb[68].mxu1 %v865_v46 }
 0x17f   :  { %2127 = vst [vmem:[#allocation19_spill] sm:$0xff] %v2000_v62  ;;  %v596_v31 = vpop.f32.mrb[82].mxu0 }
 0x180   :  { %v759_v11 = vadd.f32 %v1813_v49, %v596_v31  ;;  %v2003_v2 = vpop.f32.mrb[83].mxu0  ;;  %v822_v21 = vmax.f32 %v758_v22, 0.0 }
 0x181   :  { %2128 = vst [vmem:[#allocation20_spill] sm:$0xff] %v2003_v2 }
 0x182   :  { %v823_v19 = vmax.f32 %v759_v11, 0.0 }
 0x184   :  { %v866_v40 = vpack.c.bf16 %v823_v19, %v822_v21 }
 0x185   :  { %v602_v25 = vpop.f32.mrb[84].mxu0 }
 0x186   :  { %v760_v1 = vadd.f32 %v1813_v49, %v602_v25  ;;  %v2006_v28 = vpop.f32.mrb[85].mxu0  ;;  %1521 = vmatprep.mubr.bf16.mxu1 %v866_v40 }
 0x187   :  { %2129 = vst [vmem:[#allocation21_spill] sm:$0xff] %v2006_v28  ;;  %v606_v24 = vpop.f32.mrb[86].mxu0 }
 0x188   :  { %v761_v29 = vadd.f32 %v1813_v49, %v606_v24  ;;  %v2009_v51 = vpop.f32.mrb[87].mxu0  ;;  %v824_v46 = vmax.f32 %v760_v1, 0.0 }
 0x189   :  { %2130 = vst [vmem:[#allocation22_spill] sm:$0xff] %v2009_v51 }
 0x18a   :  { %v825_v63 = vmax.f32 %v761_v29, 0.0 }
 0x18c   :  { %v867_v62 = vpack.c.bf16 %v825_v63, %v824_v46 }
 0x18d   :  { %v612_v31 = vpop.f32.mrb[88].mxu0 }
 0x18e   :  { %v762_v2 = vadd.f32 %v1813_v49, %v612_v31  ;;  %v2012_v22 = vpop.f32.mrb[89].mxu0  ;;  %1522 = vmatmul.mubr.bf16.gmra.mrb[72].mxu1 %v867_v62 }
 0x18f   :  { %2131 = vst [vmem:[#allocation23_spill] sm:$0xff] %v2012_v22  ;;  %v616_v11 = vpop.f32.mrb[90].mxu0 }
 0x190   :  { %v763_v21 = vadd.f32 %v1813_v49, %v616_v11  ;;  %v2015_v19 = vpop.f32.mrb[91].mxu0  ;;  %v826_v40 = vmax.f32 %v762_v2, 0.0 }
 0x192   :  { %v827_v25 = vmax.f32 %v763_v21, 0.0 }
 0x194   :  { %v868_v28 = vpack.c.bf16 %v827_v25, %v826_v40 }
 0x195   :  { %v622_v24 = vpop.f32.mrb[92].mxu0 }
 0x196   :  { %v764_v51 = vadd.f32 %v1813_v49, %v622_v24  ;;  %v2018_v1 = vpop.f32.mrb[93].mxu0  ;;  %1525 = vmatprep.mubr.bf16.mxu1 %v868_v28 }
 0x197   :  { %v626_v29 = vpop.f32.mrb[94].mxu0 }
 0x198   :  { %v765_v46 = vadd.f32 %v1813_v49, %v626_v29  ;;  %v2021_v63 = vpop.f32.mrb[95].mxu0  ;;  %v828_v62 = vmax.f32 %v764_v51, 0.0 }
 0x19a   :  { %v829_v31 = vmax.f32 %v765_v46, 0.0 }
 0x19c   :  { %v869_v22 = vpack.c.bf16 %v829_v31, %v828_v62 }
 0x19e   :  { %1526 = vmatmul.mubr.bf16.gmra.mrb[76].mxu1 %v869_v22 }
 0x19f   :  { %1529 = vmatprep.mubr.bf16.mxu1 %v1851_v36 }
 0x1a6   :  { %1530 = vmatmul.mubr.bf16.gmra.mrb[80].mxu1 %v1865_v57 }
 0x1a7   :  { %1533 = vmatprep.mubr.bf16.mxu1 %v1879_v16 }
 0x1ae   :  { %1534 = vmatmul.mubr.bf16.gmra.mrb[84].mxu1 %v1893_v41 }
 0x1af   :  { %1537 = vmatprep.mubr.bf16.mxu1 %v1910_v12 }
 0x1b6   :  { %1538 = vmatmul.mubr.bf16.gmra.mrb[88].mxu1 %v1918_v34 }
 0x1b7   :  { %1541 = vmatprep.mubr.bf16.mxu1 %v1932_v13 }
 0x1be   :  { %1542 = vmatmul.mubr.bf16.gmra.mrb[92].mxu1 %v1949_v4 }
 0x1c1   :  { %v1483_v49 = vpop.f32.mrb[32].mxu1 }
 0x1c2   :  { %v985_v2 = vadd.f32 %v1483_v49, %v1822_v61  ;;  %v976_v28 = vpop.f32.mrb[33].mxu1 }
 0x1c3   :  { %v977_v36 = vadd.f32 %v976_v28, %v1816_v52  ;;  %v1484_v51 = vpop.f32.mrb[34].mxu1 }
 0x1c4   :  { %v988_v57 = vadd.f32 %v1484_v51, %v1825_v0  ;;  %v979_v16 = vpop.f32.mrb[35].mxu1 }
 0x1c5   :  { %v980_v41 = vadd.f32 %v979_v16, %v1819_v55 }
 0x1d1   :  { %v1487_v22 = vpop.f32.mrb[36].mxu1 }
 0x1d2   :  { %v1001_v12 = vadd.f32 %v1487_v22, %v1834_v15  ;;  %v992_v34 = vpop.f32.mrb[37].mxu1 }
 0x1d3   :  { %v993_v13 = vadd.f32 %v992_v34, %v1828_v6  ;;  %v1488_v11 = vpop.f32.mrb[38].mxu1 }
 0x1d4   :  { %v1261_v4 = vmax.f32 %v985_v2, %v1001_v12  ;;  %v1004_v21 = vadd.f32 %v1488_v11, %v1837_v18  ;;  %v995_v61 = vpop.f32.mrb[39].mxu1 }
 0x1d5   :  { %v1231_v40 = vmax.f32 %v977_v36, %v993_v13  ;;  %v996_v52 = vadd.f32 %v995_v61, %v1831_v9 }
 0x1d6   :  { %v1276_v25 = vmax.f32 %v988_v57, %v1004_v21 }
 0x1d7   :  { %v1246_v24 = vmax.f32 %v980_v41, %v996_v52 }
 0x1e1   :  { %v1491_v0 = vpop.f32.mrb[40].mxu1 }
 0x1e2   :  { %v1017_v29 = vadd.f32 %v1491_v0, %v1860_v48  ;;  %v1008_v55 = vpop.f32.mrb[41].mxu1 }
 0x1e3   :  { %v1009_v46 = vadd.f32 %v1008_v55, %v1846_v30  ;;  %v1492_v15 = vpop.f32.mrb[42].mxu1 }
 0x1e4   :  { %v1262_v62 = vmax.f32 %v1261_v4, %v1017_v29  ;;  %v1020_v6 = vadd.f32 %v1492_v15, %v1863_v56  ;;  %v1011_v31 = vpop.f32.mrb[43].mxu1 }
 0x1e5   :  { %v1232_v49 = vmax.f32 %v1231_v40, %v1009_v46  ;;  %v1012_v18 = vadd.f32 %v1011_v31, %v1849_v35 }
 0x1e6   :  { %v1277_v2 = vmax.f32 %v1276_v25, %v1020_v6 }
 0x1e7   :  { %v1247_v28 = vmax.f32 %v1246_v24, %v1012_v18 }
 0x1f1   :  { %v1495_v36 = vpop.f32.mrb[44].mxu1 }
 0x1f2   :  { %v1033_v9 = vadd.f32 %v1495_v36, %v1888_v32  ;;  %v1024_v51 = vpop.f32.mrb[45].mxu1 }
 0x1f3   :  { %v1025_v57 = vadd.f32 %v1024_v51, %v1874_v8  ;;  %v1496_v48 = vpop.f32.mrb[46].mxu1 }
 0x1f4   :  { %v1263_v16 = vmax.f32 %v1262_v62, %v1033_v9  ;;  %v1036_v30 = vadd.f32 %v1496_v48, %v1891_v39  ;;  %v1027_v41 = vpop.f32.mrb[47].mxu1 }
 0x1f5   :  { %v1233_v22 = vmax.f32 %v1232_v49, %v1025_v57  ;;  %v1028_v56 = vadd.f32 %v1027_v41, %v1877_v14 }
 0x1f6   :  { %v1278_v12 = vmax.f32 %v1277_v2, %v1036_v30 }
 0x1f7   :  { %v1248_v34 = vmax.f32 %v1247_v28, %v1028_v56 }
 0x201   :  { %v1499_v13 = vpop.f32.mrb[48].mxu1 }
 0x202   :  { %v1049_v35 = vadd.f32 %v1499_v13, %v1916_v33  ;;  %v1040_v11 = vpop.f32.mrb[49].mxu1 }
 0x203   :  { %v1041_v4 = vadd.f32 %v1040_v11, %v1902_v60  ;;  %v1500_v32 = vpop.f32.mrb[50].mxu1 }
 0x204   :  { %v1264_v21 = vmax.f32 %v1263_v16, %v1049_v35  ;;  %v1052_v8 = vadd.f32 %v1500_v32, %v1921_v43  ;;  %v1043_v61 = vpop.f32.mrb[51].mxu1 }
 0x205   :  { %v1234_v40 = vmax.f32 %v1233_v22, %v1041_v4  ;;  %v1044_v39 = vadd.f32 %v1043_v61, %v1905_v7 }
 0x206   :  { %v1279_v52 = vmax.f32 %v1278_v12, %v1052_v8 }
 0x207   :  { %v1249_v25 = vmax.f32 %v1248_v34, %v1044_v39 }
 0x211   :  { %v1503_v24 = vpop.f32.mrb[52].mxu1 }
 0x212   :  { %v1065_v14 = vadd.f32 %v1503_v24, %v1944_v54  ;;  %v1056_v0 = vpop.f32.mrb[53].mxu1 }
 0x213   :  { %v1057_v29 = vadd.f32 %v1056_v0, %v1930_v10  ;;  %v1504_v33 = vpop.f32.mrb[54].mxu1 }
 0x214   :  { %v1265_v55 = vmax.f32 %v1264_v21, %v1065_v14  ;;  %v1068_v60 = vadd.f32 %v1504_v33, %v1947_v3  ;;  %v1059_v46 = vpop.f32.mrb[55].mxu1  ;;  %v2132_v14 = vld [vmem:[#allocation18_spill] sm:$0xff] }
 0x215   :  { %v1235_v15 = vmax.f32 %v1234_v40, %v1057_v29  ;;  %v1060_v43 = vadd.f32 %v1059_v46, %v1935_v20  ;;  %v2134_v46 = vld [vmem:[#allocation19_spill] sm:$0xff] }
 0x216   :  { %v1280_v62 = vmax.f32 %v1279_v52, %v1068_v60 }
 0x217   :  { %v1250_v6 = vmax.f32 %v1249_v25, %v1060_v43 }
 0x221   :  { %v1507_v31 = vpop.f32.mrb[56].mxu1 }
 0x222   :  { %v1081_v7 = vadd.f32 %v1507_v31, %v1958_v53  ;;  %v1072_v49 = vpop.f32.mrb[57].mxu1 }
 0x223   :  { %v1073_v18 = vadd.f32 %v1072_v49, %v1952_v27  ;;  %v1508_v54 = vpop.f32.mrb[58].mxu1 }
 0x224   :  { %v1266_v2 = vmax.f32 %v1265_v55, %v1081_v7  ;;  %v1084_v10 = vadd.f32 %v1508_v54, %v1961_v17  ;;  %v1075_v28 = vpop.f32.mrb[59].mxu1  ;;  %v2136_v7 = vld [vmem:[#allocation20_spill] sm:$0xff] }
 0x225   :  { %v1236_v36 = vmax.f32 %v1235_v15, %v1073_v18  ;;  %v1076_v3 = vadd.f32 %v1075_v28, %v1955_v42  ;;  %v2137_v28 = vld [vmem:[#allocation23_spill] sm:$0xff] }
 0x226   :  { %v1281_v9 = vmax.f32 %v1280_v62, %v1084_v10  ;;  %v2135_v62 = vld [vmem:[#allocation22_spill] sm:$0xff] }
 0x227   :  { %v1251_v51 = vmax.f32 %v1250_v6, %v1076_v3 }
 0x231   :  { %v1511_v57 = vpop.f32.mrb[60].mxu1 }
 0x232   :  { %v1097_v20 = vadd.f32 %v1511_v57, %v1970_v44  ;;  %v1088_v48 = vpop.f32.mrb[61].mxu1 }
 0x233   :  { %v1089_v16 = vadd.f32 %v1088_v48, %v1964_v26  ;;  %v1512_v53 = vpop.f32.mrb[62].mxu1 }
 0x234   :  { %v1267_v30 = vmax.f32 %v1266_v2, %v1097_v20  ;;  %v1100_v27 = vadd.f32 %v1512_v53, %v1973_v23  ;;  %v1091_v41 = vpop.f32.mrb[63].mxu1 }
 0x235   :  { %v1237_v22 = vmax.f32 %v1236_v36, %v1089_v16  ;;  %v1092_v17 = vadd.f32 %v1091_v41, %v1967_v50 }
 0x236   :  { %v1282_v56 = vmax.f32 %v1281_v9, %v1100_v27  ;;  %v2138_v27 = vld [vmem:[#allocation4_spill] sm:$0xff] }
 0x237   :  { %v1252_v12 = vmax.f32 %v1251_v51, %v1092_v17  ;;  %v2139_v17 = vld [vmem:[#allocation2_spill] sm:$0xff] }
 0x241   :  { %v1515_v34 = vpop.f32.mrb[64].mxu1 }
 0x242   :  { %v1113_v42 = vadd.f32 %v1515_v34, %v1982_v58  ;;  %v1104_v13 = vpop.f32.mrb[65].mxu1  ;;  %v2140_v34 = vld [vmem:[#allocation5_spill] sm:$0xff] }
 0x243   :  { %v1105_v35 = vadd.f32 %v1104_v13, %v1976_v47  ;;  %v1516_v44 = vpop.f32.mrb[66].mxu1 }
 0x244   :  { %v1268_v11 = vmax.f32 %v1267_v30, %v1113_v42  ;;  %v1116_v26 = vadd.f32 %v1516_v44, %v1985_v38  ;;  %v1107_v4 = vpop.f32.mrb[67].mxu1  ;;  %v2141_v44 = vld [vmem:[#allocation3_spill] sm:$0xff] }
 0x245   :  { %v1238_v32 = vmax.f32 %v1237_v22, %v1105_v35  ;;  %v1108_v23 = vadd.f32 %v1107_v4, %v1979_v59  ;;  %v2133_v59 = vld [vmem:[#allocation21_spill] sm:$0xff] }
 0x246   :  { %v1283_v21 = vmax.f32 %v1282_v56, %v1116_v26 }
 0x247   :  { %v1253_v8 = vmax.f32 %v1252_v12, %v1108_v23 }
 0x251   :  { %v1519_v61 = vpop.f32.mrb[68].mxu1 }
 0x252   :  { %v1129_v50 = vadd.f32 %v1519_v61, %v1994_v5  ;;  %v1120_v40 = vpop.f32.mrb[69].mxu1 }
 0x253   :  { %v1121_v39 = vadd.f32 %v1120_v40, %v1988_v45  ;;  %v1520_v58 = vpop.f32.mrb[70].mxu1  ;;  %v2144_v40 = vld [vmem:[#allocation9_spill] sm:$0xff] }
 0x254   :  { %v1269_v52 = vmax.f32 %v1268_v11, %v1129_v50  ;;  %v1132_v47 = vadd.f32 %v1520_v58, %v1997_v37  ;;  %v1123_v25 = vpop.f32.mrb[71].mxu1 }
 0x255   :  { %v1239_v24 = vmax.f32 %v1238_v32, %v1121_v39  ;;  %v1124_v38 = vadd.f32 %v1123_v25, %v2132_v14 }
 0x256   :  { %v1284_v0 = vmax.f32 %v1283_v21, %v1132_v47  ;;  %v2143_v21 = vld [vmem:[#allocation6_spill] sm:$0xff]  ;;  %v2145_v47 = vld [vmem:[#allocation7_spill] sm:$0xff] }
 0x257   :  { %v1254_v29 = vmax.f32 %v1253_v8, %v1124_v38 }
 0x261   :  { %v1523_v33 = vpop.f32.mrb[72].mxu1 }
 0x262   :  { %v1145_v55 = vadd.f32 %v1523_v33, %v2133_v59  ;;  %v1136_v60 = vpop.f32.mrb[73].mxu1  ;;  %v2147_v59 = vld [vmem:[#allocation10_spill] sm:$0xff] }
 0x263   :  { %v1137_v15 = vadd.f32 %v1136_v60, %v2134_v46  ;;  %v1524_v5 = vpop.f32.mrb[74].mxu1 }
 0x264   :  { %v1270_v43 = vmax.f32 %v1269_v52, %v1145_v55  ;;  %v1148_v45 = vadd.f32 %v1524_v5, %v2135_v62  ;;  %v1139_v6 = vpop.f32.mrb[75].mxu1 }
 0x265   :  { %v1240_v31 = vmax.f32 %v1239_v24, %v1137_v15  ;;  %v1140_v37 = vadd.f32 %v1139_v6, %v2136_v7  ;;  %v2148_v15 = vld [vmem:[#allocation13_spill] sm:$0xff] }
 0x266   :  { %v1285_v49 = vmax.f32 %v1284_v0, %v1148_v45  ;;  %v2146_v0 = vld [vmem:[#allocation12_spill] sm:$0xff]  ;;  %v2149_v45 = vld [vmem:[#allocation11_spill] sm:$0xff] }
 0x267   :  { %v1255_v18 = vmax.f32 %v1254_v29, %v1140_v37 }
 0x271   :  { %v1527_v54 = vpop.f32.mrb[76].mxu1 }
 0x272   :  { %v1161_v2 = vadd.f32 %v1527_v54, %v2018_v1  ;;  %v1152_v10 = vpop.f32.mrb[77].mxu1 }
 0x273   :  { %v1153_v36 = vadd.f32 %v1152_v10, %v2137_v28  ;;  %v1528_v3 = vpop.f32.mrb[78].mxu1  ;;  %v2151_v10 = vld [vmem:[#allocation14_spill] sm:$0xff] }
 0x274   :  { %v1271_v9 = vmax.f32 %v1270_v43, %v1161_v2  ;;  %v1164_v51 = vadd.f32 %v1528_v3, %v2021_v63  ;;  %v1155_v57 = vpop.f32.mrb[79].mxu1  ;;  %v1405_v2 = vld [vmem:[%s2108_s4] ss:$0 sm:$0xff] }
 0x275   :  { %v1241_v20 = vmax.f32 %v1240_v31, %v1153_v36  ;;  %v1156_v48 = vadd.f32 %v1155_v57, %v2015_v19  ;;  %v2142_v19 = vld [vmem:[#allocation8_spill] sm:$0xff] }
 0x276   :  { %v1286_v16 = vmax.f32 %v1285_v49, %v1164_v51  ;;  %v2150_v49 = vld [vmem:[#allocation16_spill] sm:$0xff] }
 0x277   :  { %v1256_v53 = vmax.f32 %v1255_v18, %v1156_v48  ;;  %v2153_v48 = vld [vmem:[#allocation15_spill] sm:$0xff] }
 0x279   :  { %v1531_v30 = vpop.f32.mrb[80].mxu1 }
 0x27a   :  { %v1177_v41 = vadd.f32 %v1531_v30, %v2138_v27  ;;  %v1168_v22 = vpop.f32.mrb[81].mxu1 }
 0x27b   :  { %v1169_v56 = vadd.f32 %v1168_v22, %v2139_v17  ;;  %v1532_v1 = vpop.f32.mrb[82].mxu1 }
 0x27c   :  { %v1272_v12 = vmax.f32 %v1271_v9, %v1177_v41  ;;  %v1180_v42 = vadd.f32 %v1532_v1, %v2140_v34  ;;  %v1171_v13 = vpop.f32.mrb[83].mxu1  ;;  %v2152_v9 = vld [vmem:[#allocation17_spill] sm:$0xff] }
 0x27d   :  { %v1242_v35 = vmax.f32 %v1241_v20, %v1169_v56  ;;  %v1172_v63 = vadd.f32 %v1171_v13, %v2141_v44 }
 0x27e   :  { %v1287_v11 = vmax.f32 %v1286_v16, %v1180_v42 }
 0x27f   :  { %v1257_v26 = vmax.f32 %v1256_v53, %v1172_v63 }
 0x281   :  { %v1535_v4 = vpop.f32.mrb[84].mxu1 }
 0x282   :  { %v1193_v32 = vadd.f32 %v1535_v4, %v2142_v19  ;;  %v1184_v23 = vpop.f32.mrb[85].mxu1 }
 0x283   :  { %v1185_v8 = vadd.f32 %v1184_v23, %v2143_v21  ;;  %v1536_v61 = vpop.f32.mrb[86].mxu1 }
 0x284   :  { %v1273_v50 = vmax.f32 %v1272_v12, %v1193_v32  ;;  %v1196_v39 = vadd.f32 %v1536_v61, %v2144_v40  ;;  %v1187_v58 = vpop.f32.mrb[87].mxu1 }
 0x285   :  { %v1243_v52 = vmax.f32 %v1242_v35, %v1185_v8  ;;  %v1188_v25 = vadd.f32 %v1187_v58, %v2145_v47 }
 0x286   :  { %v1288_v24 = vmax.f32 %v1287_v11, %v1196_v39 }
 0x287   :  { %v1258_v14 = vmax.f32 %v1257_v26, %v1188_v25 }
 0x289   :  { %v1539_v38 = vpop.f32.mrb[88].mxu1 }
 0x28a   :  { %v1209_v29 = vadd.f32 %v1539_v38, %v2146_v0  ;;  %v1200_v33 = vpop.f32.mrb[89].mxu1 }
 0x28b   :  { %v1201_v55 = vadd.f32 %v1200_v33, %v2147_v59  ;;  %v1540_v60 = vpop.f32.mrb[90].mxu1 }
 0x28c   :  { %v1274_v46 = vmax.f32 %v1273_v50, %v1209_v29  ;;  %v1212_v5 = vadd.f32 %v1540_v60, %v2148_v15  ;;  %v1203_v43 = vpop.f32.mrb[91].mxu1 }
 0x28d   :  { %v1244_v62 = vmax.f32 %v1243_v52, %v1201_v55  ;;  %v1204_v6 = vadd.f32 %v1203_v43, %v2149_v45 }
 0x28e   :  { %v1289_v31 = vmax.f32 %v1288_v24, %v1212_v5 }
 0x28f   :  { %v1259_v7 = vmax.f32 %v1258_v14, %v1204_v6 }
 0x291   :  { %v1543_v37 = vpop.f32.mrb[92].mxu1 }
 0x292   :  { %v1225_v18 = vadd.f32 %v1543_v37, %v2150_v49  ;;  %v1216_v54 = vpop.f32.mrb[93].mxu1 }
 0x293   :  { %v1217_v28 = vadd.f32 %v1216_v54, %v2151_v10  ;;  %v1544_v36 = vpop.f32.mrb[94].mxu1 }
 0x294   :  { %v1275_v3 = vmax.f32 %v1274_v46, %v1225_v18  ;;  %v1228_v51 = vadd.f32 %v1544_v36, %v2152_v9  ;;  %v1219_v57 = vpop.f32.mrb[95].mxu1 }
 0x295   :  { %v1245_v20 = vmax.f32 %v1244_v62, %v1217_v28  ;;  %v1220_v16 = vadd.f32 %v1219_v57, %v2153_v48 }
 0x296   :  { %v1300_v53 = vadd.f32 %v1405_v2, %v1275_v3  ;;  %v1290_v30 = vmax.f32 %v1289_v31, %v1228_v51 }
 0x297   :  { %v1298_v27 = vadd.f32 %v1405_v2, %v1245_v20  ;;  %v1260_v41 = vmax.f32 %v1259_v7, %v1220_v16 }
 0x298   :  { %v1301_v22 = vadd.f32 %v1405_v2, %v1290_v30  ;;  %v1304_v56 = vmax.f32 %v1300_v53, 0.0 }
 0x299   :  { %v1299_v17 = vadd.f32 %v1405_v2, %v1260_v41  ;;  %v1302_v12 = vmax.f32 %v1298_v27, 0.0 }
 0x29a   :  { %v1305_v1 = vmax.f32 %v1301_v22, 0.0 }
 0x29b   :  { %v1303_v34 = vmax.f32 %v1299_v17, 0.0 }
 0x29c   :  { %v1422_v42 = vpack.c.bf16 %v1305_v1, %v1304_v56 }
 0x29d   :  { %v1417_v13 = vpack.c.bf16 %v1303_v34, %v1302_v12 }
 0x29e   :  { %1424 = vst [vmem:[%s2109_s5 + $0x8] sm:$0xff] %v1422_v42  }
 0x29f   :  { %1418 = vst [vmem:[%s2109_s5] sm:$0xff] %v1417_v13  }

// kernel: custom-call.34
= control target key start
LH: loop header
LB: loop body
LE: loop exit
PB: predicated region body
PF: predicated region fallthrough
CT: control target
= control target key end

     0   :  { %s6_s0 = inlined_call_operand.vmem [shape: f32[2,8], index: 0, kind: output, shape index: {}]  }

// kernel: condition_encoder.6
= control target key start
LH: loop header
LB: loop body
LE: loop exit
PB: predicated region body
PF: predicated region fallthrough
CT: control target
= control target key end

     0   :  { %v989_v1 = vmov 0   ;;  %vm236_vm0 = vcmask 1040384   ;;  %vm237_vm1 = vcmask 1041408   ;;  %v990_v7 = vmov 65535   ;;  %s1303_s1 = inlined_call_operand.vmem [shape: bf16[67,256], index: 1, kind: input, shape index: {}]   ;;  %s1304_s0 = inlined_call_operand.vmem [shape: bf16[16,16,67], index: 0, kind: input, shape index: {}]   ;;  %s1305_s3 = inlined_call_operand.vmem [shape: bf16[128,128], index: 3, kind: input, shape index: {}]   ;;  %s1306_s2 = inlined_call_operand.vmem [shape: f32[1,128], index: 2, kind: input, shape index: {}]   ;;  %s1307_s4 = inlined_call_operand.vmem [shape: f32[1,128], index: 4, kind: input, shape index: {}]   ;;  %s1308_s5 = inlined_call_operand.vmem [shape: bf16[16,128], index: 5, kind: output, shape index: {}]  }
   0x1   :  { %v951_v0 = vld [vmem:[%s1303_s1 + $0x4] ss:$8 sps:$4 sm:$0xff]   ;;  %278 = vmatprep.mubr.bf16.mxu0 %v989_v1  ;;  %398 = vmatprep.mubr.bf16.mxu1 %v989_v1  ;;  %v953_v2 = vld [vmem:[%s1303_s1] ss:$8 sps:$4 sm:$0xff]   ;;  %v954_v3 = vld [vmem:[%s1303_s1 + $0x14] ss:$8 sps:$4 sm:$0xff]  }
   0x2   :  { %246 = vmatprep.subr.bf16.mxu0 %v951_v0  ;;  %939 = vmatprep.subr.bf16.mxu1 %v951_v0  ;;  %v956_v4 = vld [vmem:[%s1303_s1 + $0x10] ss:$8 sps:$4 sm:$0xff]   ;;  %v957_v5 = vld [vmem:[%s1303_s1 + $0x24] ss:$8 sps:$4 sm:$0xff]   ;;  %v238_v8 = vsel %vm236_vm0, 4294967295, %v990_v7  ;;  %vm187_vm2 = vcmask 547840  }
   0x3   :  { %247 = vmatpush1.bf16.msra.mxu0 %v953_v2  ;;  %944 = vmatpush1.bf16.msra.mxu1 %v953_v2  ;;  %v61_v6 = vld [vmem:[%s1303_s1 + $0x40] sm:$0x33]  ;;  %v960_v10 = vld [vmem:[%s1303_s1 + $0x34] ss:$8 sps:$4 sm:$0xff]   ;;  %v239_v12 = vsel %vm237_vm1, %v238_v8, 0  ;;  %v982_v20 = vld [vmem:[%s1305_s3 + $0x8] sm:$0xff]  }
   0x4   :  { %248 = vmatprep.subr.bf16.mxu0 %v954_v3  ;;  %940 = vmatprep.subr.bf16.mxu1 %v954_v3  ;;  %v959_v9 = vld [vmem:[%s1303_s1 + $0x20] ss:$8 sps:$4 sm:$0xff]   ;;  %v831_v11 = vcombine.high %v61_v6, %v61_v6  ;;  %v962_v13 = vld [vmem:[%s1303_s1 + $0x30] ss:$8 sps:$4 sm:$0xff]   ;;  %v830_v14 = vcombine.low %v61_v6, %v61_v6 }
   0x5   :  { %v965_v17 = vld [vmem:[%s1304_s0] sm:$0xff]   ;;  %v966_v21 = vld [vmem:[%s1304_s0 + $0x8] sm:$0xff]   ;;  %v983_v23 = vld [vmem:[%s1305_s3 + $0x10] sm:$0xff]  }
   0x6   :  { %v244_v15 = vand.u32 %v831_v11, %v239_v12  ;;  %v241_v16 = vand.u32 %v830_v14, %v239_v12  ;;  %v975_v18 = vld [vmem:[%s1304_s0 + $0x60] sm:$0xff]   ;;  %v977_v22 = vld [vmem:[%s1304_s0 + $0x68] sm:$0xff]   ;;  %v984_v24 = vld [vmem:[%s1305_s3 + $0x18] sm:$0xff]  }
   0x7   :  { %249 = vmatpush1.bf16.msra.mxu0 %v956_v4  ;;  %945 = vmatpush1.bf16.msra.mxu1 %v956_v4  ;;  %v981_v19 = vld [vmem:[%s1305_s3] sm:$0xff]   ;;  %v967_v25 = vld [vmem:[%s1304_s0 + $0x10] sm:$0xff]   ;;  %v968_v27 = vld [vmem:[%s1304_s0 + $0x18] sm:$0xff]  }
   0x8   :  { %250 = vmatprep.subr.bf16.mxu0 %v957_v5  ;;  %941 = vmatprep.subr.bf16.mxu1 %v957_v5  ;;  %v979_v26 = vld [vmem:[%s1304_s0 + $0x70] sm:$0xff]   ;;  %v980_v28 = vld [vmem:[%s1304_s0 + $0x78] sm:$0xff]   ;;  %v969_v29 = vld [vmem:[%s1304_s0 + $0x20] sm:$0xff]  }
   0x9   :  { %v970_v30 = vld [vmem:[%s1304_s0 + $0x28] sm:$0xff]   ;;  %v971_v31 = vld [vmem:[%s1304_s0 + $0x30] sm:$0xff]   ;;  %v972_v32 = vld [vmem:[%s1304_s0 + $0x38] sm:$0xff]  }
   0xa   :  { %v973_v33 = vld [vmem:[%s1304_s0 + $0x40] sm:$0xff]   ;;  %v974_v34 = vld [vmem:[%s1304_s0 + $0x48] sm:$0xff]   ;;  %v976_v35 = vld [vmem:[%s1304_s0 + $0x50] sm:$0xff]  }
   0xb   :  { %251 = vmatpush1.bf16.msra.mxu0 %v959_v9  ;;  %946 = vmatpush1.bf16.msra.mxu1 %v959_v9  ;;  %v985_v36 = vld [vmem:[%s1305_s3 + $0x20] sm:$0xff]   ;;  %v978_v37 = vld [vmem:[%s1304_s0 + $0x58] sm:$0xff]   ;;  %v986_v38 = vld [vmem:[%s1305_s3 + $0x28] sm:$0xff]  }
   0xc   :  { %252 = vmatprep.subr.bf16.mxu0 %v960_v10  ;;  %942 = vmatprep.subr.bf16.mxu1 %v960_v10  ;;  %v987_v39 = vld [vmem:[%s1305_s3 + $0x30] sm:$0xff]   ;;  %v988_v40 = vld [vmem:[%s1305_s3 + $0x38] sm:$0xff]   ;;  %v1155_v41 = vld [vmem:[%s1306_s2] ss:$0 sm:$0xff] }
   0xf   :  { %253 = vmatpush1.bf16.msra.mxu0 %v962_v13  ;;  %947 = vmatpush1.bf16.msra.mxu1 %v962_v13 }
  0x10   :  { %254 = vmatprep.subr.bf16.mxu0 %v244_v15  ;;  %943 = vmatprep.subr.bf16.mxu1 %v244_v15 }
  0x13   :  { %255 = vmatpush1.bf16.msra.mxu0 %v241_v16  ;;  %948 = vmatpush1.bf16.msra.mxu1 %v241_v16 }
  0x14   :  { %891 = vmatprep.subr.bf16.mxu1 %v981_v19 }
  0x16   :  { %832 = vmatmul.mubr.msk.bf16.vlgmr.msra.gmra.mrb[0].mxu0 %vm187_vm2, %v965_v17  ;;  %844 = vmatmul.mubr.msk.bf16.vlgmr.msra.gmra.mrb[0].mxu1 %vm187_vm2, %v975_v18 }
  0x17   :  { %288 = vmatprep.mubr.bf16.mxu0 %v989_v1  ;;  %408 = vmatprep.mubr.bf16.mxu1 %v989_v1 }
  0x18   :  { %892 = vmatpush3.bf16.msra.mxu1 %v981_v19 }
  0x19   :  { %893 = vmatprep.subr.bf16.mxu1 %v982_v20 }
  0x1c   :  { %894 = vmatpush3.bf16.msra.mxu1 %v982_v20 }
  0x1d   :  { %895 = vmatprep.subr.bf16.mxu1 %v983_v23 }
  0x1e   :  { %833 = vmatmul.mubr.msk.bf16.gmra.mrb[4].mxu0 %vm187_vm2, %v966_v21  ;;  %845 = vmatmul.mubr.msk.bf16.gmra.mrb[4].mxu1 %vm187_vm2, %v977_v22 }
  0x1f   :  { %298 = vmatprep.mubr.bf16.mxu0 %v989_v1  ;;  %418 = vmatprep.mubr.bf16.mxu1 %v989_v1 }
  0x20   :  { %896 = vmatpush3.bf16.msra.mxu1 %v983_v23 }
  0x21   :  { %897 = vmatprep.subr.bf16.mxu1 %v984_v24 }
  0x24   :  { %898 = vmatpush3.bf16.msra.mxu1 %v984_v24 }
  0x25   :  { %899 = vmatprep.subr.bf16.mxu1 %v985_v36 }
  0x26   :  { %834 = vmatmul.mubr.msk.bf16.gmra.mrb[8].mxu0 %vm187_vm2, %v967_v25  ;;  %846 = vmatmul.mubr.msk.bf16.gmra.mrb[8].mxu1 %vm187_vm2, %v979_v26 }
  0x27   :  { %308 = vmatprep.mubr.bf16.mxu0 %v989_v1  ;;  %428 = vmatprep.mubr.bf16.mxu1 %v989_v1 }
  0x28   :  { %900 = vmatpush3.bf16.msra.mxu1 %v985_v36 }
  0x29   :  { %901 = vmatprep.subr.bf16.mxu1 %v986_v38 }
  0x2c   :  { %902 = vmatpush3.bf16.msra.mxu1 %v986_v38 }
  0x2d   :  { %903 = vmatprep.subr.bf16.mxu1 %v987_v39 }
  0x2e   :  { %835 = vmatmul.mubr.msk.bf16.gmra.mrb[12].mxu0 %vm187_vm2, %v968_v27  ;;  %847 = vmatmul.mubr.msk.bf16.gmra.mrb[12].mxu1 %vm187_vm2, %v980_v28 }
  0x2f   :  { %318 = vmatprep.mubr.bf16.mxu0 %v989_v1 }
  0x30   :  { %904 = vmatpush3.bf16.msra.mxu1 %v987_v39 }
  0x31   :  { %905 = vmatprep.subr.bf16.mxu1 %v988_v40 }
  0x34   :  { %906 = vmatpush3.bf16.msra.mxu1 %v988_v40 }
  0x36   :  { %836 = vmatmul.mubr.msk.bf16.gmra.mrb[16].mxu0 %vm187_vm2, %v969_v29 }
  0x37   :  { %328 = vmatprep.mubr.bf16.mxu0 %v989_v1 }
  0x3e   :  { %837 = vmatmul.mubr.msk.bf16.gmra.mrb[20].mxu0 %vm187_vm2, %v970_v30 }
  0x3f   :  { %338 = vmatprep.mubr.bf16.mxu0 %v989_v1 }
  0x46   :  { %838 = vmatmul.mubr.msk.bf16.gmra.mrb[24].mxu0 %vm187_vm2, %v971_v31 }
  0x47   :  { %348 = vmatprep.mubr.bf16.mxu0 %v989_v1 }
  0x4e   :  { %839 = vmatmul.mubr.msk.bf16.gmra.mrb[28].mxu0 %vm187_vm2, %v972_v32 }
  0x4f   :  { %358 = vmatprep.mubr.bf16.mxu0 %v989_v1 }
  0x56   :  { %840 = vmatmul.mubr.msk.bf16.gmra.mrb[32].mxu0 %vm187_vm2, %v973_v33 }
  0x57   :  { %368 = vmatprep.mubr.bf16.mxu0 %v989_v1 }
  0x5e   :  { %841 = vmatmul.mubr.msk.bf16.gmra.mrb[36].mxu0 %vm187_vm2, %v974_v34 }
  0x5f   :  { %378 = vmatprep.mubr.bf16.mxu0 %v989_v1 }
  0x66   :  { %842 = vmatmul.mubr.msk.bf16.gmra.mrb[40].mxu0 %vm187_vm2, %v976_v35 }
  0x67   :  { %388 = vmatprep.mubr.bf16.mxu0 %v989_v1 }
  0x6e   :  { %843 = vmatmul.mubr.msk.bf16.gmra.mrb[44].mxu0 %vm187_vm2, %v978_v37 }
  0xe9   :  { %v280_v42 = vpop.f32.mrb[0].mxu0  ;;  %v400_v43 = vpop.f32.mrb[0].mxu1 }
  0xea   :  { %v446_v44 = vadd.f32 %v1155_v41, %v280_v42  ;;  %v1158_v45 = vpop.f32.mrb[1].mxu0  ;;  %v470_v46 = vadd.f32 %v1155_v41, %v400_v43  ;;  %v1161_v47 = vpop.f32.mrb[1].mxu1 }
  0xeb   :  { %v284_v48 = vpop.f32.mrb[2].mxu0  ;;  %v404_v49 = vpop.f32.mrb[2].mxu1 }
  0xec   :  { %v447_v50 = vadd.f32 %v1155_v41, %v284_v48  ;;  %v1164_v51 = vpop.f32.mrb[3].mxu0  ;;  %v502_v52 = vmax.f32 %v470_v46, 0.0  ;;  %v471_v53 = vadd.f32 %v1155_v41, %v404_v49  ;;  %v1167_v54 = vpop.f32.mrb[3].mxu1  ;;  %v478_v55 = vmax.f32 %v446_v44, 0.0 }
  0xee   :  { %v479_v56 = vmax.f32 %v447_v50, 0.0  ;;  %v503_v57 = vmax.f32 %v471_v53, 0.0 }
  0xf0   :  { %v510_v58 = vpack.c.bf16 %v479_v56, %v478_v55  ;;  %v1169_v59 = vpack.c.bf16 %v503_v57, %v502_v52 }
  0xf1   :  { %v290_v60 = vpop.f32.mrb[4].mxu0  ;;  %v410_v61 = vpop.f32.mrb[4].mxu1 }
  0xf2   :  { %v448_v62 = vadd.f32 %v1155_v41, %v290_v60  ;;  %v1172_v63 = vpop.f32.mrb[5].mxu0  ;;  %907 = vmatprep.mubr.bf16.mxu1 %v510_v58  ;;  %v472_v0 = vadd.f32 %v1155_v41, %v410_v61  ;;  %v1175_v1 = vpop.f32.mrb[5].mxu1 }
  0xf3   :  { %v294_v2 = vpop.f32.mrb[6].mxu0  ;;  %v414_v3 = vpop.f32.mrb[6].mxu1 }
  0xf4   :  { %v449_v4 = vadd.f32 %v1155_v41, %v294_v2  ;;  %v1178_v5 = vpop.f32.mrb[7].mxu0  ;;  %v504_v6 = vmax.f32 %v472_v0, 0.0  ;;  %v473_v7 = vadd.f32 %v1155_v41, %v414_v3  ;;  %v1181_v8 = vpop.f32.mrb[7].mxu1  ;;  %v480_v9 = vmax.f32 %v448_v62, 0.0 }
  0xf6   :  { %v481_v10 = vmax.f32 %v449_v4, 0.0  ;;  %v505_v11 = vmax.f32 %v473_v7, 0.0 }
  0xf8   :  { %v511_v12 = vpack.c.bf16 %v481_v10, %v480_v9  ;;  %v1183_v13 = vpack.c.bf16 %v505_v11, %v504_v6 }
  0xf9   :  { %v300_v14 = vpop.f32.mrb[8].mxu0  ;;  %v420_v15 = vpop.f32.mrb[8].mxu1 }
  0xfa   :  { %v450_v16 = vadd.f32 %v1155_v41, %v300_v14  ;;  %v1186_v17 = vpop.f32.mrb[9].mxu0  ;;  %908 = vmatmul.mubr.bf16.vlgmr.msra.gmra.mrb[16].mxu1 %v511_v12  ;;  %v474_v18 = vadd.f32 %v1155_v41, %v420_v15  ;;  %v1189_v19 = vpop.f32.mrb[9].mxu1 }
  0xfb   :  { %v304_v20 = vpop.f32.mrb[10].mxu0  ;;  %v424_v21 = vpop.f32.mrb[10].mxu1 }
  0xfc   :  { %v451_v22 = vadd.f32 %v1155_v41, %v304_v20  ;;  %v1192_v23 = vpop.f32.mrb[11].mxu0  ;;  %v506_v24 = vmax.f32 %v474_v18, 0.0  ;;  %v475_v25 = vadd.f32 %v1155_v41, %v424_v21  ;;  %v1195_v26 = vpop.f32.mrb[11].mxu1  ;;  %v482_v27 = vmax.f32 %v450_v16, 0.0 }
  0xfe   :  { %v483_v28 = vmax.f32 %v451_v22, 0.0  ;;  %v507_v29 = vmax.f32 %v475_v25, 0.0 }
 0x100   :  { %v512_v30 = vpack.c.bf16 %v483_v28, %v482_v27  ;;  %v1197_v31 = vpack.c.bf16 %v507_v29, %v506_v24 }
 0x101   :  { %v310_v32 = vpop.f32.mrb[12].mxu0  ;;  %v430_v33 = vpop.f32.mrb[12].mxu1 }
 0x102   :  { %v452_v34 = vadd.f32 %v1155_v41, %v310_v32  ;;  %v1200_v35 = vpop.f32.mrb[13].mxu0  ;;  %911 = vmatprep.mubr.bf16.mxu1 %v512_v30  ;;  %v476_v36 = vadd.f32 %v1155_v41, %v430_v33  ;;  %v1203_v37 = vpop.f32.mrb[13].mxu1 }
 0x103   :  { %v314_v38 = vpop.f32.mrb[14].mxu0  ;;  %v434_v39 = vpop.f32.mrb[14].mxu1 }
 0x104   :  { %v453_v40 = vadd.f32 %v1155_v41, %v314_v38  ;;  %v1206_v42 = vpop.f32.mrb[15].mxu0  ;;  %v508_v43 = vmax.f32 %v476_v36, 0.0  ;;  %v477_v44 = vadd.f32 %v1155_v41, %v434_v39  ;;  %v1209_v46 = vpop.f32.mrb[15].mxu1  ;;  %v484_v48 = vmax.f32 %v452_v34, 0.0 }
 0x106   :  { %v485_v49 = vmax.f32 %v453_v40, 0.0  ;;  %v509_v50 = vmax.f32 %v477_v44, 0.0 }
 0x108   :  { %v513_v52 = vpack.c.bf16 %v485_v49, %v484_v48  ;;  %v1211_v53 = vpack.c.bf16 %v509_v50, %v508_v43 }
 0x109   :  { %v320_v55 = vpop.f32.mrb[16].mxu0 }
 0x10a   :  { %v454_v56 = vadd.f32 %v1155_v41, %v320_v55  ;;  %v1214_v57 = vpop.f32.mrb[17].mxu0  ;;  %912 = vmatmul.mubr.bf16.gmra.mrb[20].mxu1 %v513_v52 }
 0x10b   :  { %v324_v58 = vpop.f32.mrb[18].mxu0 }
 0x10c   :  { %v455_v60 = vadd.f32 %v1155_v41, %v324_v58  ;;  %v1217_v61 = vpop.f32.mrb[19].mxu0  ;;  %v486_v62 = vmax.f32 %v454_v56, 0.0 }
 0x10e   :  { %v487_v0 = vmax.f32 %v455_v60, 0.0 }
 0x110   :  { %v514_v2 = vpack.c.bf16 %v487_v0, %v486_v62 }
 0x111   :  { %v330_v3 = vpop.f32.mrb[20].mxu0 }
 0x112   :  { %v456_v4 = vadd.f32 %v1155_v41, %v330_v3  ;;  %v1220_v6 = vpop.f32.mrb[21].mxu0  ;;  %915 = vmatprep.mubr.bf16.mxu1 %v514_v2 }
 0x113   :  { %v334_v7 = vpop.f32.mrb[22].mxu0 }
 0x114   :  { %v457_v9 = vadd.f32 %v1155_v41, %v334_v7  ;;  %v1223_v10 = vpop.f32.mrb[23].mxu0  ;;  %v488_v11 = vmax.f32 %v456_v4, 0.0 }
 0x116   :  { %v489_v12 = vmax.f32 %v457_v9, 0.0 }
 0x118   :  { %v515_v14 = vpack.c.bf16 %v489_v12, %v488_v11 }
 0x119   :  { %v340_v15 = vpop.f32.mrb[24].mxu0 }
 0x11a   :  { %v458_v16 = vadd.f32 %v1155_v41, %v340_v15  ;;  %v1226_v18 = vpop.f32.mrb[25].mxu0  ;;  %916 = vmatmul.mubr.bf16.gmra.mrb[24].mxu1 %v515_v14 }
 0x11b   :  { %v344_v20 = vpop.f32.mrb[26].mxu0 }
 0x11c   :  { %v459_v21 = vadd.f32 %v1155_v41, %v344_v20  ;;  %v1229_v22 = vpop.f32.mrb[27].mxu0  ;;  %v490_v24 = vmax.f32 %v458_v16, 0.0 }
 0x11e   :  { %v491_v25 = vmax.f32 %v459_v21, 0.0 }
 0x120   :  { %v516_v27 = vpack.c.bf16 %v491_v25, %v490_v24 }
 0x121   :  { %v350_v28 = vpop.f32.mrb[28].mxu0 }
 0x122   :  { %v460_v29 = vadd.f32 %v1155_v41, %v350_v28  ;;  %v1232_v30 = vpop.f32.mrb[29].mxu0  ;;  %919 = vmatprep.mubr.bf16.mxu1 %v516_v27 }
 0x123   :  { %v354_v32 = vpop.f32.mrb[30].mxu0 }
 0x124   :  { %v461_v33 = vadd.f32 %v1155_v41, %v354_v32  ;;  %v1235_v34 = vpop.f32.mrb[31].mxu0  ;;  %v492_v36 = vmax.f32 %v460_v29, 0.0 }
 0x126   :  { %v493_v38 = vmax.f32 %v461_v33, 0.0 }
 0x128   :  { %v517_v39 = vpack.c.bf16 %v493_v38, %v492_v36 }
 0x129   :  { %v360_v40 = vpop.f32.mrb[32].mxu0 }
 0x12a   :  { %v462_v43 = vadd.f32 %v1155_v41, %v360_v40  ;;  %v1238_v44 = vpop.f32.mrb[33].mxu0  ;;  %920 = vmatmul.mubr.bf16.gmra.mrb[28].mxu1 %v517_v39 }
 0x12b   :  { %v364_v48 = vpop.f32.mrb[34].mxu0 }
 0x12c   :  { %v463_v49 = vadd.f32 %v1155_v41, %v364_v48  ;;  %v1241_v50 = vpop.f32.mrb[35].mxu0  ;;  %v494_v52 = vmax.f32 %v462_v43, 0.0 }
 0x12e   :  { %v495_v55 = vmax.f32 %v463_v49, 0.0 }
 0x130   :  { %v518_v56 = vpack.c.bf16 %v495_v55, %v494_v52 }
 0x131   :  { %v370_v58 = vpop.f32.mrb[36].mxu0 }
 0x132   :  { %v464_v60 = vadd.f32 %v1155_v41, %v370_v58  ;;  %v1244_v62 = vpop.f32.mrb[37].mxu0  ;;  %923 = vmatprep.mubr.bf16.mxu1 %v518_v56 }
 0x133   :  { %v374_v0 = vpop.f32.mrb[38].mxu0 }
 0x134   :  { %v465_v2 = vadd.f32 %v1155_v41, %v374_v0  ;;  %v1247_v3 = vpop.f32.mrb[39].mxu0  ;;  %v496_v4 = vmax.f32 %v464_v60, 0.0 }
 0x136   :  { %v497_v7 = vmax.f32 %v465_v2, 0.0 }
 0x138   :  { %v519_v9 = vpack.c.bf16 %v497_v7, %v496_v4 }
 0x139   :  { %v380_v11 = vpop.f32.mrb[40].mxu0 }
 0x13a   :  { %v466_v12 = vadd.f32 %v1155_v41, %v380_v11  ;;  %v1250_v14 = vpop.f32.mrb[41].mxu0  ;;  %924 = vmatmul.mubr.bf16.gmra.mrb[32].mxu1 %v519_v9 }
 0x13b   :  { %v384_v15 = vpop.f32.mrb[42].mxu0 }
 0x13c   :  { %v467_v16 = vadd.f32 %v1155_v41, %v384_v15  ;;  %v1253_v20 = vpop.f32.mrb[43].mxu0  ;;  %v498_v21 = vmax.f32 %v466_v12, 0.0 }
 0x13e   :  { %v499_v24 = vmax.f32 %v467_v16, 0.0 }
 0x140   :  { %v520_v25 = vpack.c.bf16 %v499_v24, %v498_v21 }
 0x141   :  { %v390_v27 = vpop.f32.mrb[44].mxu0 }
 0x142   :  { %v468_v28 = vadd.f32 %v1155_v41, %v390_v27  ;;  %v1256_v29 = vpop.f32.mrb[45].mxu0  ;;  %927 = vmatprep.mubr.bf16.mxu1 %v520_v25 }
 0x143   :  { %v394_v32 = vpop.f32.mrb[46].mxu0 }
 0x144   :  { %v469_v33 = vadd.f32 %v1155_v41, %v394_v32  ;;  %v1259_v36 = vpop.f32.mrb[47].mxu0  ;;  %v500_v38 = vmax.f32 %v468_v28, 0.0 }
 0x146   :  { %v501_v39 = vmax.f32 %v469_v33, 0.0 }
 0x148   :  { %v521_v40 = vpack.c.bf16 %v501_v39, %v500_v38 }
 0x14a   :  { %928 = vmatmul.mubr.bf16.gmra.mrb[36].mxu1 %v521_v40 }
 0x14b   :  { %931 = vmatprep.mubr.bf16.mxu1 %v1169_v59 }
 0x152   :  { %932 = vmatmul.mubr.bf16.gmra.mrb[40].mxu1 %v1183_v13 }
 0x153   :  { %935 = vmatprep.mubr.bf16.mxu1 %v1197_v31 }
 0x15a   :  { %936 = vmatmul.mubr.bf16.gmra.mrb[44].mxu1 %v1211_v53 }
 0x1cd   :  { %v909_v43 = vpop.f32.mrb[16].mxu1 }
 0x1ce   :  { %v633_v48 = vadd.f32 %v909_v43, %v1172_v63  ;;  %v624_v49 = vpop.f32.mrb[17].mxu1 }
 0x1cf   :  { %v625_v41 = vadd.f32 %v624_v49, %v1158_v45  ;;  %v910_v52 = vpop.f32.mrb[18].mxu1 }
 0x1d0   :  { %v636_v55 = vadd.f32 %v910_v52, %v1178_v5  ;;  %v627_v56 = vpop.f32.mrb[19].mxu1 }
 0x1d1   :  { %v628_v58 = vadd.f32 %v627_v56, %v1164_v51 }
 0x1dd   :  { %v913_v60 = vpop.f32.mrb[20].mxu1 }
 0x1de   :  { %v649_v59 = vadd.f32 %v913_v60, %v1200_v35  ;;  %v640_v13 = vpop.f32.mrb[21].mxu1 }
 0x1df   :  { %v641_v31 = vadd.f32 %v640_v13, %v1186_v17  ;;  %v914_v0 = vpop.f32.mrb[22].mxu1 }
 0x1e0   :  { %v752_v53 = vmax.f32 %v633_v48, %v649_v59  ;;  %v652_v2 = vadd.f32 %v914_v0, %v1206_v42  ;;  %v643_v63 = vpop.f32.mrb[23].mxu1 }
 0x1e1   :  { %v751_v4 = vmax.f32 %v625_v41, %v641_v31  ;;  %v644_v45 = vadd.f32 %v643_v63, %v1192_v23 }
 0x1e2   :  { %v767_v7 = vmax.f32 %v636_v55, %v652_v2 }
 0x1e3   :  { %v766_v9 = vmax.f32 %v628_v58, %v644_v45 }
 0x1ed   :  { %v917_v5 = vpop.f32.mrb[24].mxu1 }
 0x1ee   :  { %v665_v11 = vadd.f32 %v917_v5, %v1220_v6  ;;  %v656_v51 = vpop.f32.mrb[25].mxu1 }
 0x1ef   :  { %v657_v12 = vadd.f32 %v656_v51, %v1214_v57  ;;  %v918_v35 = vpop.f32.mrb[26].mxu1 }
 0x1f0   :  { %v754_v15 = vmax.f32 %v752_v53, %v665_v11  ;;  %v668_v17 = vadd.f32 %v918_v35, %v1223_v10  ;;  %v659_v16 = vpop.f32.mrb[27].mxu1 }
 0x1f1   :  { %v753_v21 = vmax.f32 %v751_v4, %v657_v12  ;;  %v660_v42 = vadd.f32 %v659_v16, %v1217_v61 }
 0x1f2   :  { %v769_v24 = vmax.f32 %v767_v7, %v668_v17 }
 0x1f3   :  { %v768_v25 = vmax.f32 %v766_v9, %v660_v42 }
 0x1fd   :  { %v921_v27 = vpop.f32.mrb[28].mxu1 }
 0x1fe   :  { %v681_v23 = vadd.f32 %v921_v27, %v1232_v30  ;;  %v672_v28 = vpop.f32.mrb[29].mxu1 }
 0x1ff   :  { %v673_v32 = vadd.f32 %v672_v28, %v1226_v18  ;;  %v922_v6 = vpop.f32.mrb[30].mxu1 }
 0x200   :  { %v756_v33 = vmax.f32 %v754_v15, %v681_v23  ;;  %v684_v57 = vadd.f32 %v922_v6, %v1235_v34  ;;  %v675_v38 = vpop.f32.mrb[31].mxu1 }
 0x201   :  { %v755_v39 = vmax.f32 %v753_v21, %v673_v32  ;;  %v676_v10 = vadd.f32 %v675_v38, %v1229_v22 }
 0x202   :  { %v771_v40 = vmax.f32 %v769_v24, %v684_v57 }
 0x203   :  { %v770_v43 = vmax.f32 %v768_v25, %v676_v10 }
 0x20d   :  { %v925_v48 = vpop.f32.mrb[32].mxu1 }
 0x20e   :  { %v697_v61 = vadd.f32 %v925_v48, %v1244_v62  ;;  %v688_v49 = vpop.f32.mrb[33].mxu1 }
 0x20f   :  { %v689_v41 = vadd.f32 %v688_v49, %v1238_v44  ;;  %v926_v30 = vpop.f32.mrb[34].mxu1 }
 0x210   :  { %v758_v52 = vmax.f32 %v756_v33, %v697_v61  ;;  %v700_v18 = vadd.f32 %v926_v30, %v1247_v3  ;;  %v691_v55 = vpop.f32.mrb[35].mxu1 }
 0x211   :  { %v757_v56 = vmax.f32 %v755_v39, %v689_v41  ;;  %v692_v34 = vadd.f32 %v691_v55, %v1241_v50 }
 0x212   :  { %v773_v58 = vmax.f32 %v771_v40, %v700_v18 }
 0x213   :  { %v772_v60 = vmax.f32 %v770_v43, %v692_v34 }
 0x21d   :  { %v929_v59 = vpop.f32.mrb[36].mxu1 }
 0x21e   :  { %v713_v22 = vadd.f32 %v929_v59, %v1256_v29  ;;  %v704_v13 = vpop.f32.mrb[37].mxu1 }
 0x21f   :  { %v705_v31 = vadd.f32 %v704_v13, %v1250_v14  ;;  %v930_v62 = vpop.f32.mrb[38].mxu1 }
 0x220   :  { %v760_v0 = vmax.f32 %v758_v52, %v713_v22  ;;  %v716_v44 = vadd.f32 %v930_v62, %v1259_v36  ;;  %v707_v53 = vpop.f32.mrb[39].mxu1 }
 0x221   :  { %v759_v2 = vmax.f32 %v757_v56, %v705_v31  ;;  %v708_v3 = vadd.f32 %v707_v53, %v1253_v20 }
 0x222   :  { %v775_v63 = vmax.f32 %v773_v58, %v716_v44 }
 0x223   :  { %v774_v4 = vmax.f32 %v772_v60, %v708_v3 }
 0x225   :  { %v933_v45 = vpop.f32.mrb[40].mxu1 }
 0x226   :  { %v729_v50 = vadd.f32 %v933_v45, %v1175_v1  ;;  %v720_v7 = vpop.f32.mrb[41].mxu1 }
 0x227   :  { %v721_v9 = vadd.f32 %v720_v7, %v1161_v47  ;;  %v934_v29 = vpop.f32.mrb[42].mxu1 }
 0x228   :  { %v762_v5 = vmax.f32 %v760_v0, %v729_v50  ;;  %v732_v14 = vadd.f32 %v934_v29, %v1181_v8  ;;  %v723_v11 = vpop.f32.mrb[43].mxu1 }
 0x229   :  { %v761_v51 = vmax.f32 %v759_v2, %v721_v9  ;;  %v724_v36 = vadd.f32 %v723_v11, %v1167_v54  ;;  %v857_v54 = vld [vmem:[%s1307_s4] ss:$0 sm:$0xff] }
 0x22a   :  { %v777_v12 = vmax.f32 %v775_v63, %v732_v14 }
 0x22b   :  { %v776_v35 = vmax.f32 %v774_v4, %v724_v36 }
 0x22d   :  { %v937_v15 = vpop.f32.mrb[44].mxu1 }
 0x22e   :  { %v745_v20 = vadd.f32 %v937_v15, %v1203_v37  ;;  %v736_v17 = vpop.f32.mrb[45].mxu1 }
 0x22f   :  { %v737_v16 = vadd.f32 %v736_v17, %v1189_v19  ;;  %v938_v1 = vpop.f32.mrb[46].mxu1 }
 0x230   :  { %v764_v21 = vmax.f32 %v762_v5, %v745_v20  ;;  %v748_v47 = vadd.f32 %v938_v1, %v1209_v46  ;;  %v739_v42 = vpop.f32.mrb[47].mxu1 }
 0x231   :  { %v763_v24 = vmax.f32 %v761_v51, %v737_v16  ;;  %v740_v8 = vadd.f32 %v739_v42, %v1195_v26 }
 0x232   :  { %v779_v25 = vmax.f32 %v777_v12, %v748_v47 }
 0x233   :  { %v765_v27 = vmax.f32 %v763_v24, %v764_v21  ;;  %v778_v23 = vmax.f32 %v776_v35, %v740_v8 }
 0x235   :  { %v788_v28 = vadd.f32 %v857_v54, %v765_v27  ;;  %v780_v37 = vmax.f32 %v778_v23, %v779_v25 }
 0x237   :  { %v789_v32 = vadd.f32 %v857_v54, %v780_v37  ;;  %v790_v6 = vmax.f32 %v788_v28, 0.0 }
 0x239   :  { %v791_v19 = vmax.f32 %v789_v32, 0.0 }
 0x23b   :  { %v865_v33 = vpack.c.bf16 %v791_v19, %v790_v6 }
 0x23d   :  { %866 = vst [vmem:[%s1308_s5] sm:$0xff] %v865_v33  }

// kernel: condition_encoder.7
= control target key start
LH: loop header
LB: loop body
LE: loop exit
PB: predicated region body
PF: predicated region fallthrough
CT: control target
= control target key end

     0   :  { %vm269_vm0 = vcmask 23552   ;;  %vm282_vm1 = vcmask 1040384   ;;  %vm283_vm2 = vcmask 1041408   ;;  %v1019_v21 = vmov 65535   ;;  %s1327_s1 = inlined_call_operand.vmem [shape: bf16[131,512], index: 1, kind: input, shape index: {}]   ;;  %s1328_s0 = inlined_call_operand.vmem [shape: bf16[8,8,131], index: 0, kind: input, shape index: {}]   ;;  %s1329_s3 = inlined_call_operand.vmem [shape: bf16[256,256], index: 3, kind: input, shape index: {}]   ;;  %s1330_s2 = inlined_call_operand.vmem [shape: f32[1,256], index: 2, kind: input, shape index: {}]   ;;  %s1331_s4 = inlined_call_operand.vmem [shape: f32[1,256], index: 4, kind: input, shape index: {}]   ;;  %s1332_s5 = inlined_call_operand.vmem [shape: bf16[8,256], index: 5, kind: output, shape index: {}]  }
   0x1   :  { %v907_v0 = vld [vmem:[%s1327_s1 + $0x4] ss:$16 sps:$4 sm:$0xff]   ;;  %v909_v1 = vld [vmem:[%s1327_s1] ss:$16 sps:$4 sm:$0xff]   ;;  %v284_v22 = vsel %vm282_vm1, 4294967295, %v1019_v21  ;;  %v446_v21 = vlaneseq }
   0x2   :  { %298 = vmatprep.subr.bf16.mxu0 %v907_v0  ;;  %v910_v2 = vld [vmem:[%s1327_s1 + $0x24] ss:$16 sps:$4 sm:$0xff]   ;;  %v912_v3 = vld [vmem:[%s1327_s1 + $0x20] ss:$16 sps:$4 sm:$0xff]   ;;  %v1123_v26 = vsel %vm283_vm2, %v284_v22, 0 }
   0x3   :  { %299 = vmatpush1.bf16.msra.mxu0 %v909_v1  ;;  %v913_v4 = vld [vmem:[%s1327_s1 + $0x44] ss:$16 sps:$4 sm:$0xff]   ;;  %v915_v5 = vld [vmem:[%s1327_s1 + $0x40] ss:$16 sps:$4 sm:$0xff]   ;;  %v967_v35 = vld [vmem:[%s1327_s1 + $0xc] ss:$16 sps:$4 sm:$0xff]  }
   0x4   :  { %300 = vmatprep.subr.bf16.mxu0 %v910_v2  ;;  %v916_v6 = vld [vmem:[%s1327_s1 + $0x64] ss:$16 sps:$4 sm:$0xff]   ;;  %v918_v7 = vld [vmem:[%s1327_s1 + $0x60] ss:$16 sps:$4 sm:$0xff]   ;;  %v965_v40 = vld [vmem:[%s1327_s1 + $0x8] ss:$16 sps:$4 sm:$0xff]  }
   0x5   :  { %v919_v8 = vld [vmem:[%s1327_s1 + $0x84] ss:$16 sps:$4 sm:$0xff]   ;;  %v921_v10 = vld [vmem:[%s1327_s1 + $0x80] ss:$16 sps:$4 sm:$0xff]   ;;  %v973_v41 = vld [vmem:[%s1327_s1 + $0x2c] ss:$16 sps:$4 sm:$0xff]  }
   0x6   :  { %v1080_v9 = vld [vmem:[%s1328_s0 + $0x4] ss:$8 sps:$4 sm:$0xff]   ;;  %v947_v13 = vld [vmem:[%s1329_s3] ss:$8 sps:$4 sm:$0xff]   ;;  %v948_v15 = vld [vmem:[%s1329_s3 + $0x14] ss:$8 sps:$4 sm:$0xff]  }
   0x7   :  { %301 = vmatpush1.bf16.msra.mxu0 %v912_v3  ;;  %848 = vmatprep.mubr.msk.bf16.mxu0 %vm269_vm0, %v1080_v9  ;;  %v922_v11 = vld [vmem:[%s1327_s1 + $0xa4] ss:$16 sps:$4 sm:$0xff]   ;;  %v924_v14 = vld [vmem:[%s1327_s1 + $0xa0] ss:$16 sps:$4 sm:$0xff]   ;;  %v971_v44 = vld [vmem:[%s1327_s1 + $0x28] ss:$16 sps:$4 sm:$0xff]  }
   0x8   :  { %302 = vmatprep.subr.bf16.mxu0 %v913_v4  ;;  %v945_v12 = vld [vmem:[%s1329_s3 + $0x4] ss:$8 sps:$4 sm:$0xff]   ;;  %v950_v17 = vld [vmem:[%s1329_s3 + $0x10] ss:$8 sps:$4 sm:$0xff]   ;;  %v953_v25 = vld [vmem:[%s1329_s3 + $0x20] ss:$8 sps:$4 sm:$0xff]  }
   0x9   :  { %v925_v16 = vld [vmem:[%s1327_s1 + $0xc4] ss:$16 sps:$4 sm:$0xff]   ;;  %688 = vmatprep.subr.bf16.mxu1 %v945_v12  ;;  %v927_v20 = vld [vmem:[%s1327_s1 + $0xc0] ss:$16 sps:$4 sm:$0xff]   ;;  %v979_v46 = vld [vmem:[%s1327_s1 + $0x4c] ss:$16 sps:$4 sm:$0xff]  }
   0xa   :  { %689 = vmatpush1.bf16.msra.mxu1 %v947_v13  ;;  %v61_v18 = vld [vmem:[%s1327_s1 + $0x100] sm:$0x33]  ;;  %v954_v27 = vld [vmem:[%s1329_s3 + $0x34] ss:$8 sps:$4 sm:$0xff]   ;;  %v956_v31 = vld [vmem:[%s1329_s3 + $0x30] ss:$8 sps:$4 sm:$0xff]  }
   0xb   :  { %303 = vmatpush1.bf16.msra.mxu0 %v915_v5  ;;  %690 = vmatprep.subr.bf16.mxu1 %v948_v15  ;;  %v951_v19 = vld [vmem:[%s1329_s3 + $0x24] ss:$8 sps:$4 sm:$0xff]   ;;  %v845_v24 = vcombine.high %v61_v18, %v61_v18  ;;  %v930_v28 = vld [vmem:[%s1327_s1 + $0xe0] ss:$16 sps:$4 sm:$0xff]   ;;  %v844_v29 = vcombine.low %v61_v18, %v61_v18  ;;  %v960_v36 = vld [vmem:[%s1329_s3 + $0x54] ss:$8 sps:$4 sm:$0xff]  }
   0xc   :  { %304 = vmatprep.subr.bf16.mxu0 %v916_v6  ;;  %v928_v23 = vld [vmem:[%s1327_s1 + $0xe4] ss:$16 sps:$4 sm:$0xff]   ;;  %v959_v34 = vld [vmem:[%s1329_s3 + $0x40] ss:$8 sps:$4 sm:$0xff]   ;;  %v962_v39 = vld [vmem:[%s1329_s3 + $0x50] ss:$8 sps:$4 sm:$0xff]  }
   0xd   :  { %v290_v30 = vand.u32 %v845_v24, %v1123_v26  ;;  %v957_v32 = vld [vmem:[%s1329_s3 + $0x44] ss:$8 sps:$4 sm:$0xff]   ;;  %v287_v33 = vand.u32 %v844_v29, %v1123_v26  ;;  %v1151_v37 = vld [vmem:[%s1328_s0] ss:$8 sps:$4 sm:$0xff]   ;;  %v1156_v38 = vld [vmem:[%s1328_s0 + $0x14] ss:$8 sps:$4 sm:$0xff]  }
   0xe   :  { %691 = vmatpush1.bf16.msra.mxu1 %v950_v17  ;;  %v963_v42 = vld [vmem:[%s1329_s3 + $0x64] ss:$8 sps:$4 sm:$0xff]   ;;  %v968_v43 = vld [vmem:[%s1329_s3 + $0x60] ss:$8 sps:$4 sm:$0xff]   ;;  %v1182_v45 = vld [vmem:[%s1328_s0 + $0x10] ss:$8 sps:$4 sm:$0xff]  }
   0xf   :  { %305 = vmatpush1.bf16.msra.mxu0 %v918_v7  ;;  %692 = vmatprep.subr.bf16.mxu1 %v951_v19  ;;  %v969_v47 = vld [vmem:[%s1329_s3 + $0x74] ss:$8 sps:$4 sm:$0xff]   ;;  %v1193_v48 = vld [vmem:[%s1328_s0 + $0x24] ss:$8 sps:$4 sm:$0xff]   ;;  %v974_v49 = vld [vmem:[%s1329_s3 + $0x70] ss:$8 sps:$4 sm:$0xff]  }
  0x10   :  { %306 = vmatprep.subr.bf16.mxu0 %v919_v8  ;;  %v977_v50 = vld [vmem:[%s1327_s1 + $0x48] ss:$16 sps:$4 sm:$0xff]   ;;  %v975_v51 = vld [vmem:[%s1329_s3 + $0x84] ss:$8 sps:$4 sm:$0xff]   ;;  %v981_v56 = vld [vmem:[%s1329_s3 + $0x94] ss:$8 sps:$4 sm:$0xff]  }
  0x11   :  { %v985_v52 = vld [vmem:[%s1327_s1 + $0x6c] ss:$16 sps:$4 sm:$0xff]   ;;  %v983_v53 = vld [vmem:[%s1327_s1 + $0x68] ss:$16 sps:$4 sm:$0xff]   ;;  %v1306_v22 = vshrl.u32 %v446_v21, 7 }
  0x12   :  { %693 = vmatpush1.bf16.msra.mxu1 %v953_v25  ;;  %v980_v54 = vld [vmem:[%s1329_s3 + $0x80] ss:$8 sps:$4 sm:$0xff]   ;;  %v991_v55 = vld [vmem:[%s1327_s1 + $0x8c] ss:$16 sps:$4 sm:$0xff]   ;;  %v986_v60 = vld [vmem:[%s1329_s3 + $0x90] ss:$8 sps:$4 sm:$0xff]  }
  0x13   :  { %307 = vmatpush1.bf16.msra.mxu0 %v921_v10  ;;  %694 = vmatprep.subr.bf16.mxu1 %v954_v27  ;;  %v941_v57 = vld [vmem:[%s1328_s0 + $0x20] ss:$8 sps:$4 sm:$0xff]   ;;  %v942_v58 = vld [vmem:[%s1328_s0 + $0x34] ss:$8 sps:$4 sm:$0xff]   ;;  %v987_v62 = vld [vmem:[%s1329_s3 + $0xa4] ss:$8 sps:$4 sm:$0xff]  }
  0x14   :  { %308 = vmatprep.subr.bf16.mxu0 %v922_v11  ;;  %v989_v59 = vld [vmem:[%s1327_s1 + $0x88] ss:$16 sps:$4 sm:$0xff]   ;;  %v997_v61 = vld [vmem:[%s1327_s1 + $0xac] ss:$16 sps:$4 sm:$0xff]   ;;  %v444_v24 = vld [vmem:[%s1330_s2] sm:$0x3] }
  0x15   :  { %v995_v63 = vld [vmem:[%s1327_s1 + $0xa8] ss:$16 sps:$4 sm:$0xff]   ;;  %v1003_v1 = vld [vmem:[%s1327_s1 + $0xcc] ss:$16 sps:$4 sm:$0xff]   ;;  %v452_v25 = vsub.s32 1, %v1306_v22 }
  0x16   :  { %695 = vmatpush1.bf16.msra.mxu1 %v956_v31  ;;  %v992_v0 = vld [vmem:[%s1329_s3 + $0xa0] ss:$8 sps:$4 sm:$0xff]   ;;  %v993_v2 = vld [vmem:[%s1329_s3 + $0xb4] ss:$8 sps:$4 sm:$0xff]   ;;  %v944_v3 = vld [vmem:[%s1328_s0 + $0x30] ss:$8 sps:$4 sm:$0xff]  }
  0x17   :  { %309 = vmatpush1.bf16.msra.mxu0 %v924_v14  ;;  %696 = vmatprep.subr.bf16.mxu1 %v957_v32  ;;  %v1001_v4 = vld [vmem:[%s1327_s1 + $0xc8] ss:$16 sps:$4 sm:$0xff]   ;;  %v999_v6 = vld [vmem:[%s1329_s3 + $0xc4] ss:$8 sps:$4 sm:$0xff]   ;;  %v1005_v8 = vld [vmem:[%s1329_s3 + $0xd4] ss:$8 sps:$4 sm:$0xff]   ;;  %v453_v27 = vrot.slane %v444_v24, %v452_v25 }
  0x18   :  { %310 = vmatprep.subr.bf16.mxu0 %v925_v16  ;;  %v998_v5 = vld [vmem:[%s1329_s3 + $0xb0] ss:$8 sps:$4 sm:$0xff]   ;;  %v1004_v7 = vld [vmem:[%s1329_s3 + $0xc0] ss:$8 sps:$4 sm:$0xff]   ;;  %v1009_v10 = vld [vmem:[%s1327_s1 + $0xec] ss:$16 sps:$4 sm:$0xff]  }
  0x19   :  { %v1007_v11 = vld [vmem:[%s1327_s1 + $0xe8] ss:$16 sps:$4 sm:$0xff]   ;;  %v1011_v14 = vld [vmem:[%s1329_s3 + $0xe4] ss:$8 sps:$4 sm:$0xff]   ;;  %v1016_v19 = vld [vmem:[%s1329_s3 + $0xf4] ss:$8 sps:$4 sm:$0xff]  }
  0x1a   :  { %697 = vmatpush1.bf16.msra.mxu1 %v959_v34  ;;  %v62_v12 = vld [vmem:[%s1327_s1 + $0x108] sm:$0x33] }
  0x1b   :  { %311 = vmatpush1.bf16.msra.mxu0 %v927_v20  ;;  %698 = vmatprep.subr.bf16.mxu1 %v960_v36  ;;  %v847_v13 = vcombine.high %v62_v12, %v62_v12  ;;  %v846_v15 = vcombine.low %v62_v12, %v62_v12  ;;  %v1015_v17 = vld [vmem:[%s1329_s3 + $0xe0] ss:$8 sps:$4 sm:$0xff]   ;;  %v1018_v20 = vld [vmem:[%s1329_s3 + $0xf0] ss:$8 sps:$4 sm:$0xff]  }
  0x1c   :  { %312 = vmatprep.subr.bf16.mxu0 %v928_v23  ;;  %v448_v23 = vsub.s32 0, %v1306_v22 }
  0x1d   :  { %v296_v16 = vand.u32 %v847_v13, %v1123_v26  ;;  %v293_v18 = vand.u32 %v846_v15, %v1123_v26 }
  0x1e   :  { %699 = vmatpush1.bf16.msra.mxu1 %v962_v39  ;;  %v449_v26 = vrot.slane %v444_v24, %v448_v23 }
  0x1f   :  { %313 = vmatpush1.bf16.msra.mxu0 %v930_v28  ;;  %700 = vmatprep.subr.bf16.mxu1 %v963_v42 }
  0x20   :  { %314 = vmatprep.subr.bf16.mxu0 %v290_v30 }
  0x22   :  { %701 = vmatpush1.bf16.msra.mxu1 %v968_v43 }
  0x23   :  { %315 = vmatpush1.bf16.msra.mxu0 %v287_v33  ;;  %702 = vmatprep.subr.bf16.mxu1 %v969_v47 }
  0x24   :  { %371 = vmatprep.subr.bf16.mxu0 %v967_v35 }
  0x26   :  { %331 = vmatmul.mubr.bf16.vlgmr.msra.gmra.mrb[0].mxu0 %v1151_v37  ;;  %703 = vmatpush1.bf16.msra.mxu1 %v974_v49 }
  0x27   :  { %849 = vmatprep.mubr.msk.bf16.mxu0 %vm269_vm0, %v1156_v38  ;;  %372 = vmatpush1.bf16.msra.mxu0 %v965_v40 }
  0x28   :  { %373 = vmatprep.subr.bf16.mxu0 %v973_v41  ;;  %704 = vmatprep.subr.bf16.mxu1 %v975_v51 }
  0x2a   :  { %705 = vmatpush1.bf16.msra.mxu1 %v980_v54 }
  0x2b   :  { %374 = vmatpush1.bf16.msra.mxu0 %v971_v44  ;;  %706 = vmatprep.subr.bf16.mxu1 %v981_v56 }
  0x2c   :  { %375 = vmatprep.subr.bf16.mxu0 %v979_v46 }
  0x2e   :  { %341 = vmatmul.mubr.bf16.gmra.mrb[4].mxu0 %v1182_v45  ;;  %707 = vmatpush1.bf16.msra.mxu1 %v986_v60 }
  0x2f   :  { %850 = vmatprep.mubr.msk.bf16.mxu0 %vm269_vm0, %v1193_v48  ;;  %376 = vmatpush1.bf16.msra.mxu0 %v977_v50 }
  0x30   :  { %377 = vmatprep.subr.bf16.mxu0 %v985_v52  ;;  %708 = vmatprep.subr.bf16.mxu1 %v987_v62 }
  0x32   :  { %709 = vmatpush1.bf16.msra.mxu1 %v992_v0 }
  0x33   :  { %378 = vmatpush1.bf16.msra.mxu0 %v983_v53  ;;  %710 = vmatprep.subr.bf16.mxu1 %v993_v2 }
  0x34   :  { %379 = vmatprep.subr.bf16.mxu0 %v991_v55 }
  0x36   :  { %351 = vmatmul.mubr.bf16.gmra.mrb[8].mxu0 %v941_v57  ;;  %711 = vmatpush1.bf16.msra.mxu1 %v998_v5 }
  0x37   :  { %851 = vmatprep.mubr.msk.bf16.mxu0 %vm269_vm0, %v942_v58  ;;  %380 = vmatpush1.bf16.msra.mxu0 %v989_v59 }
  0x38   :  { %381 = vmatprep.subr.bf16.mxu0 %v997_v61  ;;  %712 = vmatprep.subr.bf16.mxu1 %v999_v6 }
  0x3a   :  { %713 = vmatpush1.bf16.msra.mxu1 %v1004_v7 }
  0x3b   :  { %382 = vmatpush1.bf16.msra.mxu0 %v995_v63  ;;  %714 = vmatprep.subr.bf16.mxu1 %v1005_v8 }
  0x3c   :  { %383 = vmatprep.subr.bf16.mxu0 %v1003_v1 }
  0x3e   :  { %361 = vmatmul.mubr.bf16.gmra.mrb[12].mxu0 %v944_v3 }
  0x3f   :  { %384 = vmatpush1.bf16.msra.mxu0 %v1001_v4  ;;  %852 = vmatprep.mubr.msk.bf16.mxu0 %vm269_vm0, %v1080_v9  ;;  %v1010_v9 = vld [vmem:[%s1329_s3 + $0xd0] ss:$8 sps:$4 sm:$0xff]  }
  0x40   :  { %385 = vmatprep.subr.bf16.mxu0 %v1009_v10  ;;  %715 = vmatpush1.bf16.msra.mxu1 %v1010_v9 }
  0x41   :  { %716 = vmatprep.subr.bf16.mxu1 %v1011_v14 }
  0x43   :  { %386 = vmatpush1.bf16.msra.mxu0 %v1007_v11 }
  0x44   :  { %387 = vmatprep.subr.bf16.mxu0 %v296_v16  ;;  %717 = vmatpush1.bf16.msra.mxu1 %v1015_v17 }
  0x45   :  { %718 = vmatprep.subr.bf16.mxu1 %v1016_v19 }
  0x47   :  { %388 = vmatpush1.bf16.msra.mxu0 %v293_v18 }
  0x48   :  { %719 = vmatpush1.bf16.msra.mxu1 %v1018_v20 }
  0x4a   :  { %404 = vmatmul.mubr.bf16.vlgmr.msra.gmra.mrb[16].mxu0 %v1151_v37 }
  0x4b   :  { %853 = vmatprep.mubr.msk.bf16.mxu0 %vm269_vm0, %v1156_v38 }
  0x52   :  { %414 = vmatmul.mubr.bf16.gmra.mrb[20].mxu0 %v1182_v45 }
  0x53   :  { %854 = vmatprep.mubr.msk.bf16.mxu0 %vm269_vm0, %v1193_v48 }
  0x5a   :  { %424 = vmatmul.mubr.bf16.gmra.mrb[24].mxu0 %v941_v57 }
  0x5b   :  { %855 = vmatprep.mubr.msk.bf16.mxu0 %vm269_vm0, %v942_v58 }
  0x62   :  { %434 = vmatmul.mubr.bf16.gmra.mrb[28].mxu0 %v944_v3 }
  0xf9   :  { %v332_v28 = vpop.f32.mrb[0].mxu0 }
  0xfa   :  { %v456_v29 = vadd.f32 %v449_v26, %v332_v28  ;;  %v334_v30 = vpop.f32.mrb[1].mxu0 }
  0xfb   :  { %v457_v31 = vadd.f32 %v453_v27, %v334_v30  ;;  %v336_v32 = vpop.f32.mrb[2].mxu0 }
  0xfc   :  { %v458_v33 = vadd.f32 %v449_v26, %v336_v32  ;;  %v338_v34 = vpop.f32.mrb[3].mxu0  ;;  %v472_v36 = vmax.f32 %v456_v29, 0.0 }
  0xfd   :  { %v459_v35 = vadd.f32 %v453_v27, %v338_v34  ;;  %v473_v38 = vmax.f32 %v457_v31, 0.0 }
  0xfe   :  { %v474_v37 = vmax.f32 %v458_v33, 0.0 }
  0xff   :  { %v475_v39 = vmax.f32 %v459_v35, 0.0 }
 0x100   :  { %v488_v40 = vpack.c.bf16 %v474_v37, %v472_v36 }
 0x101   :  { %v342_v41 = vpop.f32.mrb[4].mxu0  ;;  %v489_v42 = vpack.c.bf16 %v475_v39, %v473_v38 }
 0x102   :  { %v460_v43 = vadd.f32 %v449_v26, %v342_v41  ;;  %v344_v44 = vpop.f32.mrb[5].mxu0 }
 0x103   :  { %v461_v45 = vadd.f32 %v453_v27, %v344_v44  ;;  %v346_v46 = vpop.f32.mrb[6].mxu0  ;;  %720 = vmatprep.mubr.bf16.mxu1 %v489_v42 }
 0x104   :  { %v462_v47 = vadd.f32 %v449_v26, %v346_v46  ;;  %v348_v48 = vpop.f32.mrb[7].mxu0  ;;  %721 = vmatmul.mubr.bf16.vlgmr.msra.gmra.mrb[0].mxu1 %v488_v40  ;;  %v476_v50 = vmax.f32 %v460_v43, 0.0 }
 0x105   :  { %v463_v49 = vadd.f32 %v453_v27, %v348_v48  ;;  %v477_v52 = vmax.f32 %v461_v45, 0.0 }
 0x106   :  { %v478_v51 = vmax.f32 %v462_v47, 0.0 }
 0x107   :  { %v479_v53 = vmax.f32 %v463_v49, 0.0 }
 0x108   :  { %v490_v54 = vpack.c.bf16 %v478_v51, %v476_v50 }
 0x109   :  { %v491_v55 = vpack.c.bf16 %v479_v53, %v477_v52  ;;  %v352_v56 = vpop.f32.mrb[8].mxu0 }
 0x10a   :  { %v464_v57 = vadd.f32 %v449_v26, %v352_v56  ;;  %v354_v58 = vpop.f32.mrb[9].mxu0 }
 0x10b   :  { %v465_v59 = vadd.f32 %v453_v27, %v354_v58  ;;  %v356_v60 = vpop.f32.mrb[10].mxu0  ;;  %730 = vmatprep.mubr.bf16.mxu1 %v491_v55 }
 0x10c   :  { %v466_v61 = vadd.f32 %v449_v26, %v356_v60  ;;  %v358_v62 = vpop.f32.mrb[11].mxu0  ;;  %731 = vmatmul.mubr.bf16.gmra.mrb[4].mxu1 %v490_v54  ;;  %v480_v0 = vmax.f32 %v464_v57, 0.0 }
 0x10d   :  { %v467_v63 = vadd.f32 %v453_v27, %v358_v62  ;;  %v481_v2 = vmax.f32 %v465_v59, 0.0 }
 0x10e   :  { %v482_v1 = vmax.f32 %v466_v61, 0.0 }
 0x10f   :  { %v483_v3 = vmax.f32 %v467_v63, 0.0 }
 0x110   :  { %v492_v4 = vpack.c.bf16 %v482_v1, %v480_v0 }
 0x111   :  { %v493_v5 = vpack.c.bf16 %v483_v3, %v481_v2  ;;  %v362_v6 = vpop.f32.mrb[12].mxu0 }
 0x112   :  { %v468_v7 = vadd.f32 %v449_v26, %v362_v6  ;;  %v364_v8 = vpop.f32.mrb[13].mxu0 }
 0x113   :  { %v469_v10 = vadd.f32 %v453_v27, %v364_v8  ;;  %v366_v9 = vpop.f32.mrb[14].mxu0  ;;  %740 = vmatprep.mubr.bf16.mxu1 %v493_v5 }
 0x114   :  { %v470_v11 = vadd.f32 %v449_v26, %v366_v9  ;;  %v368_v12 = vpop.f32.mrb[15].mxu0  ;;  %741 = vmatmul.mubr.bf16.gmra.mrb[8].mxu1 %v492_v4  ;;  %v484_v14 = vmax.f32 %v468_v7, 0.0 }
 0x115   :  { %v471_v13 = vadd.f32 %v453_v27, %v368_v12  ;;  %v485_v16 = vmax.f32 %v469_v10, 0.0  ;;  %v775_v12 = vld [vmem:[%s1331_s4] sm:$0x3] }
 0x116   :  { %v486_v15 = vmax.f32 %v470_v11, 0.0 }
 0x117   :  { %v487_v17 = vmax.f32 %v471_v13, 0.0 }
 0x118   :  { %v494_v18 = vpack.c.bf16 %v486_v15, %v484_v14 }
 0x119   :  { %v495_v19 = vpack.c.bf16 %v487_v17, %v485_v16 }
 0x11b   :  { %750 = vmatprep.mubr.bf16.mxu1 %v495_v19  ;;  %v780_v19 = vrot.slane %v775_v12, %v448_v23 }
 0x11c   :  { %751 = vmatmul.mubr.bf16.gmra.mrb[12].mxu1 %v494_v18 }
 0x11d   :  { %v405_v20 = vpop.f32.mrb[16].mxu0 }
 0x11e   :  { %v407_v21 = vpop.f32.mrb[17].mxu0 }
 0x11f   :  { %v409_v24 = vpop.f32.mrb[18].mxu0 }
 0x120   :  { %v411_v28 = vpop.f32.mrb[19].mxu0 }
 0x125   :  { %v415_v29 = vpop.f32.mrb[20].mxu0 }
 0x126   :  { %v417_v30 = vpop.f32.mrb[21].mxu0 }
 0x127   :  { %v419_v31 = vpop.f32.mrb[22].mxu0 }
 0x128   :  { %v421_v32 = vpop.f32.mrb[23].mxu0 }
 0x12d   :  { %v425_v26 = vpop.f32.mrb[24].mxu0 }
 0x12e   :  { %v427_v33 = vpop.f32.mrb[25].mxu0 }
 0x12f   :  { %v429_v34 = vpop.f32.mrb[26].mxu0 }
 0x130   :  { %v431_v27 = vpop.f32.mrb[27].mxu0 }
 0x135   :  { %v435_v35 = vpop.f32.mrb[28].mxu0 }
 0x136   :  { %v437_v36 = vpop.f32.mrb[29].mxu0 }
 0x137   :  { %v439_v37 = vpop.f32.mrb[30].mxu0 }
 0x138   :  { %v441_v38 = vpop.f32.mrb[31].mxu0 }
 0x1d7   :  { %v722_v39 = vpop.f32.mrb[0].mxu1 }
 0x1d8   :  { %v723_v40 = vadd.f32 %v722_v39, %v405_v20  ;;  %v724_v41 = vpop.f32.mrb[1].mxu1 }
 0x1d9   :  { %v725_v42 = vadd.f32 %v724_v41, %v407_v21  ;;  %v726_v43 = vpop.f32.mrb[2].mxu1  ;;  %v784_v21 = vrot.slane %v775_v12, %v452_v25 }
 0x1da   :  { %v727_v44 = vadd.f32 %v726_v43, %v409_v24  ;;  %v728_v45 = vpop.f32.mrb[3].mxu1 }
 0x1db   :  { %v729_v46 = vadd.f32 %v728_v45, %v411_v28 }
 0x1df   :  { %v732_v47 = vpop.f32.mrb[4].mxu1 }
 0x1e0   :  { %v733_v48 = vadd.f32 %v732_v47, %v415_v29  ;;  %v734_v49 = vpop.f32.mrb[5].mxu1 }
 0x1e1   :  { %v735_v50 = vadd.f32 %v734_v49, %v417_v30  ;;  %v736_v51 = vpop.f32.mrb[6].mxu1 }
 0x1e2   :  { %v761_v52 = vmax.f32 %v723_v40, %v733_v48  ;;  %v737_v53 = vadd.f32 %v736_v51, %v419_v31  ;;  %v738_v54 = vpop.f32.mrb[7].mxu1 }
 0x1e3   :  { %v768_v55 = vmax.f32 %v725_v42, %v735_v50  ;;  %v739_v56 = vadd.f32 %v738_v54, %v421_v32 }
 0x1e4   :  { %v762_v57 = vmax.f32 %v727_v44, %v737_v53 }
 0x1e5   :  { %v769_v58 = vmax.f32 %v729_v46, %v739_v56 }
 0x1e7   :  { %v742_v59 = vpop.f32.mrb[8].mxu1 }
 0x1e8   :  { %v743_v60 = vadd.f32 %v742_v59, %v425_v26  ;;  %v744_v61 = vpop.f32.mrb[9].mxu1 }
 0x1e9   :  { %v745_v62 = vadd.f32 %v744_v61, %v427_v33  ;;  %v746_v63 = vpop.f32.mrb[10].mxu1 }
 0x1ea   :  { %v763_v0 = vmax.f32 %v761_v52, %v743_v60  ;;  %v747_v1 = vadd.f32 %v746_v63, %v429_v34  ;;  %v748_v2 = vpop.f32.mrb[11].mxu1 }
 0x1eb   :  { %v770_v3 = vmax.f32 %v768_v55, %v745_v62  ;;  %v749_v4 = vadd.f32 %v748_v2, %v431_v27 }
 0x1ec   :  { %v764_v5 = vmax.f32 %v762_v57, %v747_v1 }
 0x1ed   :  { %v771_v6 = vmax.f32 %v769_v58, %v749_v4 }
 0x1ef   :  { %v752_v7 = vpop.f32.mrb[12].mxu1 }
 0x1f0   :  { %v753_v8 = vadd.f32 %v752_v7, %v435_v35  ;;  %v754_v10 = vpop.f32.mrb[13].mxu1 }
 0x1f1   :  { %v755_v9 = vadd.f32 %v754_v10, %v437_v36  ;;  %v756_v11 = vpop.f32.mrb[14].mxu1 }
 0x1f2   :  { %v765_v13 = vmax.f32 %v763_v0, %v753_v8  ;;  %v757_v14 = vadd.f32 %v756_v11, %v439_v37  ;;  %v758_v15 = vpop.f32.mrb[15].mxu1 }
 0x1f3   :  { %v772_v16 = vmax.f32 %v770_v3, %v755_v9  ;;  %v759_v17 = vadd.f32 %v758_v15, %v441_v38 }
 0x1f4   :  { %v766_v18 = vmax.f32 %v764_v5, %v757_v14 }
 0x1f5   :  { %v773_v20 = vmax.f32 %v771_v6, %v759_v17 }
 0x1f6   :  { %v767_v24 = vmax.f32 %v765_v13, %v766_v18 }
 0x1f7   :  { %v774_v28 = vmax.f32 %v772_v16, %v773_v20 }
 0x1f8   :  { %v787_v29 = vadd.f32 %v780_v19, %v767_v24 }
 0x1f9   :  { %v788_v30 = vadd.f32 %v784_v21, %v774_v28 }
 0x1fa   :  { %v789_v31 = vmax.f32 %v787_v29, 0.0 }
 0x1fb   :  { %v790_v32 = vmax.f32 %v788_v30, 0.0 }
 0x1fd   :  { %v889_v26 = vpack.c.bf16 %v790_v32, %v789_v31 }
 0x1ff   :  { %799 = vst [vmem:[%s1332_s5] sm:$0xff] %v889_v26 }

// kernel: condition_encoder.9
= control target key start
LH: loop header
LB: loop body
LE: loop exit
PB: predicated region body
PF: predicated region fallthrough
CT: control target
= control target key end

     0   :  { %vm295_vm0 = vcmask 1041409   ;;  %vm297_vm1 = vcmask 1042434   ;;  %vm299_vm2 = vcmask 1043459   ;;  %vm301_vm3 = vcmask 1044484   ;;  %s4480_s1 = inlined_call_operand.vmem [shape: bf16[512,512], index: 1, kind: input, shape index: {}]   ;;  %s4481_s0 = inlined_call_operand.vmem [shape: f32[8,8,512], index: 0, kind: input, shape index: {}]   ;;  %s4482_s3 = inlined_call_operand.vmem [shape: bf16[512,512], index: 3, kind: input, shape index: {}]   ;;  %s4483_s5 = inlined_call_operand.vmem [shape: bf16[512,128], index: 5, kind: input, shape index: {}]   ;;  %s4484_s2 = inlined_call_operand.vmem [shape: f32[1,512], index: 2, kind: input, shape index: {}]   ;;  %s4485_s4 = inlined_call_operand.vmem [shape: f32[1,512], index: 4, kind: input, shape index: {}]   ;;  %s4486_s6 = inlined_call_operand.vmem [shape: f32[1,128], index: 6, kind: input, shape index: {}]   ;;  %s4487_s7 = inlined_call_operand.vmem [shape: f32[8,128], index: 7, kind: output, shape index: {}]  }
   0x1   :  { %v2974_v0 = vld [vmem:[%s4480_s1 + $0x4] ss:$16 sps:$4 sm:$0xff]   ;;  %v2976_v1 = vld [vmem:[%s4480_s1 + $0xc] ss:$16 sps:$4 sm:$0xff]   ;;  %v2978_v2 = vld [vmem:[%s4480_s1] ss:$16 sps:$4 sm:$0xff]  }
   0x2   :  { %1143 = vmatprep.subr.bf16.mxu0 %v2974_v0  ;;  %v2979_v3 = vld [vmem:[%s4480_s1 + $0x8] ss:$16 sps:$4 sm:$0xff]   ;;  %1225 = vmatprep.subr.bf16.mxu1 %v2976_v1  ;;  %v2980_v4 = vld [vmem:[%s4480_s1 + $0x24] ss:$16 sps:$4 sm:$0xff]   ;;  %v2982_v5 = vld [vmem:[%s4480_s1 + $0x2c] ss:$16 sps:$4 sm:$0xff]  }
   0x3   :  { %1144 = vmatpush1.bf16.msra.mxu0 %v2978_v2  ;;  %1226 = vmatpush1.bf16.msra.mxu1 %v2979_v3  ;;  %v2984_v6 = vld [vmem:[%s4480_s1 + $0x20] ss:$16 sps:$4 sm:$0xff]   ;;  %v2985_v7 = vld [vmem:[%s4480_s1 + $0x28] ss:$16 sps:$4 sm:$0xff]   ;;  %v2986_v8 = vld [vmem:[%s4480_s1 + $0x44] ss:$16 sps:$4 sm:$0xff]  }
   0x4   :  { %1145 = vmatprep.subr.bf16.mxu0 %v2980_v4  ;;  %1227 = vmatprep.subr.bf16.mxu1 %v2982_v5  ;;  %v2988_v9 = vld [vmem:[%s4480_s1 + $0x4c] ss:$16 sps:$4 sm:$0xff]   ;;  %v2990_v10 = vld [vmem:[%s4480_s1 + $0x40] ss:$16 sps:$4 sm:$0xff]   ;;  %v2991_v11 = vld [vmem:[%s4480_s1 + $0x48] ss:$16 sps:$4 sm:$0xff]  }
   0x5   :  { %v2992_v12 = vld [vmem:[%s4480_s1 + $0x64] ss:$16 sps:$4 sm:$0xff]   ;;  %v2994_v13 = vld [vmem:[%s4480_s1 + $0x6c] ss:$16 sps:$4 sm:$0xff]   ;;  %v2996_v14 = vld [vmem:[%s4480_s1 + $0x60] ss:$16 sps:$4 sm:$0xff]  }
   0x6   :  { %v2997_v15 = vld [vmem:[%s4480_s1 + $0x68] ss:$16 sps:$4 sm:$0xff]   ;;  %v2998_v16 = vld [vmem:[%s4480_s1 + $0x84] ss:$16 sps:$4 sm:$0xff]   ;;  %v3000_v17 = vld [vmem:[%s4480_s1 + $0x8c] ss:$16 sps:$4 sm:$0xff]  }
   0x7   :  { %1146 = vmatpush1.bf16.msra.mxu0 %v2984_v6  ;;  %1228 = vmatpush1.bf16.msra.mxu1 %v2985_v7  ;;  %v3002_v18 = vld [vmem:[%s4480_s1 + $0x80] ss:$16 sps:$4 sm:$0xff]   ;;  %v3003_v19 = vld [vmem:[%s4480_s1 + $0x88] ss:$16 sps:$4 sm:$0xff]   ;;  %v3004_v20 = vld [vmem:[%s4480_s1 + $0xa4] ss:$16 sps:$4 sm:$0xff]  }
   0x8   :  { %1147 = vmatprep.subr.bf16.mxu0 %v2986_v8  ;;  %1229 = vmatprep.subr.bf16.mxu1 %v2988_v9  ;;  %v3006_v21 = vld [vmem:[%s4480_s1 + $0xac] ss:$16 sps:$4 sm:$0xff]   ;;  %v3008_v22 = vld [vmem:[%s4480_s1 + $0xa0] ss:$16 sps:$4 sm:$0xff]   ;;  %v3009_v23 = vld [vmem:[%s4480_s1 + $0xa8] ss:$16 sps:$4 sm:$0xff]  }
   0x9   :  { %v3010_v24 = vld [vmem:[%s4480_s1 + $0xc4] ss:$16 sps:$4 sm:$0xff]   ;;  %v3012_v25 = vld [vmem:[%s4480_s1 + $0xcc] ss:$16 sps:$4 sm:$0xff]   ;;  %v3014_v26 = vld [vmem:[%s4480_s1 + $0xc0] ss:$16 sps:$4 sm:$0xff]  }
   0xa   :  { %v3015_v27 = vld [vmem:[%s4480_s1 + $0xc8] ss:$16 sps:$4 sm:$0xff]   ;;  %v3016_v28 = vld [vmem:[%s4480_s1 + $0xe4] ss:$16 sps:$4 sm:$0xff]   ;;  %v3018_v29 = vld [vmem:[%s4480_s1 + $0xec] ss:$16 sps:$4 sm:$0xff]  }
   0xb   :  { %1148 = vmatpush1.bf16.msra.mxu0 %v2990_v10  ;;  %1230 = vmatpush1.bf16.msra.mxu1 %v2991_v11  ;;  %v3020_v30 = vld [vmem:[%s4480_s1 + $0xe0] ss:$16 sps:$4 sm:$0xff]   ;;  %v3021_v31 = vld [vmem:[%s4480_s1 + $0xe8] ss:$16 sps:$4 sm:$0xff]   ;;  %v3022_v32 = vld [vmem:[%s4480_s1 + $0x104] ss:$16 sps:$4 sm:$0xff]  }
   0xc   :  { %1149 = vmatprep.subr.bf16.mxu0 %v2992_v12  ;;  %1231 = vmatprep.subr.bf16.mxu1 %v2994_v13  ;;  %v3024_v33 = vld [vmem:[%s4480_s1 + $0x10c] ss:$16 sps:$4 sm:$0xff]   ;;  %v3026_v34 = vld [vmem:[%s4480_s1 + $0x100] ss:$16 sps:$4 sm:$0xff]   ;;  %v3027_v35 = vld [vmem:[%s4480_s1 + $0x108] ss:$16 sps:$4 sm:$0xff]  }
   0xd   :  { %v3028_v36 = vld [vmem:[%s4480_s1 + $0x124] ss:$16 sps:$4 sm:$0xff]   ;;  %v3030_v37 = vld [vmem:[%s4480_s1 + $0x12c] ss:$16 sps:$4 sm:$0xff]   ;;  %v3032_v38 = vld [vmem:[%s4480_s1 + $0x120] ss:$16 sps:$4 sm:$0xff]  }
   0xe   :  { %v3033_v39 = vld [vmem:[%s4480_s1 + $0x128] ss:$16 sps:$4 sm:$0xff]   ;;  %v3034_v40 = vld [vmem:[%s4480_s1 + $0x144] ss:$16 sps:$4 sm:$0xff]   ;;  %v3036_v41 = vld [vmem:[%s4480_s1 + $0x14c] ss:$16 sps:$4 sm:$0xff]  }
   0xf   :  { %1150 = vmatpush1.bf16.msra.mxu0 %v2996_v14  ;;  %1232 = vmatpush1.bf16.msra.mxu1 %v2997_v15  ;;  %v3038_v42 = vld [vmem:[%s4480_s1 + $0x140] ss:$16 sps:$4 sm:$0xff]   ;;  %v3039_v43 = vld [vmem:[%s4480_s1 + $0x148] ss:$16 sps:$4 sm:$0xff]   ;;  %v3040_v44 = vld [vmem:[%s4480_s1 + $0x164] ss:$16 sps:$4 sm:$0xff]  }
  0x10   :  { %1151 = vmatprep.subr.bf16.mxu0 %v2998_v16  ;;  %1233 = vmatprep.subr.bf16.mxu1 %v3000_v17  ;;  %v3042_v45 = vld [vmem:[%s4480_s1 + $0x16c] ss:$16 sps:$4 sm:$0xff]   ;;  %v3044_v46 = vld [vmem:[%s4480_s1 + $0x160] ss:$16 sps:$4 sm:$0xff]   ;;  %v3045_v47 = vld [vmem:[%s4480_s1 + $0x168] ss:$16 sps:$4 sm:$0xff]  }
  0x11   :  { %v40_v48 = vld [vmem:[%s4481_s0 + $0x8] sm:$0xff]  ;;  %v3046_v49 = vld [vmem:[%s4480_s1 + $0x184] ss:$16 sps:$4 sm:$0xff]   ;;  %v3050_v6 = vld [vmem:[%s4480_s1 + $0x180] ss:$16 sps:$4 sm:$0xff]   ;;  %vm303_vm4 = vcmask 1045509  }
  0x12   :  { %v3048_v50 = vld [vmem:[%s4480_s1 + $0x18c] ss:$16 sps:$4 sm:$0xff]   ;;  %v77_v54 = vrot.slane %v40_v48, 4  ;;  %v3051_v7 = vld [vmem:[%s4480_s1 + $0x188] ss:$16 sps:$4 sm:$0xff]   ;;  %vm305_vm5 = vcmask 1046534  }
  0x13   :  { %1152 = vmatpush1.bf16.msra.mxu0 %v3002_v18  ;;  %1234 = vmatpush1.bf16.msra.mxu1 %v3003_v19  ;;  %v44_v51 = vld [vmem:[%s4481_s0 + $0x28] sm:$0xff]  ;;  %v3052_v12 = vld [vmem:[%s4480_s1 + $0x1a4] ss:$16 sps:$4 sm:$0xff]   ;;  %vm307_vm6 = vcmask 1047559  }
  0x14   :  { %1153 = vmatprep.subr.bf16.mxu0 %v3004_v20  ;;  %1235 = vmatprep.subr.bf16.mxu1 %v3006_v21  ;;  %v48_v52 = vld [vmem:[%s4481_s0 + $0x48] sm:$0xff]  ;;  %v101_v58 = vrot.slane %v44_v51, 4  ;;  %v78_v62 = vmax.f32 %v40_v48, %v77_v54 }
  0x15   :  { %v52_v53 = vld [vmem:[%s4481_s0 + $0x68] sm:$0xff]  ;;  %v125_v59 = vrot.slane %v48_v52, 4 }
  0x16   :  { %v56_v55 = vld [vmem:[%s4481_s0 + $0x88] sm:$0xff]  ;;  %v149_v60 = vrot.slane %v52_v53, 4  ;;  %v102_v2 = vmax.f32 %v44_v51, %v101_v58  ;;  %v79_v8 = vrot.slane %v78_v62, 2  ;;  %v3062_v51 = vld [vmem:[%s4480_s1 + $0x1c0] ss:$16 sps:$4 sm:$0xff]  }
  0x17   :  { %1154 = vmatpush1.bf16.msra.mxu0 %v3008_v22  ;;  %1236 = vmatpush1.bf16.msra.mxu1 %v3009_v23  ;;  %v60_v56 = vld [vmem:[%s4481_s0 + $0xa8] sm:$0xff]  ;;  %v173_v63 = vrot.slane %v56_v55, 4  ;;  %v126_v3 = vmax.f32 %v48_v52, %v125_v59  ;;  %v3056_v22 = vld [vmem:[%s4480_s1 + $0x1a0] ss:$16 sps:$4 sm:$0xff]  }
  0x18   :  { %1155 = vmatprep.subr.bf16.mxu0 %v3010_v24  ;;  %1237 = vmatprep.subr.bf16.mxu1 %v3012_v25  ;;  %v64_v57 = vld [vmem:[%s4481_s0 + $0xc8] sm:$0xff]  ;;  %v197_v0 = vrot.slane %v60_v56, 4  ;;  %v150_v4 = vmax.f32 %v52_v53, %v149_v60  ;;  %v103_v13 = vrot.slane %v102_v2, 2  ;;  %v80_v18 = vmax.f32 %v78_v62, %v79_v8  ;;  %v3064_v62 = vld [vmem:[%s4480_s1 + $0x1e4] ss:$16 sps:$4 sm:$0xff]  }
  0x19   :  { %v68_v61 = vld [vmem:[%s4481_s0 + $0xe8] sm:$0xff]  ;;  %v221_v1 = vrot.slane %v64_v57, 4  ;;  %v174_v9 = vmax.f32 %v56_v55, %v173_v63  ;;  %v127_v14 = vrot.slane %v126_v3, 2  ;;  %v59_v55 = vld [vmem:[%s4481_s0 + $0xa0] sm:$0xff] }
  0x1a   :  { %v245_v5 = vrot.slane %v68_v61, 4  ;;  %v198_v10 = vmax.f32 %v60_v56, %v197_v0  ;;  %v151_v15 = vrot.slane %v150_v4, 2  ;;  %v3054_v17 = vld [vmem:[%s4480_s1 + $0x1ac] ss:$16 sps:$4 sm:$0xff]   ;;  %v3057_v23 = vld [vmem:[%s4480_s1 + $0x1a8] ss:$16 sps:$4 sm:$0xff]   ;;  %v104_v24 = vmax.f32 %v102_v2, %v103_v13 }
  0x1b   :  { %1156 = vmatpush1.bf16.msra.mxu0 %v3014_v26  ;;  %1238 = vmatpush1.bf16.msra.mxu1 %v3015_v27  ;;  %v222_v11 = vmax.f32 %v64_v57, %v221_v1  ;;  %v175_v19 = vrot.slane %v174_v9, 2  ;;  %v128_v25 = vmax.f32 %v126_v3, %v127_v14  ;;  %v3063_v57 = vld [vmem:[%s4480_s1 + $0x1c8] ss:$16 sps:$4 sm:$0xff]   ;;  %v3066_v63 = vld [vmem:[%s4480_s1 + $0x1ec] ss:$16 sps:$4 sm:$0xff]   ;;  %v191_v8 = vrot.slane %v59_v55, 4 }
  0x1c   :  { %1157 = vmatprep.subr.bf16.mxu0 %v3016_v28  ;;  %1239 = vmatprep.subr.bf16.mxu1 %v3018_v29  ;;  %v246_v16 = vmax.f32 %v68_v61, %v245_v5  ;;  %v199_v20 = vrot.slane %v198_v10, 2  ;;  %v152_v26 = vmax.f32 %v150_v4, %v151_v15  ;;  %v3058_v28 = vld [vmem:[%s4480_s1 + $0x1c4] ss:$16 sps:$4 sm:$0xff]   ;;  %v3060_v29 = vld [vmem:[%s4480_s1 + $0x1cc] ss:$16 sps:$4 sm:$0xff]  }
  0x1d   :  { %v223_v21 = vrot.slane %v222_v11, 2  ;;  %v3068_v4 = vld [vmem:[%s4480_s1 + $0x1e0] ss:$16 sps:$4 sm:$0xff]   ;;  %v3072_v15 = vld [vmem:[%s4480_s1 + $0x204] ss:$16 sps:$4 sm:$0xff]  }
  0x1e   :  { %v247_v27 = vrot.slane %v246_v16, 2 }
  0x1f   :  { %1158 = vmatpush1.bf16.msra.mxu0 %v3020_v30  ;;  %1240 = vmatpush1.bf16.msra.mxu1 %v3021_v31  ;;  %v81_v30 = vrot.slane %v80_v18, 1  ;;  %v176_v31 = vmax.f32 %v174_v9, %v175_v19  ;;  %v3069_v9 = vld [vmem:[%s4480_s1 + $0x1e8] ss:$16 sps:$4 sm:$0xff]   ;;  %v192_v19 = vmax.f32 %v59_v55, %v191_v8  ;;  %v3076_v8 = vld [vmem:[%s4480_s1 + $0x220] ss:$16 sps:$4 sm:$0xff]  }
  0x20   :  { %1159 = vmatprep.subr.bf16.mxu0 %v3022_v32  ;;  %1241 = vmatprep.subr.bf16.mxu1 %v3024_v33  ;;  %v200_v32 = vmax.f32 %v198_v10, %v199_v20  ;;  %v224_v33 = vmax.f32 %v222_v11, %v223_v21  ;;  %v63_v21 = vld [vmem:[%s4481_s0 + $0xc0] sm:$0xff] }
  0x23   :  { %1160 = vmatpush1.bf16.msra.mxu0 %v3026_v34  ;;  %1242 = vmatpush1.bf16.msra.mxu1 %v3027_v35  ;;  %v39_v34 = vld [vmem:[%s4481_s0] sm:$0xff]  ;;  %v105_v35 = vrot.slane %v104_v24, 1 }
  0x24   :  { %1161 = vmatprep.subr.bf16.mxu0 %v3028_v36  ;;  %1243 = vmatprep.subr.bf16.mxu1 %v3030_v37  ;;  %v129_v36 = vrot.slane %v128_v25, 1  ;;  %v153_v37 = vrot.slane %v152_v26, 1  ;;  %v71_v56 = vrot.slane %v39_v34, 4 }
  0x26   :  { %v72_v1 = vmax.f32 %v39_v34, %v71_v56 }
  0x27   :  { %1162 = vmatpush1.bf16.msra.mxu0 %v3032_v38  ;;  %1244 = vmatpush1.bf16.msra.mxu1 %v3033_v39  ;;  %v248_v38 = vmax.f32 %v246_v16, %v247_v27  ;;  %v82_v39 = vmax.f32 %v80_v18, %v81_v30  ;;  %v3075_v16 = vld [vmem:[%s4480_s1 + $0x20c] ss:$16 sps:$4 sm:$0xff]  }
  0x28   :  { %1163 = vmatprep.subr.bf16.mxu0 %v3034_v40  ;;  %1245 = vmatprep.subr.bf16.mxu1 %v3036_v41  ;;  %v177_v40 = vrot.slane %v176_v31, 1  ;;  %v201_v41 = vrot.slane %v200_v32, 1  ;;  %v73_v11 = vrot.slane %v72_v1, 2 }
  0x29   :  { %v249_v48 = vrot.slane %v248_v38, 1 }
  0x2a   :  { %v178_v52 = vmax.f32 %v176_v31, %v177_v40  ;;  %v202_v53 = vmax.f32 %v200_v32, %v201_v41 }
  0x2b   :  { %1164 = vmatpush1.bf16.msra.mxu0 %v3038_v42  ;;  %1246 = vmatpush1.bf16.msra.mxu1 %v3039_v43  ;;  %v225_v42 = vrot.slane %v224_v33, 1  ;;  %v43_v43 = vld [vmem:[%s4481_s0 + $0x20] sm:$0xff]  ;;  %v250_v58 = vmax.f32 %v248_v38, %v249_v48 }
  0x2c   :  { %1165 = vmatprep.subr.bf16.mxu0 %v3040_v44  ;;  %1247 = vmatprep.subr.bf16.mxu1 %v3042_v45  ;;  %v47_v44 = vld [vmem:[%s4481_s0 + $0x40] sm:$0xff]  ;;  %v106_v45 = vmax.f32 %v104_v24, %v105_v35  ;;  %v95_v60 = vrot.slane %v43_v43, 4 }
  0x2d   :  { %v226_v54 = vmax.f32 %v224_v33, %v225_v42  ;;  %v119_v61 = vrot.slane %v47_v44, 4  ;;  %v67_v33 = vld [vmem:[%s4481_s0 + $0xe0] sm:$0xff] }
  0x2e   :  { %v309_v59 = vsel %vm295_vm0, %v106_v45, %v82_v39  ;;  %v239_v48 = vrot.slane %v67_v33, 4 }
  0x2f   :  { %1166 = vmatpush1.bf16.msra.mxu0 %v3044_v46  ;;  %1248 = vmatpush1.bf16.msra.mxu1 %v3045_v47  ;;  %v130_v46 = vmax.f32 %v128_v25, %v129_v36  ;;  %v154_v47 = vmax.f32 %v152_v26, %v153_v37  ;;  %v215_v37 = vrot.slane %v63_v21, 4 }
  0x30   :  { %1167 = vmatprep.subr.bf16.mxu0 %v3046_v49  ;;  %1249 = vmatprep.subr.bf16.mxu1 %v3048_v50  ;;  %v51_v49 = vld [vmem:[%s4481_s0 + $0x60] sm:$0xff] }
  0x31   :  { %v55_v50 = vld [vmem:[%s4481_s0 + $0x80] sm:$0xff]  ;;  %v310_v0 = vsel %vm297_vm1, %v130_v46, %v309_v59  ;;  %v143_v2 = vrot.slane %v51_v49, 4  ;;  %v216_v45 = vmax.f32 %v63_v21, %v215_v37  ;;  %v46_v21 = vld [vmem:[%s4481_s0 + $0x38] sm:$0xff] }
  0x32   :  { %v167_v3 = vrot.slane %v55_v50, 4  ;;  %v311_v5 = vsel %vm299_vm2, %v154_v47, %v310_v0 }
  0x33   :  { %1168 = vmatpush1.bf16.msra.mxu0 %v3050_v6  ;;  %1250 = vmatpush1.bf16.msra.mxu1 %v3051_v7  ;;  %v96_v6 = vmax.f32 %v43_v43, %v95_v60  ;;  %v120_v7 = vmax.f32 %v47_v44, %v119_v61  ;;  %v312_v10 = vsel %vm301_vm3, %v178_v52, %v311_v5  ;;  %v3078_v5 = vld [vmem:[%s4480_s1 + $0x224] ss:$16 sps:$4 sm:$0xff]  }
  0x34   :  { %1169 = vmatprep.subr.bf16.mxu0 %v3052_v12  ;;  %1251 = vmatprep.subr.bf16.mxu1 %v3054_v17  ;;  %v144_v12 = vmax.f32 %v51_v49, %v143_v2  ;;  %v168_v13 = vmax.f32 %v55_v50, %v167_v3  ;;  %v313_v14 = vsel %vm303_vm4, %v202_v53, %v312_v10  ;;  %v217_v49 = vrot.slane %v216_v45, 2  ;;  %v3070_v2 = vld [vmem:[%s4480_s1 + $0x200] ss:$16 sps:$4 sm:$0xff]   ;;  %v3073_v3 = vld [vmem:[%s4480_s1 + $0x208] ss:$16 sps:$4 sm:$0xff]  }
  0x35   :  { %v97_v17 = vrot.slane %v96_v6, 2  ;;  %v121_v18 = vrot.slane %v120_v7, 2  ;;  %v314_v20 = vsel %vm305_vm5, %v226_v54, %v313_v14  ;;  %v240_v52 = vmax.f32 %v67_v33, %v239_v48  ;;  %v3084_v10 = vld [vmem:[%s4480_s1 + $0x244] ss:$16 sps:$4 sm:$0xff]  }
  0x36   :  { %v169_v24 = vrot.slane %v168_v13, 2  ;;  %v315_v25 = vsel %vm307_vm6, %v250_v58, %v314_v20  ;;  %v218_v54 = vmax.f32 %v216_v45, %v217_v49  ;;  %v3090_v14 = vld [vmem:[%s4480_s1 + $0x264] ss:$16 sps:$4 sm:$0xff]   ;;  %v42_v20 = vld [vmem:[%s4481_s0 + $0x18] sm:$0xff] }
  0x37   :  { %1170 = vmatpush1.bf16.msra.mxu0 %v3056_v22  ;;  %1252 = vmatpush1.bf16.msra.mxu1 %v3057_v23  ;;  %v74_v22 = vmax.f32 %v72_v1, %v73_v11  ;;  %v145_v23 = vrot.slane %v144_v12, 2  ;;  %v98_v26 = vmax.f32 %v96_v6, %v97_v17  ;;  %v122_v27 = vmax.f32 %v120_v7, %v121_v18  ;;  %v3081_v7 = vld [vmem:[%s4480_s1 + $0x22c] ss:$16 sps:$4 sm:$0xff]   ;;  %v3091_v17 = vld [vmem:[%s4480_s1 + $0x268] ss:$16 sps:$4 sm:$0xff]  }
  0x38   :  { %1171 = vmatprep.subr.bf16.mxu0 %v3058_v28  ;;  %1253 = vmatprep.subr.bf16.mxu1 %v3060_v29  ;;  %v193_v28 = vrot.slane %v192_v19, 2  ;;  %v3680_v29 = vmax.f32 %v315_v25, -3.4028235e+38  ;;  %v170_v32 = vmax.f32 %v168_v13, %v169_v24  ;;  %v241_v56 = vrot.slane %v240_v52, 2  ;;  %v3087_v11 = vld [vmem:[%s4480_s1 + $0x24c] ss:$16 sps:$4 sm:$0xff]  }
  0x39   :  { %v75_v30 = vrot.slane %v74_v22, 1  ;;  %v146_v31 = vmax.f32 %v144_v12, %v145_v23  ;;  %v99_v34 = vrot.slane %v98_v26, 1  ;;  %v123_v35 = vrot.slane %v122_v27, 1  ;;  %v3082_v12 = vld [vmem:[%s4480_s1 + $0x240] ss:$16 sps:$4 sm:$0xff]   ;;  %v54_v23 = vld [vmem:[%s4481_s0 + $0x78] sm:$0xff] }
  0x3a   :  { %v194_v36 = vmax.f32 %v192_v19, %v193_v28  ;;  %v350_v38 = vpack.c.bf16 %v3680_v29, %v3680_v29  ;;  %v171_v41 = vrot.slane %v170_v32, 1  ;;  %v219_v58 = vrot.slane %v218_v54, 1  ;;  %v3085_v13 = vld [vmem:[%s4480_s1 + $0x248] ss:$16 sps:$4 sm:$0xff]   ;;  %v3096_v18 = vld [vmem:[%s4480_s1 + $0x284] ss:$16 sps:$4 sm:$0xff]  }
  0x3b   :  { %1172 = vmatpush1.bf16.msra.mxu0 %v3062_v51  ;;  %1254 = vmatpush1.bf16.msra.mxu1 %v3063_v57  ;;  %v76_v39 = vmax.f32 %v74_v22, %v75_v30  ;;  %v147_v40 = vrot.slane %v146_v31, 1  ;;  %v100_v42 = vmax.f32 %v98_v26, %v99_v34  ;;  %v124_v43 = vmax.f32 %v122_v27, %v123_v35  ;;  %v3099_v19 = vld [vmem:[%s4480_s1 + $0x28c] ss:$16 sps:$4 sm:$0xff]   ;;  %v3094_v35 = vld [vmem:[%s4480_s1 + $0x280] ss:$16 sps:$4 sm:$0xff]  }
  0x3c   :  { %1173 = vmatprep.subr.bf16.mxu0 %v3064_v62  ;;  %1255 = vmatprep.subr.bf16.mxu1 %v3066_v63  ;;  %v195_v44 = vrot.slane %v194_v36, 1  ;;  %v172_v47 = vmax.f32 %v170_v32, %v171_v41  ;;  %v242_v59 = vmax.f32 %v240_v52, %v241_v56  ;;  %v220_v61 = vmax.f32 %v218_v54, %v219_v58  ;;  %v50_v22 = vld [vmem:[%s4481_s0 + $0x58] sm:$0xff]  ;;  %v3102_v41 = vld [vmem:[%s4480_s1 + $0x2a4] ss:$16 sps:$4 sm:$0xff]  }
  0x3d   :  { %1175 = vmatprep.mubr.bf16.mxu0 %v350_v38  ;;  %1257 = vmatprep.mubr.bf16.mxu1 %v350_v38  ;;  %v148_v46 = vmax.f32 %v146_v31, %v147_v40  ;;  %v296_v50 = vsel %vm295_vm0, %v100_v42, %v76_v39  ;;  %v58_v24 = vld [vmem:[%s4481_s0 + $0x98] sm:$0xff]  ;;  %v89_v26 = vrot.slane %v42_v20, 4  ;;  %v113_v27 = vrot.slane %v46_v21, 4 }
  0x3e   :  { %v196_v51 = vmax.f32 %v194_v36, %v195_v44  ;;  %v298_v53 = vsel %vm297_vm1, %v124_v43, %v296_v50  ;;  %v243_v62 = vrot.slane %v242_v59, 1  ;;  %v62_v25 = vld [vmem:[%s4481_s0 + $0xb8] sm:$0xff]  ;;  %v137_v28 = vrot.slane %v50_v22, 4 }
  0x3f   :  { %1174 = vmatpush1.bf16.msra.mxu0 %v3068_v4  ;;  %1256 = vmatpush1.bf16.msra.mxu1 %v3069_v9  ;;  %v300_v55 = vsel %vm299_vm2, %v148_v46, %v298_v53  ;;  %v3079_v9 = vld [vmem:[%s4480_s1 + $0x228] ss:$16 sps:$4 sm:$0xff]   ;;  %v161_v32 = vrot.slane %v54_v23, 4  ;;  %v185_v33 = vrot.slane %v58_v24, 4  ;;  %v209_v34 = vrot.slane %v62_v25, 4 }
  0x40   :  { %1184 = vmatprep.subr.bf16.mxu0 %v3072_v15  ;;  %1266 = vmatprep.subr.bf16.mxu1 %v3075_v16  ;;  %v302_v57 = vsel %vm301_vm3, %v172_v47, %v300_v55  ;;  %v244_v0 = vmax.f32 %v242_v59, %v243_v62  ;;  %v3093_v15 = vld [vmem:[%s4480_s1 + $0x26c] ss:$16 sps:$4 sm:$0xff]   ;;  %v3088_v16 = vld [vmem:[%s4480_s1 + $0x260] ss:$16 sps:$4 sm:$0xff]   ;;  %v3097_v36 = vld [vmem:[%s4480_s1 + $0x288] ss:$16 sps:$4 sm:$0xff]   ;;  %v90_v37 = vmax.f32 %v42_v20, %v89_v26 }
  0x41   :  { %v304_v60 = vsel %vm303_vm4, %v196_v51, %v302_v57  ;;  %v66_v30 = vld [vmem:[%s4481_s0 + $0xd8] sm:$0xff]  ;;  %v114_v38 = vmax.f32 %v46_v21, %v113_v27  ;;  %v138_v39 = vmax.f32 %v50_v22, %v137_v28  ;;  %v162_v43 = vmax.f32 %v54_v23, %v161_v32  ;;  %v3100_v55 = vld [vmem:[%s4480_s1 + $0x2a0] ss:$16 sps:$4 sm:$0xff]  }
  0x42   :  { %v306_v63 = vsel %vm305_vm5, %v220_v61, %v304_v60  ;;  %v70_v31 = vld [vmem:[%s4481_s0 + $0xf8] sm:$0xff]  ;;  %v233_v40 = vrot.slane %v66_v30, 4  ;;  %v186_v44 = vmax.f32 %v58_v24, %v185_v33  ;;  %v210_v45 = vmax.f32 %v62_v25, %v209_v34  ;;  %v3108_v61 = vld [vmem:[%s4480_s1 + $0x2c4] ss:$16 sps:$4 sm:$0xff]  }
  0x43   :  { %v308_v1 = vsel %vm307_vm6, %v244_v0, %v306_v63  ;;  %v3105_v42 = vld [vmem:[%s4480_s1 + $0x2ac] ss:$16 sps:$4 sm:$0xff]   ;;  %v257_v46 = vrot.slane %v70_v31, 4  ;;  %v91_v47 = vrot.slane %v90_v37, 2  ;;  %v115_v48 = vrot.slane %v114_v38, 2  ;;  %v49_v21 = vld [vmem:[%s4481_s0 + $0x50] sm:$0xff] }
  0x44   :  { %v3700_v4 = vmax.f32 %v308_v1, -3.4028235e+38  ;;  %v139_v49 = vrot.slane %v138_v39, 2  ;;  %v234_v50 = vmax.f32 %v66_v30, %v233_v40  ;;  %v163_v51 = vrot.slane %v162_v43, 2  ;;  %v3103_v56 = vld [vmem:[%s4480_s1 + $0x2a8] ss:$16 sps:$4 sm:$0xff]  }
  0x45   :  { %v187_v52 = vrot.slane %v186_v44, 2  ;;  %v211_v53 = vrot.slane %v210_v45, 2  ;;  %v258_v54 = vmax.f32 %v70_v31, %v257_v46  ;;  %v92_v57 = vmax.f32 %v90_v37, %v91_v47  ;;  %v53_v22 = vld [vmem:[%s4481_s0 + $0x70] sm:$0xff]  ;;  %v3117_v23 = vld [vmem:[%s4480_s1 + $0x2ec] ss:$16 sps:$4 sm:$0xff]  }
  0x46   :  { %v349_v6 = vpack.c.bf16 %v3700_v4, %v3700_v4  ;;  %v116_v58 = vmax.f32 %v114_v38, %v115_v48  ;;  %v140_v59 = vmax.f32 %v138_v39, %v139_v49  ;;  %v235_v60 = vrot.slane %v234_v50, 2  ;;  %v57_v28 = vld [vmem:[%s4481_s0 + $0x90] sm:$0xff] }
  0x47   :  { %v164_v62 = vmax.f32 %v162_v43, %v163_v51  ;;  %v188_v63 = vmax.f32 %v186_v44, %v187_v52  ;;  %v212_v0 = vmax.f32 %v210_v45, %v211_v53  ;;  %v259_v1 = vrot.slane %v258_v54, 2  ;;  %v61_v32 = vld [vmem:[%s4481_s0 + $0xb0] sm:$0xff]  ;;  %v3115_v44 = vld [vmem:[%s4480_s1 + $0x2e8] ss:$16 sps:$4 sm:$0xff]  }
  0x48   :  { %1176 = vmatmul.mubr.bf16.vlgmr.msra.gmra.mrb[0].mxu0 %v349_v6  ;;  %1258 = vmatmul.mubr.bf16.vlgmr.msra.gmra.mrb[0].mxu1 %v349_v6  ;;  %v141_v6 = vrot.slane %v140_v59, 1  ;;  %v131_v37 = vrot.slane %v49_v21, 4  ;;  %v155_v38 = vrot.slane %v53_v22, 4  ;;  %v3112_v39 = vld [vmem:[%s4480_s1 + $0x2e0] ss:$16 sps:$4 sm:$0xff]   ;;  %v179_v43 = vrot.slane %v57_v28, 4 }
  0x49   :  { %1185 = vmatpush1.bf16.msra.mxu0 %v3070_v2  ;;  %1267 = vmatpush1.bf16.msra.mxu1 %v3073_v3  ;;  %v3111_v2 = vld [vmem:[%s4480_s1 + $0x2cc] ss:$16 sps:$4 sm:$0xff]   ;;  %v93_v3 = vrot.slane %v92_v57, 1  ;;  %v3120_v45 = vld [vmem:[%s4480_s1 + $0x304] ss:$16 sps:$4 sm:$0xff]   ;;  %v203_v49 = vrot.slane %v61_v32, 4 }
  0x4a   :  { %1186 = vmatprep.subr.bf16.mxu0 %v3078_v5  ;;  %1268 = vmatprep.subr.bf16.mxu1 %v3081_v7  ;;  %v117_v5 = vrot.slane %v116_v58, 1  ;;  %v236_v7 = vmax.f32 %v234_v50, %v235_v60  ;;  %v132_v47 = vmax.f32 %v49_v21, %v131_v37  ;;  %v156_v48 = vmax.f32 %v53_v22, %v155_v38  ;;  %v3123_v50 = vld [vmem:[%s4480_s1 + $0x30c] ss:$16 sps:$4 sm:$0xff]   ;;  %v3130_v37 = vld [vmem:[%s4480_s1 + $0x340] ss:$16 sps:$4 sm:$0xff]  }
  0x4b   :  { %v204_v60 = vmax.f32 %v61_v32, %v203_v49 }
  0x4c   :  { %v237_v20 = vrot.slane %v236_v7, 1 }
  0x4d   :  { %1187 = vmatpush1.bf16.msra.mxu0 %v3076_v8  ;;  %1269 = vmatpush1.bf16.msra.mxu1 %v3079_v9  ;;  %v3106_v8 = vld [vmem:[%s4480_s1 + $0x2c0] ss:$16 sps:$4 sm:$0xff]   ;;  %v3109_v9 = vld [vmem:[%s4480_s1 + $0x2c8] ss:$16 sps:$4 sm:$0xff]  }
  0x4e   :  { %1188 = vmatprep.subr.bf16.mxu0 %v3084_v10  ;;  %1270 = vmatprep.subr.bf16.mxu1 %v3087_v11  ;;  %v165_v10 = vrot.slane %v164_v62, 1  ;;  %v189_v11 = vrot.slane %v188_v63, 1  ;;  %v238_v30 = vmax.f32 %v236_v7, %v237_v20 }
  0x50   :  { %v166_v24 = vmax.f32 %v164_v62, %v165_v10  ;;  %v190_v25 = vmax.f32 %v188_v63, %v189_v11  ;;  %v3126_v62 = vld [vmem:[%s4480_s1 + $0x324] ss:$16 sps:$4 sm:$0xff]  }
  0x51   :  { %1189 = vmatpush1.bf16.msra.mxu0 %v3082_v12  ;;  %1271 = vmatpush1.bf16.msra.mxu1 %v3085_v13  ;;  %v213_v12 = vrot.slane %v212_v0, 1  ;;  %v260_v13 = vmax.f32 %v258_v54, %v259_v1  ;;  %v180_v54 = vmax.f32 %v57_v28, %v179_v43  ;;  %v3132_v28 = vld [vmem:[%s4480_s1 + $0x344] ss:$16 sps:$4 sm:$0xff]  }
  0x52   :  { %1190 = vmatprep.subr.bf16.mxu0 %v3090_v14  ;;  %1272 = vmatprep.subr.bf16.mxu1 %v3093_v15  ;;  %v41_v14 = vld [vmem:[%s4481_s0 + $0x10] sm:$0xff] }
  0x53   :  { %v45_v15 = vld [vmem:[%s4481_s0 + $0x30] sm:$0xff]  ;;  %v214_v26 = vmax.f32 %v212_v0, %v213_v12  ;;  %v261_v27 = vrot.slane %v260_v13, 1  ;;  %v83_v33 = vrot.slane %v41_v14, 4 }
  0x54   :  { %v107_v34 = vrot.slane %v45_v15, 4  ;;  %v3138_v43 = vld [vmem:[%s4480_s1 + $0x364] ss:$16 sps:$4 sm:$0xff]  }
  0x55   :  { %1191 = vmatpush1.bf16.msra.mxu0 %v3088_v16  ;;  %1273 = vmatpush1.bf16.msra.mxu1 %v3091_v17  ;;  %v3114_v16 = vld [vmem:[%s4480_s1 + $0x2e4] ss:$16 sps:$4 sm:$0xff]   ;;  %v94_v17 = vmax.f32 %v92_v57, %v93_v3  ;;  %v3129_v3 = vld [vmem:[%s4480_s1 + $0x32c] ss:$16 sps:$4 sm:$0xff]  }
  0x56   :  { %1192 = vmatprep.subr.bf16.mxu0 %v3096_v18  ;;  %1274 = vmatprep.subr.bf16.mxu1 %v3099_v19  ;;  %v118_v18 = vmax.f32 %v116_v58, %v117_v5  ;;  %v142_v19 = vmax.f32 %v140_v59, %v141_v6  ;;  %v65_v57 = vld [vmem:[%s4481_s0 + $0xd0] sm:$0xff]  ;;  %v133_v58 = vrot.slane %v132_v47, 2  ;;  %v157_v59 = vrot.slane %v156_v48, 2 }
  0x58   :  { %v323_v31 = vsel %vm295_vm0, %v118_v18, %v94_v17  ;;  %v134_v6 = vmax.f32 %v132_v47, %v133_v58  ;;  %v158_v7 = vmax.f32 %v156_v48, %v157_v59  ;;  %v3124_v18 = vld [vmem:[%s4480_s1 + $0x320] ss:$16 sps:$4 sm:$0xff]   ;;  %v3150_v59 = vld [vmem:[%s4480_s1 + $0x3a4] ss:$16 sps:$4 sm:$0xff]  }
  0x59   :  { %1193 = vmatpush1.bf16.msra.mxu0 %v3094_v35  ;;  %1275 = vmatpush1.bf16.msra.mxu1 %v3097_v36  ;;  %v262_v35 = vmax.f32 %v260_v13, %v261_v27  ;;  %v324_v36 = vsel %vm297_vm1, %v142_v19, %v323_v31  ;;  %v227_v13 = vrot.slane %v65_v57, 4  ;;  %v3136_v48 = vld [vmem:[%s4480_s1 + $0x360] ss:$16 sps:$4 sm:$0xff]  }
  0x5a   :  { %1194 = vmatprep.subr.bf16.mxu0 %v3102_v41  ;;  %1276 = vmatprep.subr.bf16.mxu1 %v3105_v42  ;;  %v325_v40 = vsel %vm299_vm2, %v166_v24, %v324_v36  ;;  %v84_v41 = vmax.f32 %v41_v14, %v83_v33  ;;  %v108_v42 = vmax.f32 %v45_v15, %v107_v34  ;;  %v135_v15 = vrot.slane %v134_v6, 1 }
  0x5b   :  { %v326_v46 = vsel %vm301_vm3, %v190_v25, %v325_v40  ;;  %v228_v22 = vmax.f32 %v65_v57, %v227_v13  ;;  %v3133_v40 = vld [vmem:[%s4480_s1 + $0x348] ss:$16 sps:$4 sm:$0xff]   ;;  %v3169_v13 = vld [vmem:[%s4482_s3 + $0x200] ss:$16 sps:$4 sm:$0xff]  }
  0x5c   :  { %v327_v51 = vsel %vm303_vm4, %v214_v26, %v326_v46  ;;  %v85_v52 = vrot.slane %v84_v41, 2  ;;  %v109_v53 = vrot.slane %v108_v42, 2  ;;  %v136_v24 = vmax.f32 %v134_v6, %v135_v15  ;;  %v3145_v57 = vld [vmem:[%s4480_s1 + $0x388] ss:$16 sps:$4 sm:$0xff]   ;;  %v3165_v6 = vld [vmem:[%s4480_s1 + $0x3ec] ss:$16 sps:$4 sm:$0xff]  }
  0x5d   :  { %1195 = vmatpush1.bf16.msra.mxu0 %v3100_v55  ;;  %1277 = vmatpush1.bf16.msra.mxu1 %v3103_v56  ;;  %v3118_v55 = vld [vmem:[%s4480_s1 + $0x300] ss:$16 sps:$4 sm:$0xff]   ;;  %v328_v56 = vsel %vm305_vm5, %v238_v30, %v327_v51  ;;  %v3135_v30 = vld [vmem:[%s4480_s1 + $0x34c] ss:$16 sps:$4 sm:$0xff]   ;;  %v229_v32 = vrot.slane %v228_v22, 2 }
  0x5e   :  { %1196 = vmatprep.subr.bf16.mxu0 %v3108_v61  ;;  %1278 = vmatprep.subr.bf16.mxu1 %v3111_v2  ;;  %v3121_v61 = vld [vmem:[%s4480_s1 + $0x308] ss:$16 sps:$4 sm:$0xff]   ;;  %v329_v63 = vsel %vm307_vm6, %v262_v35, %v328_v56  ;;  %v86_v0 = vmax.f32 %v84_v41, %v85_v52  ;;  %v110_v1 = vmax.f32 %v108_v42, %v109_v53  ;;  %v181_v2 = vrot.slane %v180_v54, 2  ;;  %v3144_v52 = vld [vmem:[%s4480_s1 + $0x384] ss:$16 sps:$4 sm:$0xff]  }
  0x5f   :  { %v3858_v5 = vmax.f32 %v329_v63, -3.4028235e+38  ;;  %v230_v38 = vmax.f32 %v228_v22, %v229_v32  ;;  %v3147_v53 = vld [vmem:[%s4480_s1 + $0x38c] ss:$16 sps:$4 sm:$0xff]   ;;  %v3142_v56 = vld [vmem:[%s4480_s1 + $0x380] ss:$16 sps:$4 sm:$0xff]  }
  0x60   :  { %v87_v10 = vrot.slane %v86_v0, 1  ;;  %v111_v11 = vrot.slane %v110_v1, 1  ;;  %v182_v12 = vmax.f32 %v180_v54, %v181_v2  ;;  %v3156_v63 = vld [vmem:[%s4480_s1 + $0x3c4] ss:$16 sps:$4 sm:$0xff]   ;;  %v3157_v2 = vld [vmem:[%s4480_s1 + $0x3c8] ss:$16 sps:$4 sm:$0xff]  }
  0x61   :  { %1197 = vmatpush1.bf16.msra.mxu0 %v3106_v8  ;;  %1279 = vmatpush1.bf16.msra.mxu1 %v3109_v9  ;;  %v205_v8 = vrot.slane %v204_v60, 2  ;;  %v69_v9 = vld [vmem:[%s4481_s0 + $0xf0] sm:$0xff]  ;;  %v352_v14 = vpack.c.bf16 %v3858_v5, %v3858_v5 }
  0x62   :  { %1198 = vmatprep.subr.bf16.mxu0 %v3114_v16  ;;  %1280 = vmatprep.subr.bf16.mxu1 %v3117_v23  ;;  %v159_v16 = vrot.slane %v158_v7, 1  ;;  %v88_v19 = vmax.f32 %v86_v0, %v87_v10  ;;  %v112_v20 = vmax.f32 %v110_v1, %v111_v11  ;;  %v183_v21 = vrot.slane %v182_v12, 1  ;;  %v3127_v23 = vld [vmem:[%s4480_s1 + $0x328] ss:$16 sps:$4 sm:$0xff]   ;;  %v3159_v0 = vld [vmem:[%s4480_s1 + $0x3cc] ss:$16 sps:$4 sm:$0xff]  }
  0x63   :  { %v206_v17 = vmax.f32 %v204_v60, %v205_v8  ;;  %v251_v27 = vrot.slane %v69_v9, 4  ;;  %1216 = vmatprep.mubr.bf16.mxu0 %v352_v14  ;;  %1298 = vmatprep.mubr.bf16.mxu1 %v352_v14  ;;  %v3153_v60 = vld [vmem:[%s4480_s1 + $0x3ac] ss:$16 sps:$4 sm:$0xff]   ;;  %v3154_v1 = vld [vmem:[%s4480_s1 + $0x3c0] ss:$16 sps:$4 sm:$0xff]  }
  0x64   :  { %v160_v25 = vmax.f32 %v158_v7, %v159_v16  ;;  %v184_v31 = vmax.f32 %v182_v12, %v183_v21  ;;  %v316_v33 = vsel %vm295_vm0, %v112_v20, %v88_v19  ;;  %v3160_v7 = vld [vmem:[%s4480_s1 + $0x3e0] ss:$16 sps:$4 sm:$0xff]   ;;  %v3163_v8 = vld [vmem:[%s4480_s1 + $0x3e8] ss:$16 sps:$4 sm:$0xff]   ;;  %v3168_v10 = vld [vmem:[%s4482_s3 + $0x4] ss:$16 sps:$4 sm:$0xff]  }
  0x65   :  { %1199 = vmatpush1.bf16.msra.mxu0 %v3112_v39  ;;  %1281 = vmatpush1.bf16.msra.mxu1 %v3115_v44  ;;  %v207_v26 = vrot.slane %v206_v17, 1  ;;  %v252_v35 = vmax.f32 %v69_v9, %v251_v27  ;;  %v317_v36 = vsel %vm297_vm1, %v136_v24, %v316_v33  ;;  %v3141_v44 = vld [vmem:[%s4480_s1 + $0x36c] ss:$16 sps:$4 sm:$0xff]   ;;  %v3171_v11 = vld [vmem:[%s4482_s3 + $0x204] ss:$16 sps:$4 sm:$0xff]  }
  0x66   :  { %1200 = vmatprep.subr.bf16.mxu0 %v3120_v45  ;;  %1282 = vmatprep.subr.bf16.mxu1 %v3123_v50  ;;  %v318_v39 = vsel %vm299_vm2, %v160_v25, %v317_v36  ;;  %v231_v45 = vrot.slane %v230_v38, 1  ;;  %v3139_v50 = vld [vmem:[%s4480_s1 + $0x368] ss:$16 sps:$4 sm:$0xff]   ;;  %v3166_v12 = vld [vmem:[%s4482_s3] ss:$16 sps:$4 sm:$0xff]  }
  0x67   :  { %v208_v34 = vmax.f32 %v206_v17, %v207_v26  ;;  %v253_v41 = vrot.slane %v252_v35, 2  ;;  %v319_v42 = vsel %vm301_vm3, %v184_v31, %v318_v39  ;;  %v3174_v15 = vld [vmem:[%s4482_s3 + $0x24] ss:$16 sps:$4 sm:$0xff]   ;;  %v3172_v17 = vld [vmem:[%s4482_s3 + $0x20] ss:$16 sps:$4 sm:$0xff]  }
  0x68   :  { %v232_v49 = vmax.f32 %v230_v38, %v231_v45  ;;  %v3177_v16 = vld [vmem:[%s4482_s3 + $0x224] ss:$16 sps:$4 sm:$0xff]   ;;  %v3178_v21 = vld [vmem:[%s4482_s3 + $0x40] ss:$16 sps:$4 sm:$0xff]  }
  0x69   :  { %1201 = vmatpush1.bf16.msra.mxu0 %v3118_v55  ;;  %1283 = vmatpush1.bf16.msra.mxu1 %v3121_v61  ;;  %v320_v46 = vsel %vm303_vm4, %v208_v34, %v319_v42  ;;  %v254_v47 = vmax.f32 %v252_v35, %v253_v41  ;;  %v3148_v61 = vld [vmem:[%s4480_s1 + $0x3a0] ss:$16 sps:$4 sm:$0xff]   ;;  %v3180_v19 = vld [vmem:[%s4482_s3 + $0x44] ss:$16 sps:$4 sm:$0xff]  }
  0x6a   :  { %1202 = vmatprep.subr.bf16.mxu0 %v3126_v62  ;;  %1284 = vmatprep.subr.bf16.mxu1 %v3129_v3  ;;  %v321_v54 = vsel %vm305_vm5, %v232_v49, %v320_v46  ;;  %v3151_v62 = vld [vmem:[%s4480_s1 + $0x3a8] ss:$16 sps:$4 sm:$0xff]   ;;  %v3162_v3 = vld [vmem:[%s4480_s1 + $0x3e4] ss:$16 sps:$4 sm:$0xff]   ;;  %v3181_v22 = vld [vmem:[%s4482_s3 + $0x240] ss:$16 sps:$4 sm:$0xff]  }
  0x6b   :  { %v255_v51 = vrot.slane %v254_v47, 1  ;;  %v3183_v20 = vld [vmem:[%s4482_s3 + $0x244] ss:$16 sps:$4 sm:$0xff]   ;;  %v3184_v25 = vld [vmem:[%s4482_s3 + $0x60] ss:$16 sps:$4 sm:$0xff]  }
  0x6c   :  { %v3189_v24 = vld [vmem:[%s4482_s3 + $0x264] ss:$16 sps:$4 sm:$0xff]   ;;  %v3187_v26 = vld [vmem:[%s4482_s3 + $0x260] ss:$16 sps:$4 sm:$0xff]  }
  0x6d   :  { %1203 = vmatpush1.bf16.msra.mxu0 %v3124_v18  ;;  %1285 = vmatpush1.bf16.msra.mxu1 %v3127_v23  ;;  %v256_v55 = vmax.f32 %v254_v47, %v255_v51  ;;  %v3175_v18 = vld [vmem:[%s4482_s3 + $0x220] ss:$16 sps:$4 sm:$0xff]   ;;  %v3186_v23 = vld [vmem:[%s4482_s3 + $0x64] ss:$16 sps:$4 sm:$0xff]  }
  0x6e   :  { %1204 = vmatprep.subr.bf16.mxu0 %v3132_v28  ;;  %1286 = vmatprep.subr.bf16.mxu1 %v3135_v30  ;;  %v3192_v27 = vld [vmem:[%s4482_s3 + $0x84] ss:$16 sps:$4 sm:$0xff]   ;;  %v3190_v30 = vld [vmem:[%s4482_s3 + $0x80] ss:$16 sps:$4 sm:$0xff]  }
  0x6f   :  { %v322_v58 = vsel %vm307_vm6, %v256_v55, %v321_v54  ;;  %v3195_v28 = vld [vmem:[%s4482_s3 + $0x284] ss:$16 sps:$4 sm:$0xff]   ;;  %v3193_v31 = vld [vmem:[%s4482_s3 + $0x280] ss:$16 sps:$4 sm:$0xff]  }
  0x70   :  { %v3950_v9 = vmax.f32 %v322_v58, -3.4028235e+38  ;;  %v3198_v32 = vld [vmem:[%s4482_s3 + $0xa4] ss:$16 sps:$4 sm:$0xff]   ;;  %v3196_v34 = vld [vmem:[%s4482_s3 + $0xa0] ss:$16 sps:$4 sm:$0xff]  }
  0x71   :  { %1205 = vmatpush1.bf16.msra.mxu0 %v3130_v37  ;;  %1287 = vmatpush1.bf16.msra.mxu1 %v3133_v40  ;;  %v3201_v33 = vld [vmem:[%s4482_s3 + $0x2a4] ss:$16 sps:$4 sm:$0xff]   ;;  %v3199_v35 = vld [vmem:[%s4482_s3 + $0x2a0] ss:$16 sps:$4 sm:$0xff]  }
  0x72   :  { %1206 = vmatprep.subr.bf16.mxu0 %v3138_v43  ;;  %1288 = vmatprep.subr.bf16.mxu1 %v3141_v44  ;;  %v351_v14 = vpack.c.bf16 %v3950_v9, %v3950_v9  ;;  %v3204_v36 = vld [vmem:[%s4482_s3 + $0xc4] ss:$16 sps:$4 sm:$0xff]   ;;  %v3202_v38 = vld [vmem:[%s4482_s3 + $0xc0] ss:$16 sps:$4 sm:$0xff]  }
  0x73   :  { %v3207_v37 = vld [vmem:[%s4482_s3 + $0x2c4] ss:$16 sps:$4 sm:$0xff]   ;;  %v3205_v39 = vld [vmem:[%s4482_s3 + $0x2c0] ss:$16 sps:$4 sm:$0xff]  }
  0x74   :  { %v3210_v40 = vld [vmem:[%s4482_s3 + $0xe4] ss:$16 sps:$4 sm:$0xff]   ;;  %v3208_v42 = vld [vmem:[%s4482_s3 + $0xe0] ss:$16 sps:$4 sm:$0xff]  }
  0x75   :  { %1207 = vmatpush1.bf16.msra.mxu0 %v3136_v48  ;;  %1289 = vmatpush1.bf16.msra.mxu1 %v3139_v50  ;;  %v3213_v41 = vld [vmem:[%s4482_s3 + $0x2e4] ss:$16 sps:$4 sm:$0xff]   ;;  %v3211_v43 = vld [vmem:[%s4482_s3 + $0x2e0] ss:$16 sps:$4 sm:$0xff]  }
  0x76   :  { %1208 = vmatprep.subr.bf16.mxu0 %v3144_v52  ;;  %1290 = vmatprep.subr.bf16.mxu1 %v3147_v53  ;;  %v3216_v44 = vld [vmem:[%s4482_s3 + $0x104] ss:$16 sps:$4 sm:$0xff]   ;;  %v3214_v46 = vld [vmem:[%s4482_s3 + $0x100] ss:$16 sps:$4 sm:$0xff]  }
  0x77   :  { %v3219_v45 = vld [vmem:[%s4482_s3 + $0x304] ss:$16 sps:$4 sm:$0xff]   ;;  %v3217_v47 = vld [vmem:[%s4482_s3 + $0x300] ss:$16 sps:$4 sm:$0xff]  }
  0x78   :  { %v3222_v48 = vld [vmem:[%s4482_s3 + $0x124] ss:$16 sps:$4 sm:$0xff]   ;;  %v3220_v50 = vld [vmem:[%s4482_s3 + $0x120] ss:$16 sps:$4 sm:$0xff]  }
  0x79   :  { %1209 = vmatpush1.bf16.msra.mxu0 %v3142_v56  ;;  %1291 = vmatpush1.bf16.msra.mxu1 %v3145_v57  ;;  %v3225_v49 = vld [vmem:[%s4482_s3 + $0x324] ss:$16 sps:$4 sm:$0xff]   ;;  %v3223_v51 = vld [vmem:[%s4482_s3 + $0x320] ss:$16 sps:$4 sm:$0xff]  }
  0x7a   :  { %1210 = vmatprep.subr.bf16.mxu0 %v3150_v59  ;;  %1292 = vmatprep.subr.bf16.mxu1 %v3153_v60  ;;  %v3228_v52 = vld [vmem:[%s4482_s3 + $0x144] ss:$16 sps:$4 sm:$0xff]   ;;  %v3226_v54 = vld [vmem:[%s4482_s3 + $0x140] ss:$16 sps:$4 sm:$0xff]  }
  0x7b   :  { %v3231_v53 = vld [vmem:[%s4482_s3 + $0x344] ss:$16 sps:$4 sm:$0xff]   ;;  %v3229_v55 = vld [vmem:[%s4482_s3 + $0x340] ss:$16 sps:$4 sm:$0xff]  }
  0x7c   :  { %v3234_v56 = vld [vmem:[%s4482_s3 + $0x164] ss:$16 sps:$4 sm:$0xff]   ;;  %v3232_v58 = vld [vmem:[%s4482_s3 + $0x160] ss:$16 sps:$4 sm:$0xff]  }
  0x7d   :  { %1211 = vmatpush1.bf16.msra.mxu0 %v3148_v61  ;;  %1293 = vmatpush1.bf16.msra.mxu1 %v3151_v62  ;;  %v3237_v57 = vld [vmem:[%s4482_s3 + $0x364] ss:$16 sps:$4 sm:$0xff]   ;;  %v3235_v59 = vld [vmem:[%s4482_s3 + $0x360] ss:$16 sps:$4 sm:$0xff]  }
  0x7e   :  { %1212 = vmatprep.subr.bf16.mxu0 %v3156_v63  ;;  %1294 = vmatprep.subr.bf16.mxu1 %v3159_v0  ;;  %v3240_v60 = vld [vmem:[%s4482_s3 + $0x184] ss:$16 sps:$4 sm:$0xff]   ;;  %v3238_v62 = vld [vmem:[%s4482_s3 + $0x180] ss:$16 sps:$4 sm:$0xff]  }
  0x7f   :  { %v3243_v61 = vld [vmem:[%s4482_s3 + $0x384] ss:$16 sps:$4 sm:$0xff]   ;;  %v3241_v63 = vld [vmem:[%s4482_s3 + $0x380] ss:$16 sps:$4 sm:$0xff]  }
  0x80   :  { %v3246_v0 = vld [vmem:[%s4482_s3 + $0x1a4] ss:$16 sps:$4 sm:$0xff]  }
  0x81   :  { %1213 = vmatpush1.bf16.msra.mxu0 %v3154_v1  ;;  %1295 = vmatpush1.bf16.msra.mxu1 %v3157_v2  ;;  %v3249_v1 = vld [vmem:[%s4482_s3 + $0x3a4] ss:$16 sps:$4 sm:$0xff]   ;;  %v3244_v2 = vld [vmem:[%s4482_s3 + $0x1a0] ss:$16 sps:$4 sm:$0xff]  }
  0x82   :  { %1214 = vmatprep.subr.bf16.mxu0 %v3162_v3  ;;  %1296 = vmatprep.subr.bf16.mxu1 %v3165_v6  ;;  %v3247_v3 = vld [vmem:[%s4482_s3 + $0x3a0] ss:$16 sps:$4 sm:$0xff]   ;;  %v3252_v6 = vld [vmem:[%s4482_s3 + $0x1c4] ss:$16 sps:$4 sm:$0xff]  }
  0x85   :  { %1215 = vmatpush1.bf16.msra.mxu0 %v3160_v7  ;;  %1297 = vmatpush1.bf16.msra.mxu1 %v3163_v8  ;;  %v3255_v7 = vld [vmem:[%s4482_s3 + $0x3c4] ss:$16 sps:$4 sm:$0xff]   ;;  %v3250_v8 = vld [vmem:[%s4482_s3 + $0x1c0] ss:$16 sps:$4 sm:$0xff]  }
  0x86   :  { %2105 = vmatprep.subr.bf16.mxu0 %v3168_v10  ;;  %2146 = vmatprep.subr.bf16.mxu1 %v3171_v11  ;;  %v3253_v10 = vld [vmem:[%s4482_s3 + $0x3c0] ss:$16 sps:$4 sm:$0xff]   ;;  %v3258_v11 = vld [vmem:[%s4482_s3 + $0x1e4] ss:$16 sps:$4 sm:$0xff]  }
  0x88   :  { %1217 = vmatmul.mubr.bf16.vlgmr.msra.gmra.mrb[0].mxu0 %v351_v14  ;;  %1299 = vmatmul.mubr.bf16.vlgmr.msra.gmra.mrb[0].mxu1 %v351_v14  ;;  %v3259_v14 = vld [vmem:[%s4482_s3 + $0x3e0] ss:$16 sps:$4 sm:$0xff]  }
  0x89   :  { %2106 = vmatpush1.bf16.msra.mxu0 %v3166_v12  ;;  %2147 = vmatpush1.bf16.msra.mxu1 %v3169_v13  ;;  %v3261_v12 = vld [vmem:[%s4482_s3 + $0x3e4] ss:$16 sps:$4 sm:$0xff]   ;;  %v3256_v13 = vld [vmem:[%s4482_s3 + $0x1e0] ss:$16 sps:$4 sm:$0xff]  }
  0x8a   :  { %2107 = vmatprep.subr.bf16.mxu0 %v3174_v15  ;;  %2148 = vmatprep.subr.bf16.mxu1 %v3177_v16  ;;  %v3264_v15 = vld [vmem:[%s4482_s3 + $0xc] ss:$16 sps:$4 sm:$0xff]  }
  0x8b   :  { %v3267_v16 = vld [vmem:[%s4482_s3 + $0x20c] ss:$16 sps:$4 sm:$0xff]  }
  0x8d   :  { %2108 = vmatpush1.bf16.msra.mxu0 %v3172_v17  ;;  %2149 = vmatpush1.bf16.msra.mxu1 %v3175_v18  ;;  %v483_v17 = vlaneseq }
  0x8e   :  { %2109 = vmatprep.subr.bf16.mxu0 %v3180_v19  ;;  %2150 = vmatprep.subr.bf16.mxu1 %v3183_v20 }
  0x8f   :  { %v4152_v18 = vshrl.u32 %v483_v17, 7  ;;  %v3307_v17 = vld [vmem:[%s4482_s3 + $0x2e8] ss:$16 sps:$4 sm:$0xff]  }
  0x91   :  { %2110 = vmatpush1.bf16.msra.mxu0 %v3178_v21  ;;  %2151 = vmatpush1.bf16.msra.mxu1 %v3181_v22  ;;  %v485_v19 = vsub.s32 0, %v4152_v18  ;;  %v493_v20 = vsub.s32 2, %v4152_v18  ;;  %v481_v21 = vld [vmem:[%s4484_s2] sm:$0xf]  ;;  %v489_v22 = vsub.s32 1, %v4152_v18 }
  0x92   :  { %2111 = vmatprep.subr.bf16.mxu0 %v3186_v23  ;;  %2152 = vmatprep.subr.bf16.mxu1 %v3189_v24  ;;  %v497_v23 = vsub.s32 3, %v4152_v18 }
  0x93   :  { %v486_v24 = vrot.slane %v481_v21, %v485_v19 }
  0x95   :  { %2112 = vmatpush1.bf16.msra.mxu0 %v3184_v25  ;;  %2153 = vmatpush1.bf16.msra.mxu1 %v3187_v26  ;;  %v494_v25 = vrot.slane %v481_v21, %v493_v20  ;;  %v490_v26 = vrot.slane %v481_v21, %v489_v22 }
  0x96   :  { %2113 = vmatprep.subr.bf16.mxu0 %v3192_v27  ;;  %2154 = vmatprep.subr.bf16.mxu1 %v3195_v28  ;;  %v498_v27 = vrot.slane %v481_v21, %v497_v23  ;;  %v3312_v21 = vld [vmem:[%s4482_s3 + $0x10c] ss:$16 sps:$4 sm:$0xff]  }
  0x99   :  { %2114 = vmatpush1.bf16.msra.mxu0 %v3190_v30  ;;  %2155 = vmatpush1.bf16.msra.mxu1 %v3193_v31 }
  0x9a   :  { %2115 = vmatprep.subr.bf16.mxu0 %v3198_v32  ;;  %2156 = vmatprep.subr.bf16.mxu1 %v3201_v33 }
  0x9d   :  { %2116 = vmatpush1.bf16.msra.mxu0 %v3196_v34  ;;  %2157 = vmatpush1.bf16.msra.mxu1 %v3199_v35 }
  0x9e   :  { %2117 = vmatprep.subr.bf16.mxu0 %v3204_v36  ;;  %2158 = vmatprep.subr.bf16.mxu1 %v3207_v37 }
  0xa1   :  { %2118 = vmatpush1.bf16.msra.mxu0 %v3202_v38  ;;  %2159 = vmatpush1.bf16.msra.mxu1 %v3205_v39 }
  0xa2   :  { %2119 = vmatprep.subr.bf16.mxu0 %v3210_v40  ;;  %2160 = vmatprep.subr.bf16.mxu1 %v3213_v41 }
  0xa5   :  { %2120 = vmatpush1.bf16.msra.mxu0 %v3208_v42  ;;  %2161 = vmatpush1.bf16.msra.mxu1 %v3211_v43 }
  0xa6   :  { %2121 = vmatprep.subr.bf16.mxu0 %v3216_v44  ;;  %2162 = vmatprep.subr.bf16.mxu1 %v3219_v45 }
  0xa9   :  { %2122 = vmatpush1.bf16.msra.mxu0 %v3214_v46  ;;  %2163 = vmatpush1.bf16.msra.mxu1 %v3217_v47  ;;  %v3262_v47 = vld [vmem:[%s4482_s3 + $0x8] ss:$16 sps:$4 sm:$0xff]  }
  0xaa   :  { %2123 = vmatprep.subr.bf16.mxu0 %v3222_v48  ;;  %2164 = vmatprep.subr.bf16.mxu1 %v3225_v49  ;;  %v3265_v48 = vld [vmem:[%s4482_s3 + $0x208] ss:$16 sps:$4 sm:$0xff]  }
  0xad   :  { %2124 = vmatpush1.bf16.msra.mxu0 %v3220_v50  ;;  %2165 = vmatpush1.bf16.msra.mxu1 %v3223_v51  ;;  %v3270_v51 = vld [vmem:[%s4482_s3 + $0x2c] ss:$16 sps:$4 sm:$0xff]  }
  0xae   :  { %2125 = vmatprep.subr.bf16.mxu0 %v3228_v52  ;;  %2166 = vmatprep.subr.bf16.mxu1 %v3231_v53  ;;  %v3273_v52 = vld [vmem:[%s4482_s3 + $0x22c] ss:$16 sps:$4 sm:$0xff]   ;;  %v3268_v53 = vld [vmem:[%s4482_s3 + $0x28] ss:$16 sps:$4 sm:$0xff]  }
  0xb1   :  { %2126 = vmatpush1.bf16.msra.mxu0 %v3226_v54  ;;  %2167 = vmatpush1.bf16.msra.mxu1 %v3229_v55  ;;  %v3271_v54 = vld [vmem:[%s4482_s3 + $0x228] ss:$16 sps:$4 sm:$0xff]   ;;  %v3276_v55 = vld [vmem:[%s4482_s3 + $0x4c] ss:$16 sps:$4 sm:$0xff]  }
  0xb2   :  { %2127 = vmatprep.subr.bf16.mxu0 %v3234_v56  ;;  %2168 = vmatprep.subr.bf16.mxu1 %v3237_v57  ;;  %v3279_v56 = vld [vmem:[%s4482_s3 + $0x24c] ss:$16 sps:$4 sm:$0xff]   ;;  %v3274_v57 = vld [vmem:[%s4482_s3 + $0x48] ss:$16 sps:$4 sm:$0xff]  }
  0xb5   :  { %2128 = vmatpush1.bf16.msra.mxu0 %v3232_v58  ;;  %2169 = vmatpush1.bf16.msra.mxu1 %v3235_v59  ;;  %v3277_v58 = vld [vmem:[%s4482_s3 + $0x248] ss:$16 sps:$4 sm:$0xff]   ;;  %v3282_v59 = vld [vmem:[%s4482_s3 + $0x6c] ss:$16 sps:$4 sm:$0xff]  }
  0xb6   :  { %2129 = vmatprep.subr.bf16.mxu0 %v3240_v60  ;;  %2170 = vmatprep.subr.bf16.mxu1 %v3243_v61  ;;  %v3285_v60 = vld [vmem:[%s4482_s3 + $0x26c] ss:$16 sps:$4 sm:$0xff]   ;;  %v3280_v61 = vld [vmem:[%s4482_s3 + $0x68] ss:$16 sps:$4 sm:$0xff]  }
  0xb9   :  { %2130 = vmatpush1.bf16.msra.mxu0 %v3238_v62  ;;  %2171 = vmatpush1.bf16.msra.mxu1 %v3241_v63  ;;  %v3283_v62 = vld [vmem:[%s4482_s3 + $0x268] ss:$16 sps:$4 sm:$0xff]   ;;  %v3288_v63 = vld [vmem:[%s4482_s3 + $0x8c] ss:$16 sps:$4 sm:$0xff]  }
  0xba   :  { %2131 = vmatprep.subr.bf16.mxu0 %v3246_v0  ;;  %2172 = vmatprep.subr.bf16.mxu1 %v3249_v1  ;;  %v3291_v0 = vld [vmem:[%s4482_s3 + $0x28c] ss:$16 sps:$4 sm:$0xff]   ;;  %v3286_v1 = vld [vmem:[%s4482_s3 + $0x88] ss:$16 sps:$4 sm:$0xff]  }
  0xbd   :  { %2132 = vmatpush1.bf16.msra.mxu0 %v3244_v2  ;;  %2173 = vmatpush1.bf16.msra.mxu1 %v3247_v3  ;;  %v3289_v2 = vld [vmem:[%s4482_s3 + $0x288] ss:$16 sps:$4 sm:$0xff]   ;;  %v3294_v3 = vld [vmem:[%s4482_s3 + $0xac] ss:$16 sps:$4 sm:$0xff]  }
  0xbe   :  { %2133 = vmatprep.subr.bf16.mxu0 %v3252_v6  ;;  %2174 = vmatprep.subr.bf16.mxu1 %v3255_v7  ;;  %v3297_v6 = vld [vmem:[%s4482_s3 + $0x2ac] ss:$16 sps:$4 sm:$0xff]   ;;  %v3292_v7 = vld [vmem:[%s4482_s3 + $0xa8] ss:$16 sps:$4 sm:$0xff]  }
  0xc1   :  { %2134 = vmatpush1.bf16.msra.mxu0 %v3250_v8  ;;  %2175 = vmatpush1.bf16.msra.mxu1 %v3253_v10  ;;  %v3295_v8 = vld [vmem:[%s4482_s3 + $0x2a8] ss:$16 sps:$4 sm:$0xff]   ;;  %v3300_v10 = vld [vmem:[%s4482_s3 + $0xcc] ss:$16 sps:$4 sm:$0xff]  }
  0xc2   :  { %2135 = vmatprep.subr.bf16.mxu0 %v3258_v11  ;;  %2176 = vmatprep.subr.bf16.mxu1 %v3261_v12  ;;  %v3303_v11 = vld [vmem:[%s4482_s3 + $0x2cc] ss:$16 sps:$4 sm:$0xff]   ;;  %v3298_v12 = vld [vmem:[%s4482_s3 + $0xc8] ss:$16 sps:$4 sm:$0xff]  }
  0xc5   :  { %2136 = vmatpush1.bf16.msra.mxu0 %v3256_v13  ;;  %2177 = vmatpush1.bf16.msra.mxu1 %v3259_v14  ;;  %v3301_v13 = vld [vmem:[%s4482_s3 + $0x2c8] ss:$16 sps:$4 sm:$0xff]   ;;  %v3306_v14 = vld [vmem:[%s4482_s3 + $0xec] ss:$16 sps:$4 sm:$0xff]  }
  0xc6   :  { %2187 = vmatprep.subr.bf16.mxu0 %v3264_v15  ;;  %2228 = vmatprep.subr.bf16.mxu1 %v3267_v16  ;;  %v3309_v15 = vld [vmem:[%s4482_s3 + $0x2ec] ss:$16 sps:$4 sm:$0xff]   ;;  %v3304_v16 = vld [vmem:[%s4482_s3 + $0xe8] ss:$16 sps:$4 sm:$0xff]  }
 0x15b   :  { %v1218_v28 = vpop.f32.mrb[0].mxu0  ;;  %v1300_v30 = vpop.f32.mrb[0].mxu1 }
 0x15c   :  { %v2962_v31 = vadd.f32 %v1218_v28, %v486_v24  ;;  %v2964_v32 = vadd.f32 %v1300_v30, %v494_v25  ;;  %v1220_v33 = vpop.f32.mrb[1].mxu0  ;;  %v1302_v34 = vpop.f32.mrb[1].mxu1  ;;  %v3315_v24 = vld [vmem:[%s4482_s3 + $0x30c] ss:$16 sps:$4 sm:$0xff]   ;;  %v3310_v25 = vld [vmem:[%s4482_s3 + $0x108] ss:$16 sps:$4 sm:$0xff]  }
 0x15d   :  { %v2963_v35 = vadd.f32 %v1220_v33, %v490_v26  ;;  %v2965_v36 = vadd.f32 %v1302_v34, %v498_v27  ;;  %v1222_v37 = vpop.f32.mrb[2].mxu0  ;;  %v1304_v38 = vpop.f32.mrb[2].mxu1  ;;  %v3313_v26 = vld [vmem:[%s4482_s3 + $0x308] ss:$16 sps:$4 sm:$0xff]   ;;  %v3318_v27 = vld [vmem:[%s4482_s3 + $0x12c] ss:$16 sps:$4 sm:$0xff]  }
 0x15e   :  { %v1307_v39 = vmax.f32 %v2962_v31, 0.0  ;;  %v1309_v40 = vmax.f32 %v2964_v32, 0.0  ;;  %v1223_v41 = vpop.f32.mrb[3].mxu0  ;;  %v1305_v42 = vpop.f32.mrb[3].mxu1  ;;  %v3321_v28 = vld [vmem:[%s4482_s3 + $0x32c] ss:$16 sps:$4 sm:$0xff]  }
 0x15f   :  { %v1308_v43 = vmax.f32 %v2963_v35, 0.0  ;;  %v1310_v44 = vmax.f32 %v2965_v36, 0.0  ;;  %v3316_v30 = vld [vmem:[%s4482_s3 + $0x128] ss:$16 sps:$4 sm:$0xff]   ;;  %v3324_v32 = vld [vmem:[%s4482_s3 + $0x14c] ss:$16 sps:$4 sm:$0xff]  }
 0x160   :  { %v4175_v49 = vpack.c.bf16 %v1307_v39, %v1307_v39  ;;  %v4177_v50 = vpack.c.bf16 %v1309_v40, %v1309_v40  ;;  %v3319_v31 = vld [vmem:[%s4482_s3 + $0x328] ss:$16 sps:$4 sm:$0xff]   ;;  %v3327_v33 = vld [vmem:[%s4482_s3 + $0x34c] ss:$16 sps:$4 sm:$0xff]  }
 0x161   :  { %v1312_v45 = vpack.c.bf16 %v1308_v43, %v1308_v43  ;;  %v1314_v46 = vpack.c.bf16 %v1310_v44, %v1310_v44  ;;  %v3322_v34 = vld [vmem:[%s4482_s3 + $0x148] ss:$16 sps:$4 sm:$0xff]   ;;  %v3330_v36 = vld [vmem:[%s4482_s3 + $0x16c] ss:$16 sps:$4 sm:$0xff]  }
 0x162   :  { %v3325_v35 = vld [vmem:[%s4482_s3 + $0x348] ss:$16 sps:$4 sm:$0xff]   ;;  %v3333_v37 = vld [vmem:[%s4482_s3 + $0x36c] ss:$16 sps:$4 sm:$0xff]  }
 0x163   :  { %2137 = vmatprep.mubr.bf16.mxu0 %v1312_v45  ;;  %2178 = vmatprep.mubr.bf16.mxu1 %v1314_v46  ;;  %v3328_v38 = vld [vmem:[%s4482_s3 + $0x168] ss:$16 sps:$4 sm:$0xff]   ;;  %v3336_v40 = vld [vmem:[%s4482_s3 + $0x18c] ss:$16 sps:$4 sm:$0xff]  }
 0x164   :  { %2138 = vmatmul.mubr.bf16.vlgmr.msra.gmra.mrb[4].mxu0 %v4175_v49  ;;  %2179 = vmatmul.mubr.bf16.vlgmr.msra.gmra.mrb[4].mxu1 %v4177_v50  ;;  %v3331_v39 = vld [vmem:[%s4482_s3 + $0x368] ss:$16 sps:$4 sm:$0xff]   ;;  %v3339_v41 = vld [vmem:[%s4482_s3 + $0x38c] ss:$16 sps:$4 sm:$0xff]  }
 0x165   :  { %2188 = vmatpush1.bf16.msra.mxu0 %v3262_v47  ;;  %2229 = vmatpush1.bf16.msra.mxu1 %v3265_v48  ;;  %v3334_v42 = vld [vmem:[%s4482_s3 + $0x188] ss:$16 sps:$4 sm:$0xff]   ;;  %v3342_v44 = vld [vmem:[%s4482_s3 + $0x1ac] ss:$16 sps:$4 sm:$0xff]  }
 0x166   :  { %2219 = vmatprep.mubr.bf16.mxu0 %v1312_v45  ;;  %2260 = vmatprep.mubr.bf16.mxu1 %v1314_v46  ;;  %v3337_v43 = vld [vmem:[%s4482_s3 + $0x388] ss:$16 sps:$4 sm:$0xff]   ;;  %v3345_v45 = vld [vmem:[%s4482_s3 + $0x3ac] ss:$16 sps:$4 sm:$0xff]  }
 0x167   :  { %2189 = vmatprep.subr.bf16.mxu0 %v3270_v51  ;;  %2230 = vmatprep.subr.bf16.mxu1 %v3273_v52  ;;  %v3340_v46 = vld [vmem:[%s4482_s3 + $0x1a8] ss:$16 sps:$4 sm:$0xff]   ;;  %v3348_v48 = vld [vmem:[%s4482_s3 + $0x1cc] ss:$16 sps:$4 sm:$0xff]  }
 0x168   :  { %v3343_v47 = vld [vmem:[%s4482_s3 + $0x3a8] ss:$16 sps:$4 sm:$0xff]   ;;  %v3351_v51 = vld [vmem:[%s4482_s3 + $0x3cc] ss:$16 sps:$4 sm:$0xff]  }
 0x169   :  { %2190 = vmatpush1.bf16.msra.mxu0 %v3268_v53  ;;  %2231 = vmatpush1.bf16.msra.mxu1 %v3271_v54  ;;  %v3346_v52 = vld [vmem:[%s4482_s3 + $0x1c8] ss:$16 sps:$4 sm:$0xff]   ;;  %v3354_v54 = vld [vmem:[%s4482_s3 + $0x1ec] ss:$16 sps:$4 sm:$0xff]  }
 0x16a   :  { %2191 = vmatprep.subr.bf16.mxu0 %v3276_v55  ;;  %2232 = vmatprep.subr.bf16.mxu1 %v3279_v56  ;;  %v3349_v53 = vld [vmem:[%s4482_s3 + $0x3c8] ss:$16 sps:$4 sm:$0xff]   ;;  %v3357_v55 = vld [vmem:[%s4482_s3 + $0x3ec] ss:$16 sps:$4 sm:$0xff]  }
 0x16b   :  { %v3352_v56 = vld [vmem:[%s4482_s3 + $0x1e8] ss:$16 sps:$4 sm:$0xff]  }
 0x16d   :  { %2192 = vmatpush1.bf16.msra.mxu0 %v3274_v57  ;;  %2233 = vmatpush1.bf16.msra.mxu1 %v3277_v58  ;;  %v3355_v57 = vld [vmem:[%s4482_s3 + $0x3e8] ss:$16 sps:$4 sm:$0xff]   ;;  %v3358_v58 = vld [vmem:[%s4483_s5 + $0x40] sm:$0xff]  }
 0x16e   :  { %2193 = vmatprep.subr.bf16.mxu0 %v3282_v59  ;;  %2234 = vmatprep.subr.bf16.mxu1 %v3285_v60  ;;  %v3359_v59 = vld [vmem:[%s4483_s5] sm:$0xff]   ;;  %v3360_v60 = vld [vmem:[%s4483_s5 + $0x48] sm:$0xff]  }
 0x171   :  { %2194 = vmatpush1.bf16.msra.mxu0 %v3280_v61  ;;  %2235 = vmatpush1.bf16.msra.mxu1 %v3283_v62  ;;  %v3361_v61 = vld [vmem:[%s4483_s5 + $0x8] sm:$0xff]   ;;  %v3362_v62 = vld [vmem:[%s4483_s5 + $0x50] sm:$0xff]  }
 0x172   :  { %2195 = vmatprep.subr.bf16.mxu0 %v3288_v63  ;;  %2236 = vmatprep.subr.bf16.mxu1 %v3291_v0  ;;  %v3363_v63 = vld [vmem:[%s4483_s5 + $0x10] sm:$0xff]   ;;  %v3366_v0 = vld [vmem:[%s4483_s5 + $0x60] sm:$0xff]  }
 0x175   :  { %2196 = vmatpush1.bf16.msra.mxu0 %v3286_v1  ;;  %2237 = vmatpush1.bf16.msra.mxu1 %v3289_v2  ;;  %v3367_v1 = vld [vmem:[%s4483_s5 + $0x20] sm:$0xff]   ;;  %v3368_v2 = vld [vmem:[%s4483_s5 + $0x68] sm:$0xff]  }
 0x176   :  { %2197 = vmatprep.subr.bf16.mxu0 %v3294_v3  ;;  %2238 = vmatprep.subr.bf16.mxu1 %v3297_v6  ;;  %v3369_v3 = vld [vmem:[%s4483_s5 + $0x28] sm:$0xff]   ;;  %v3370_v6 = vld [vmem:[%s4483_s5 + $0x70] sm:$0xff]  }
 0x179   :  { %2198 = vmatpush1.bf16.msra.mxu0 %v3292_v7  ;;  %2239 = vmatpush1.bf16.msra.mxu1 %v3295_v8  ;;  %v3371_v7 = vld [vmem:[%s4483_s5 + $0x30] sm:$0xff]   ;;  %v3372_v8 = vld [vmem:[%s4483_s5 + $0x78] sm:$0xff]  }
 0x17a   :  { %2199 = vmatprep.subr.bf16.mxu0 %v3300_v10  ;;  %2240 = vmatprep.subr.bf16.mxu1 %v3303_v11  ;;  %v3373_v10 = vld [vmem:[%s4483_s5 + $0x38] sm:$0xff]   ;;  %v3374_v11 = vld [vmem:[%s4483_s5 + $0xc0] sm:$0xff]  }
 0x17d   :  { %2200 = vmatpush1.bf16.msra.mxu0 %v3298_v12  ;;  %2241 = vmatpush1.bf16.msra.mxu1 %v3301_v13  ;;  %v3375_v12 = vld [vmem:[%s4483_s5 + $0x80] sm:$0xff]   ;;  %v3376_v13 = vld [vmem:[%s4483_s5 + $0xc8] sm:$0xff]  }
 0x17e   :  { %2201 = vmatprep.subr.bf16.mxu0 %v3306_v14  ;;  %2242 = vmatprep.subr.bf16.mxu1 %v3309_v15  ;;  %v3377_v14 = vld [vmem:[%s4483_s5 + $0x88] sm:$0xff]   ;;  %v3378_v15 = vld [vmem:[%s4483_s5 + $0xd0] sm:$0xff]  }
 0x181   :  { %2202 = vmatpush1.bf16.msra.mxu0 %v3304_v16  ;;  %2243 = vmatpush1.bf16.msra.mxu1 %v3307_v17  ;;  %v3379_v16 = vld [vmem:[%s4483_s5 + $0x90] sm:$0xff]   ;;  %v3380_v17 = vld [vmem:[%s4483_s5 + $0xd8] sm:$0xff]  }
 0x182   :  { %2203 = vmatprep.subr.bf16.mxu0 %v3312_v21  ;;  %2244 = vmatprep.subr.bf16.mxu1 %v3315_v24  ;;  %v3381_v21 = vld [vmem:[%s4483_s5 + $0x98] sm:$0xff]   ;;  %v3382_v24 = vld [vmem:[%s4483_s5 + $0xe0] sm:$0xff]  }
 0x185   :  { %2204 = vmatpush1.bf16.msra.mxu0 %v3310_v25  ;;  %2245 = vmatpush1.bf16.msra.mxu1 %v3313_v26  ;;  %v3383_v25 = vld [vmem:[%s4483_s5 + $0xa0] sm:$0xff]   ;;  %v3384_v26 = vld [vmem:[%s4483_s5 + $0xe8] sm:$0xff]  }
 0x186   :  { %2205 = vmatprep.subr.bf16.mxu0 %v3318_v27  ;;  %2246 = vmatprep.subr.bf16.mxu1 %v3321_v28  ;;  %v3385_v27 = vld [vmem:[%s4483_s5 + $0xa8] sm:$0xff]   ;;  %v3386_v28 = vld [vmem:[%s4483_s5 + $0xf0] sm:$0xff]  }
 0x189   :  { %2206 = vmatpush1.bf16.msra.mxu0 %v3316_v30  ;;  %2247 = vmatpush1.bf16.msra.mxu1 %v3319_v31  ;;  %v3387_v30 = vld [vmem:[%s4483_s5 + $0xb0] sm:$0xff]   ;;  %v3388_v31 = vld [vmem:[%s4483_s5 + $0xf8] sm:$0xff]  }
 0x18a   :  { %2207 = vmatprep.subr.bf16.mxu0 %v3324_v32  ;;  %2248 = vmatprep.subr.bf16.mxu1 %v3327_v33  ;;  %v3389_v32 = vld [vmem:[%s4483_s5 + $0xb8] sm:$0xff]   ;;  %v1443_v33 = vld [vmem:[%s4485_s4] sm:$0xf] }
 0x18d   :  { %2208 = vmatpush1.bf16.msra.mxu0 %v3322_v34  ;;  %2249 = vmatpush1.bf16.msra.mxu1 %v3325_v35  ;;  %v1448_v34 = vrot.slane %v1443_v33, %v485_v19  ;;  %v1452_v35 = vrot.slane %v1443_v33, %v489_v22 }
 0x18e   :  { %2209 = vmatprep.subr.bf16.mxu0 %v3330_v36  ;;  %2250 = vmatprep.subr.bf16.mxu1 %v3333_v37 }
 0x191   :  { %2210 = vmatpush1.bf16.msra.mxu0 %v3328_v38  ;;  %2251 = vmatpush1.bf16.msra.mxu1 %v3331_v39 }
 0x192   :  { %2211 = vmatprep.subr.bf16.mxu0 %v3336_v40  ;;  %2252 = vmatprep.subr.bf16.mxu1 %v3339_v41 }
 0x195   :  { %2212 = vmatpush1.bf16.msra.mxu0 %v3334_v42  ;;  %2253 = vmatpush1.bf16.msra.mxu1 %v3337_v43 }
 0x196   :  { %2213 = vmatprep.subr.bf16.mxu0 %v3342_v44  ;;  %2254 = vmatprep.subr.bf16.mxu1 %v3345_v45 }
 0x199   :  { %2214 = vmatpush1.bf16.msra.mxu0 %v3340_v46  ;;  %2255 = vmatpush1.bf16.msra.mxu1 %v3343_v47 }
 0x19a   :  { %2215 = vmatprep.subr.bf16.mxu0 %v3348_v48  ;;  %2256 = vmatprep.subr.bf16.mxu1 %v3351_v51 }
 0x19d   :  { %2216 = vmatpush1.bf16.msra.mxu0 %v3346_v52  ;;  %2257 = vmatpush1.bf16.msra.mxu1 %v3349_v53 }
 0x19e   :  { %2217 = vmatprep.subr.bf16.mxu0 %v3354_v54  ;;  %2258 = vmatprep.subr.bf16.mxu1 %v3357_v55  ;;  %v1456_v54 = vrot.slane %v1443_v33, %v493_v20  ;;  %v1460_v55 = vrot.slane %v1443_v33, %v497_v23 }
 0x1a1   :  { %2218 = vmatpush1.bf16.msra.mxu0 %v3352_v56  ;;  %2259 = vmatpush1.bf16.msra.mxu1 %v3355_v57 }
 0x1a2   :  { %2918 = vmatprep.subr.bf16.mxu0 %v3358_v58  ;;  %2940 = vmatprep.subr.bf16.mxu1 %v3374_v11  ;;  %v2885_v11 = vld [vmem:[%s4486_s6] ss:$0 sm:$0xff] }
 0x1a4   :  { %2220 = vmatmul.mubr.bf16.vlgmr.msra.gmra.mrb[8].mxu0 %v4175_v49  ;;  %2261 = vmatmul.mubr.bf16.vlgmr.msra.gmra.mrb[8].mxu1 %v4177_v50  ;;  %v3364_v49 = vld [vmem:[%s4483_s5 + $0x58] sm:$0xff]  }
 0x1a5   :  { %2919 = vmatpush3.bf16.msra.mxu0 %v3359_v59  ;;  %v3365_v50 = vld [vmem:[%s4483_s5 + $0x18] sm:$0xff]   ;;  %2941 = vmatpush3.bf16.msra.mxu1 %v3375_v12 }
 0x1a6   :  { %2920 = vmatprep.subr.bf16.mxu0 %v3360_v60  ;;  %2942 = vmatprep.subr.bf16.mxu1 %v3376_v13 }
 0x1a9   :  { %2921 = vmatpush3.bf16.msra.mxu0 %v3361_v61  ;;  %2943 = vmatpush3.bf16.msra.mxu1 %v3377_v14 }
 0x1aa   :  { %2922 = vmatprep.subr.bf16.mxu0 %v3362_v62  ;;  %2944 = vmatprep.subr.bf16.mxu1 %v3378_v15 }
 0x1ad   :  { %2923 = vmatpush3.bf16.msra.mxu0 %v3363_v63  ;;  %2945 = vmatpush3.bf16.msra.mxu1 %v3379_v16 }
 0x1ae   :  { %2924 = vmatprep.subr.bf16.mxu0 %v3364_v49  ;;  %2946 = vmatprep.subr.bf16.mxu1 %v3380_v17 }
 0x1b1   :  { %2925 = vmatpush3.bf16.msra.mxu0 %v3365_v50  ;;  %2947 = vmatpush3.bf16.msra.mxu1 %v3381_v21 }
 0x1b2   :  { %2926 = vmatprep.subr.bf16.mxu0 %v3366_v0  ;;  %2948 = vmatprep.subr.bf16.mxu1 %v3382_v24 }
 0x1b5   :  { %2927 = vmatpush3.bf16.msra.mxu0 %v3367_v1  ;;  %2949 = vmatpush3.bf16.msra.mxu1 %v3383_v25 }
 0x1b6   :  { %2928 = vmatprep.subr.bf16.mxu0 %v3368_v2  ;;  %2950 = vmatprep.subr.bf16.mxu1 %v3384_v26 }
 0x1b9   :  { %2929 = vmatpush3.bf16.msra.mxu0 %v3369_v3  ;;  %2951 = vmatpush3.bf16.msra.mxu1 %v3385_v27 }
 0x1ba   :  { %2930 = vmatprep.subr.bf16.mxu0 %v3370_v6  ;;  %2952 = vmatprep.subr.bf16.mxu1 %v3386_v28 }
 0x1bd   :  { %2931 = vmatpush3.bf16.msra.mxu0 %v3371_v7  ;;  %2953 = vmatpush3.bf16.msra.mxu1 %v3387_v30 }
 0x1be   :  { %2932 = vmatprep.subr.bf16.mxu0 %v3372_v8  ;;  %2954 = vmatprep.subr.bf16.mxu1 %v3388_v31 }
 0x1c1   :  { %2933 = vmatpush3.bf16.msra.mxu0 %v3373_v10  ;;  %2955 = vmatpush3.bf16.msra.mxu1 %v3389_v32 }
 0x237   :  { %v2139_v36 = vpop.f32.mrb[4].mxu0  ;;  %v2180_v37 = vpop.f32.mrb[4].mxu1 }
 0x238   :  { %v2140_v38 = vadd.f32 %v2139_v36, %v1448_v34  ;;  %v2141_v39 = vpop.f32.mrb[5].mxu0  ;;  %v2182_v40 = vpop.f32.mrb[5].mxu1 }
 0x239   :  { %v2142_v41 = vadd.f32 %v2141_v39, %v1452_v35  ;;  %v2143_v42 = vpop.f32.mrb[6].mxu0  ;;  %v2184_v43 = vpop.f32.mrb[6].mxu1 }
 0x23a   :  { %v2181_v44 = vadd.f32 %v2180_v37, %v2140_v38  ;;  %v2144_v45 = vpop.f32.mrb[7].mxu0  ;;  %v2185_v46 = vpop.f32.mrb[7].mxu1 }
 0x23b   :  { %v2183_v47 = vadd.f32 %v2182_v40, %v2142_v41 }
 0x23c   :  { %v2269_v48 = vadd.f32 %v2181_v44, %v3700_v4 }
 0x23d   :  { %v2270_v51 = vadd.f32 %v2183_v47, %v3680_v29 }
 0x23e   :  { %v2273_v19 = vmax.f32 %v2269_v48, 0.0 }
 0x23f   :  { %v2274_v52 = vmax.f32 %v2270_v51, 0.0 }
 0x240   :  { %v2277_v22 = vpack.c.bf16 %v2273_v19, %v2273_v19 }
 0x241   :  { %v2278_v53 = vpack.c.bf16 %v2274_v52, %v2274_v52 }
 0x243   :  { %2576 = vmatprep.mubr.bf16.mxu0 %v2278_v53 }
 0x244   :  { %2577 = vmatmul.mubr.bf16.vlgmr.msra.gmra.mrb[12].mxu0 %v2277_v22 }
 0x277   :  { %v2221_v56 = vpop.f32.mrb[8].mxu0  ;;  %v2262_v57 = vpop.f32.mrb[8].mxu1 }
 0x278   :  { %v2222_v58 = vadd.f32 %v2221_v56, %v1456_v54  ;;  %v2223_v59 = vpop.f32.mrb[9].mxu0  ;;  %v2264_v60 = vpop.f32.mrb[9].mxu1 }
 0x279   :  { %v2224_v4 = vadd.f32 %v2223_v59, %v1460_v55  ;;  %v2225_v61 = vpop.f32.mrb[10].mxu0  ;;  %v2266_v29 = vpop.f32.mrb[10].mxu1 }
 0x27a   :  { %v2263_v62 = vadd.f32 %v2262_v57, %v2222_v58  ;;  %v2226_v63 = vpop.f32.mrb[11].mxu0  ;;  %v2267_v49 = vpop.f32.mrb[11].mxu1 }
 0x27b   :  { %v2265_v50 = vadd.f32 %v2264_v60, %v2224_v4 }
 0x27c   :  { %v2271_v0 = vadd.f32 %v2263_v62, %v3950_v9 }
 0x27d   :  { %v2272_v1 = vadd.f32 %v2265_v50, %v3858_v5 }
 0x27e   :  { %v2275_v20 = vmax.f32 %v2271_v0, 0.0 }
 0x27f   :  { %v2276_v2 = vmax.f32 %v2272_v1, 0.0 }
 0x280   :  { %v2279_v23 = vpack.c.bf16 %v2275_v20, %v2275_v20 }
 0x281   :  { %v2280_v18 = vpack.c.bf16 %v2276_v2, %v2276_v2 }
 0x283   :  { %2616 = vmatprep.mubr.bf16.mxu1 %v2280_v18 }
 0x284   :  { %2617 = vmatmul.mubr.bf16.vlgmr.msra.gmra.mrb[12].mxu1 %v2279_v23 }
 0x317   :  { %v2934_v3 = vpop.f32.mrb[12].mxu0 }
 0x318   :  { %v2935_v6 = vpop.f32.mrb[13].mxu0 }
 0x319   :  { %v2936_v7 = vadd.f32 %v2935_v6, %v2934_v3  ;;  %v2937_v8 = vpop.f32.mrb[14].mxu0 }
 0x31a   :  { %v2938_v10 = vpop.f32.mrb[15].mxu0 }
 0x31b   :  { %v2579_v9 = vadd.f32 %v2936_v7, %v2885_v11 }
 0x357   :  { %v2956_v12 = vpop.f32.mrb[12].mxu1 }
 0x358   :  { %v2957_v13 = vpop.f32.mrb[13].mxu1 }
 0x359   :  { %v2958_v14 = vadd.f32 %v2957_v13, %v2956_v12  ;;  %v2959_v5 = vpop.f32.mrb[14].mxu1 }
 0x35a   :  { %v2960_v15 = vpop.f32.mrb[15].mxu1 }
 0x35b   :  { %v2619_v16 = vadd.f32 %v2958_v14, %v2579_v9 }
 0x35d   :  { %2624 = vst [vmem:[%s4487_s7] sm:$0xff] %v2619_v16 }

// kernel: condition_encoder.8
= control target key start
LH: loop header
LB: loop body
LE: loop exit
PB: predicated region body
PF: predicated region fallthrough
CT: control target
= control target key end

     0   :  { %vm792_vm0 = vcmask 1040384   ;;  %vm793_vm1 = vcmask 1041408   ;;  %v2730_v1 = vmov 65535   ;;  %v2731_v3 = vmov 0   ;;  %s3569_s1 = inlined_call_operand.vmem [shape: bf16[259,896], index: 1, kind: input, shape index: {}]   ;;  %s3570_s0 = inlined_call_operand.vmem [shape: bf16[4,8,259], index: 0, kind: input, shape index: {}]   ;;  %s3571_s3 = inlined_call_operand.vmem [shape: bf16[384,512], index: 3, kind: input, shape index: {}]   ;;  %s3572_s2 = inlined_call_operand.vmem [shape: f32[1,384], index: 2, kind: input, shape index: {}]   ;;  %s3573_s4 = inlined_call_operand.vmem [shape: f32[1,512], index: 4, kind: input, shape index: {}]   ;;  %s3574_s5 = inlined_call_operand.vmem [shape: f32[8,512], index: 5, kind: output, shape index: {}]  }
   0x1   :  { %v2410_v0 = vld [vmem:[%s3569_s1 + $0x4] ss:$28 sps:$4 sm:$0xff]   ;;  %v794_v2 = vsel %vm792_vm0, 4294967295, %v2730_v1  ;;  %902 = vmatprep.mubr.bf16.mxu1 %v2731_v3  ;;  %v2415_v9 = vld [vmem:[%s3569_s1 + $0x3c] ss:$28 sps:$4 sm:$0xff]   ;;  %vm785_vm2 = vcmask 23552  }
   0x2   :  { %v2412_v4 = vld [vmem:[%s3569_s1] ss:$28 sps:$4 sm:$0xff]   ;;  %v2772_v6 = vsel %vm793_vm1, %v794_v2, 0  ;;  %817 = vmatprep.subr.bf16.mxu0 %v2410_v0  ;;  %v2417_v10 = vld [vmem:[%s3569_s1 + $0x38] ss:$28 sps:$4 sm:$0xff]  }
   0x3   :  { %v157_v5 = vld [vmem:[%s3569_s1 + $0x380] sm:$0x33]  ;;  %818 = vmatpush1.bf16.msra.mxu0 %v2412_v4  ;;  %v2785_v13 = vld [vmem:[%s3570_s0 + $0x8] ss:$12 sps:$4 sm:$0xff]   ;;  %v2424_v17 = vld [vmem:[%s3569_s1 + $0x70] ss:$28 sps:$4 sm:$0xff]  }
   0x4   :  { %v2237_v7 = vcombine.high %v157_v5, %v157_v5  ;;  %v2236_v8 = vcombine.low %v157_v5, %v157_v5  ;;  %819 = vmatprep.subr.bf16.mxu0 %v2415_v9  ;;  %v2421_v14 = vld [vmem:[%s3569_s1 + $0xc] ss:$28 sps:$4 sm:$0xff]   ;;  %v2422_v16 = vld [vmem:[%s3569_s1 + $0x74] ss:$28 sps:$4 sm:$0xff]   ;;  %v2427_v18 = vld [vmem:[%s3569_s1 + $0x44] ss:$28 sps:$4 sm:$0xff]  }
   0x5   :  { %v2419_v15 = vld [vmem:[%s3569_s1 + $0x8] ss:$28 sps:$4 sm:$0xff]   ;;  %v2425_v20 = vld [vmem:[%s3569_s1 + $0x40] ss:$28 sps:$4 sm:$0xff]   ;;  %v2431_v24 = vld [vmem:[%s3569_s1 + $0x78] ss:$28 sps:$4 sm:$0xff]  }
   0x6   :  { %v800_v11 = vand.u32 %v2237_v7, %v2772_v6  ;;  %v797_v12 = vand.u32 %v2236_v8, %v2772_v6  ;;  %v2428_v19 = vld [vmem:[%s3569_s1 + $0xac] ss:$28 sps:$4 sm:$0xff]   ;;  %v2433_v22 = vld [vmem:[%s3569_s1 + $0x7c] ss:$28 sps:$4 sm:$0xff]   ;;  %v2434_v23 = vld [vmem:[%s3569_s1 + $0xe4] ss:$28 sps:$4 sm:$0xff]  }
   0x7   :  { %820 = vmatpush1.bf16.msra.mxu0 %v2417_v10  ;;  %v2430_v21 = vld [vmem:[%s3569_s1 + $0xa8] ss:$28 sps:$4 sm:$0xff]   ;;  %v2436_v25 = vld [vmem:[%s3569_s1 + $0xe0] ss:$28 sps:$4 sm:$0xff]   ;;  %v2439_v26 = vld [vmem:[%s3569_s1 + $0xb4] ss:$28 sps:$4 sm:$0xff]  }
   0x8   :  { %870 = vmatprep.subr.bf16.mxu1 %v800_v11  ;;  %821 = vmatprep.subr.bf16.mxu0 %v2422_v16  ;;  %v2440_v27 = vld [vmem:[%s3569_s1 + $0x11c] ss:$28 sps:$4 sm:$0xff]   ;;  %v2437_v28 = vld [vmem:[%s3569_s1 + $0xb0] ss:$28 sps:$4 sm:$0xff]   ;;  %v2443_v32 = vld [vmem:[%s3569_s1 + $0xe8] ss:$28 sps:$4 sm:$0xff]  }
   0x9   :  { %871 = vmatpush1.bf16.msra.mxu1 %v797_v12  ;;  %v2442_v29 = vld [vmem:[%s3569_s1 + $0x118] ss:$28 sps:$4 sm:$0xff]   ;;  %v2445_v30 = vld [vmem:[%s3569_s1 + $0xec] ss:$28 sps:$4 sm:$0xff]   ;;  %v2451_v34 = vld [vmem:[%s3569_s1 + $0x124] ss:$28 sps:$4 sm:$0xff]  }
   0xa   :  { %923 = vmatprep.subr.bf16.mxu1 %v2421_v14  ;;  %v2446_v31 = vld [vmem:[%s3569_s1 + $0x154] ss:$28 sps:$4 sm:$0xff]   ;;  %v2452_v35 = vld [vmem:[%s3569_s1 + $0x18c] ss:$28 sps:$4 sm:$0xff]   ;;  %v2449_v36 = vld [vmem:[%s3569_s1 + $0x120] ss:$28 sps:$4 sm:$0xff]  }
   0xb   :  { %822 = vmatpush1.bf16.msra.mxu0 %v2424_v17  ;;  %v2448_v33 = vld [vmem:[%s3569_s1 + $0x150] ss:$28 sps:$4 sm:$0xff]   ;;  %v2454_v37 = vld [vmem:[%s3569_s1 + $0x188] ss:$28 sps:$4 sm:$0xff]   ;;  %v2457_v38 = vld [vmem:[%s3569_s1 + $0x15c] ss:$28 sps:$4 sm:$0xff]  }
   0xc   :  { %2243 = vmatmul.mubr.msk.bf16.vlgmr.msra.gmra.mrb[0].mxu1 %vm785_vm2, %v2785_v13  ;;  %823 = vmatprep.subr.bf16.mxu0 %v2428_v19  ;;  %v2458_v39 = vld [vmem:[%s3569_s1 + $0x1c4] ss:$28 sps:$4 sm:$0xff]   ;;  %v2455_v40 = vld [vmem:[%s3569_s1 + $0x158] ss:$28 sps:$4 sm:$0xff]   ;;  %v2461_v44 = vld [vmem:[%s3569_s1 + $0x190] ss:$28 sps:$4 sm:$0xff]  }
   0xd   :  { %924 = vmatpush1.bf16.msra.mxu1 %v2419_v15  ;;  %912 = vmatprep.mubr.bf16.mxu1 %v2731_v3  ;;  %v2460_v41 = vld [vmem:[%s3569_s1 + $0x1c0] ss:$28 sps:$4 sm:$0xff]   ;;  %v2463_v42 = vld [vmem:[%s3569_s1 + $0x194] ss:$28 sps:$4 sm:$0xff]   ;;  %v2469_v46 = vld [vmem:[%s3569_s1 + $0x1cc] ss:$28 sps:$4 sm:$0xff]  }
   0xe   :  { %925 = vmatprep.subr.bf16.mxu1 %v2427_v18  ;;  %v2464_v43 = vld [vmem:[%s3569_s1 + $0x1fc] ss:$28 sps:$4 sm:$0xff]   ;;  %v2470_v47 = vld [vmem:[%s3569_s1 + $0x234] ss:$28 sps:$4 sm:$0xff]   ;;  %v2467_v48 = vld [vmem:[%s3569_s1 + $0x1c8] ss:$28 sps:$4 sm:$0xff]  }
   0xf   :  { %824 = vmatpush1.bf16.msra.mxu0 %v2430_v21  ;;  %v2466_v45 = vld [vmem:[%s3569_s1 + $0x1f8] ss:$28 sps:$4 sm:$0xff]   ;;  %v2472_v49 = vld [vmem:[%s3569_s1 + $0x230] ss:$28 sps:$4 sm:$0xff]   ;;  %v2475_v50 = vld [vmem:[%s3569_s1 + $0x204] ss:$28 sps:$4 sm:$0xff]  }
  0x10   :  { %825 = vmatprep.subr.bf16.mxu0 %v2434_v23  ;;  %v2476_v51 = vld [vmem:[%s3569_s1 + $0x26c] ss:$28 sps:$4 sm:$0xff]   ;;  %v2473_v53 = vld [vmem:[%s3569_s1 + $0x200] ss:$28 sps:$4 sm:$0xff]   ;;  %v2924_v57 = vld [vmem:[%s3570_s0 + $0x4] ss:$12 sps:$4 sm:$0xff]  }
  0x11   :  { %926 = vmatpush1.bf16.msra.mxu1 %v2425_v20  ;;  %v2907_v52 = vld [vmem:[%s3570_s0 + $0x20] ss:$12 sps:$4 sm:$0xff]   ;;  %v2478_v54 = vld [vmem:[%s3569_s1 + $0x268] ss:$28 sps:$4 sm:$0xff]   ;;  %v2481_v55 = vld [vmem:[%s3569_s1 + $0x23c] ss:$28 sps:$4 sm:$0xff]   ;;  %849 = vmatprep.mubr.bf16.mxu0 %v2924_v57 }
  0x12   :  { %927 = vmatprep.subr.bf16.mxu1 %v2433_v22  ;;  %v2482_v56 = vld [vmem:[%s3569_s1 + $0x2a4] ss:$28 sps:$4 sm:$0xff]   ;;  %v2479_v58 = vld [vmem:[%s3569_s1 + $0x238] ss:$28 sps:$4 sm:$0xff]   ;;  %v2485_v62 = vld [vmem:[%s3569_s1 + $0x270] ss:$28 sps:$4 sm:$0xff]  }
  0x13   :  { %826 = vmatpush1.bf16.msra.mxu0 %v2436_v25  ;;  %v2484_v59 = vld [vmem:[%s3569_s1 + $0x2a0] ss:$28 sps:$4 sm:$0xff]   ;;  %v2487_v60 = vld [vmem:[%s3569_s1 + $0x274] ss:$28 sps:$4 sm:$0xff]   ;;  %v2493_v0 = vld [vmem:[%s3569_s1 + $0x2ac] ss:$28 sps:$4 sm:$0xff]  }
  0x14   :  { %827 = vmatprep.subr.bf16.mxu0 %v2440_v27  ;;  %2244 = vmatmul.mubr.msk.bf16.gmra.mrb[4].mxu1 %vm785_vm2, %v2907_v52  ;;  %v2488_v61 = vld [vmem:[%s3569_s1 + $0x2dc] ss:$28 sps:$4 sm:$0xff]   ;;  %v2494_v1 = vld [vmem:[%s3569_s1 + $0x314] ss:$28 sps:$4 sm:$0xff]   ;;  %v2491_v2 = vld [vmem:[%s3569_s1 + $0x2a8] ss:$28 sps:$4 sm:$0xff]  }
  0x15   :  { %928 = vmatpush1.bf16.msra.mxu1 %v2431_v24  ;;  %955 = vmatprep.mubr.bf16.mxu1 %v2924_v57  ;;  %v2490_v63 = vld [vmem:[%s3569_s1 + $0x2d8] ss:$28 sps:$4 sm:$0xff]   ;;  %v2496_v4 = vld [vmem:[%s3569_s1 + $0x310] ss:$28 sps:$4 sm:$0xff]   ;;  %v2499_v5 = vld [vmem:[%s3569_s1 + $0x2e4] ss:$28 sps:$4 sm:$0xff]  }
  0x16   :  { %929 = vmatprep.subr.bf16.mxu1 %v2439_v26  ;;  %v2500_v7 = vld [vmem:[%s3569_s1 + $0x34c] ss:$28 sps:$4 sm:$0xff]   ;;  %v2497_v8 = vld [vmem:[%s3569_s1 + $0x2e0] ss:$28 sps:$4 sm:$0xff]   ;;  %v2520_v11 = vld [vmem:[%s3569_s1 + $0x14] ss:$28 sps:$4 sm:$0xff]  }
  0x17   :  { %828 = vmatpush1.bf16.msra.mxu0 %v2442_v29  ;;  %v2503_v9 = vld [vmem:[%s3569_s1 + $0x348] ss:$28 sps:$4 sm:$0xff]   ;;  %v2506_v10 = vld [vmem:[%s3569_s1 + $0x31c] ss:$28 sps:$4 sm:$0xff]   ;;  %v2987_v15 = vld [vmem:[%s3570_s0] ss:$12 sps:$4 sm:$0xff]  }
  0x18   :  { %829 = vmatprep.subr.bf16.mxu0 %v2446_v31  ;;  %v2504_v12 = vld [vmem:[%s3569_s1 + $0x318] ss:$28 sps:$4 sm:$0xff]   ;;  %v158_v14 = vld [vmem:[%s3569_s1 + $0x388] sm:$0x33]  ;;  %v2530_v25 = vld [vmem:[%s3569_s1 + $0x84] ss:$28 sps:$4 sm:$0xff]  }
  0x19   :  { %930 = vmatpush1.bf16.msra.mxu1 %v2437_v28  ;;  %v2512_v16 = vld [vmem:[%s3569_s1 + $0x354] ss:$28 sps:$4 sm:$0xff]   ;;  %v2995_v17 = vld [vmem:[%s3570_s0 + $0x1c] ss:$12 sps:$4 sm:$0xff]   ;;  %v2239_v18 = vcombine.high %v158_v14, %v158_v14  ;;  %v2238_v22 = vcombine.low %v158_v14, %v158_v14  ;;  %v3018_v26 = vld [vmem:[%s3570_s0 + $0x18] ss:$12 sps:$4 sm:$0xff]  }
  0x1a   :  { %931 = vmatprep.subr.bf16.mxu1 %v2445_v30  ;;  %v2518_v19 = vld [vmem:[%s3569_s1 + $0x10] ss:$28 sps:$4 sm:$0xff]   ;;  %v2523_v24 = vld [vmem:[%s3569_s1 + $0x48] ss:$28 sps:$4 sm:$0xff]   ;;  %v2521_v28 = vld [vmem:[%s3569_s1 + $0x1d8] ss:$28 sps:$4 sm:$0xff]  }
  0x1b   :  { %830 = vmatpush1.bf16.msra.mxu0 %v2448_v33  ;;  %v2525_v20 = vld [vmem:[%s3569_s1 + $0x4c] ss:$28 sps:$4 sm:$0xff]   ;;  %v806_v23 = vand.u32 %v2239_v18, %v2772_v6  ;;  %v803_v27 = vand.u32 %v2238_v22, %v2772_v6  ;;  %v2528_v29 = vld [vmem:[%s3569_s1 + $0x80] ss:$28 sps:$4 sm:$0xff]   ;;  %v2533_v31 = vld [vmem:[%s3569_s1 + $0xb8] ss:$28 sps:$4 sm:$0xff]  }
  0x1c   :  { %831 = vmatprep.subr.bf16.mxu0 %v2452_v35  ;;  %v2510_v21 = vld [vmem:[%s3569_s1 + $0x350] ss:$28 sps:$4 sm:$0xff]   ;;  %v2535_v30 = vld [vmem:[%s3569_s1 + $0xbc] ss:$28 sps:$4 sm:$0xff]   ;;  %v2543_v35 = vld [vmem:[%s3569_s1 + $0x128] ss:$28 sps:$4 sm:$0xff]  }
  0x1d   :  { %932 = vmatpush1.bf16.msra.mxu1 %v2443_v32  ;;  %v2540_v32 = vld [vmem:[%s3569_s1 + $0xf4] ss:$28 sps:$4 sm:$0xff]  }
  0x1e   :  { %933 = vmatprep.subr.bf16.mxu1 %v2451_v34  ;;  %v2538_v33 = vld [vmem:[%s3569_s1 + $0xf0] ss:$28 sps:$4 sm:$0xff]  }
  0x1f   :  { %832 = vmatpush1.bf16.msra.mxu0 %v2454_v37  ;;  %v2545_v34 = vld [vmem:[%s3569_s1 + $0x12c] ss:$28 sps:$4 sm:$0xff]   ;;  %v2522_v37 = vld [vmem:[%s3569_s1 + $0x18] ss:$28 sps:$4 sm:$0xff]   ;;  %v2571_v22 = vld [vmem:[%s3571_s3] ss:$16 sps:$4 sm:$0xff]  }
  0x20   :  { %833 = vmatprep.subr.bf16.mxu0 %v2458_v39  ;;  %v2548_v39 = vld [vmem:[%s3569_s1 + $0x160] ss:$28 sps:$4 sm:$0xff]  }
  0x21   :  { %934 = vmatpush1.bf16.msra.mxu1 %v2449_v36  ;;  %v2550_v36 = vld [vmem:[%s3569_s1 + $0x164] ss:$28 sps:$4 sm:$0xff]  }
  0x22   :  { %935 = vmatprep.subr.bf16.mxu1 %v2457_v38  ;;  %v2526_v38 = vld [vmem:[%s3569_s1 + $0x210] ss:$28 sps:$4 sm:$0xff]  }
  0x23   :  { %834 = vmatpush1.bf16.msra.mxu0 %v2460_v41  ;;  %v2527_v41 = vld [vmem:[%s3569_s1 + $0x50] ss:$28 sps:$4 sm:$0xff]  }
  0x24   :  { %835 = vmatprep.subr.bf16.mxu0 %v2464_v43  ;;  %v2553_v43 = vld [vmem:[%s3569_s1 + $0x198] ss:$28 sps:$4 sm:$0xff]  }
  0x25   :  { %936 = vmatpush1.bf16.msra.mxu1 %v2455_v40  ;;  %v2555_v40 = vld [vmem:[%s3569_s1 + $0x19c] ss:$28 sps:$4 sm:$0xff]  }
  0x26   :  { %937 = vmatprep.subr.bf16.mxu1 %v2463_v42  ;;  %v2531_v42 = vld [vmem:[%s3569_s1 + $0x248] ss:$28 sps:$4 sm:$0xff]  }
  0x27   :  { %836 = vmatpush1.bf16.msra.mxu0 %v2466_v45  ;;  %v2532_v45 = vld [vmem:[%s3569_s1 + $0x88] ss:$28 sps:$4 sm:$0xff]  }
  0x28   :  { %837 = vmatprep.subr.bf16.mxu0 %v2470_v47  ;;  %v2558_v47 = vld [vmem:[%s3569_s1 + $0x1d0] ss:$28 sps:$4 sm:$0xff]  }
  0x29   :  { %938 = vmatpush1.bf16.msra.mxu1 %v2461_v44  ;;  %v2560_v44 = vld [vmem:[%s3569_s1 + $0x1d4] ss:$28 sps:$4 sm:$0xff]  }
  0x2a   :  { %939 = vmatprep.subr.bf16.mxu1 %v2469_v46  ;;  %v2536_v46 = vld [vmem:[%s3569_s1 + $0x280] ss:$28 sps:$4 sm:$0xff]  }
  0x2b   :  { %838 = vmatpush1.bf16.msra.mxu0 %v2472_v49  ;;  %v2537_v49 = vld [vmem:[%s3569_s1 + $0xc0] ss:$28 sps:$4 sm:$0xff]  }
  0x2c   :  { %839 = vmatprep.subr.bf16.mxu0 %v2476_v51  ;;  %v2561_v51 = vld [vmem:[%s3569_s1 + $0x208] ss:$28 sps:$4 sm:$0xff]  }
  0x2d   :  { %940 = vmatpush1.bf16.msra.mxu1 %v2467_v48  ;;  %v2563_v48 = vld [vmem:[%s3569_s1 + $0x20c] ss:$28 sps:$4 sm:$0xff]  }
  0x2e   :  { %941 = vmatprep.subr.bf16.mxu1 %v2475_v50  ;;  %v2541_v50 = vld [vmem:[%s3569_s1 + $0x2b8] ss:$28 sps:$4 sm:$0xff]  }
  0x2f   :  { %840 = vmatpush1.bf16.msra.mxu0 %v2478_v54  ;;  %v2542_v54 = vld [vmem:[%s3569_s1 + $0xf8] ss:$28 sps:$4 sm:$0xff]  }
  0x30   :  { %841 = vmatprep.subr.bf16.mxu0 %v2482_v56  ;;  %v2564_v56 = vld [vmem:[%s3569_s1 + $0x240] ss:$28 sps:$4 sm:$0xff]  }
  0x31   :  { %942 = vmatpush1.bf16.msra.mxu1 %v2473_v53  ;;  %v2566_v53 = vld [vmem:[%s3569_s1 + $0x244] ss:$28 sps:$4 sm:$0xff]  }
  0x32   :  { %943 = vmatprep.subr.bf16.mxu1 %v2481_v55  ;;  %v2546_v55 = vld [vmem:[%s3569_s1 + $0x2f0] ss:$28 sps:$4 sm:$0xff]  }
  0x33   :  { %842 = vmatpush1.bf16.msra.mxu0 %v2484_v59  ;;  %v2551_v59 = vld [vmem:[%s3569_s1 + $0x328] ss:$28 sps:$4 sm:$0xff]  }
  0x34   :  { %843 = vmatprep.subr.bf16.mxu0 %v2488_v61  ;;  %v2576_v61 = vld [vmem:[%s3569_s1 + $0x2b4] ss:$28 sps:$4 sm:$0xff]  }
  0x35   :  { %944 = vmatpush1.bf16.msra.mxu1 %v2479_v58  ;;  %v2547_v58 = vld [vmem:[%s3569_s1 + $0x130] ss:$28 sps:$4 sm:$0xff]  }
  0x36   :  { %945 = vmatprep.subr.bf16.mxu1 %v2487_v60  ;;  %v2568_v60 = vld [vmem:[%s3569_s1 + $0x278] ss:$28 sps:$4 sm:$0xff]  }
  0x37   :  { %844 = vmatpush1.bf16.msra.mxu0 %v2490_v63  ;;  %v2556_v63 = vld [vmem:[%s3569_s1 + $0x360] ss:$28 sps:$4 sm:$0xff]  }
  0x38   :  { %845 = vmatprep.subr.bf16.mxu0 %v2494_v1  ;;  %v2574_v1 = vld [vmem:[%s3569_s1 + $0x2b0] ss:$28 sps:$4 sm:$0xff]  }
  0x39   :  { %946 = vmatpush1.bf16.msra.mxu1 %v2485_v62  ;;  %v2552_v62 = vld [vmem:[%s3569_s1 + $0x168] ss:$28 sps:$4 sm:$0xff]  }
  0x3a   :  { %947 = vmatprep.subr.bf16.mxu1 %v2493_v0  ;;  %v2567_v0 = vld [vmem:[%s3569_s1 + $0x398] ss:$0 sps:$4 sm:$0x33]  }
  0x3b   :  { %846 = vmatpush1.bf16.msra.mxu0 %v2496_v4  ;;  %v2557_v4 = vld [vmem:[%s3569_s1 + $0x1a0] ss:$28 sps:$4 sm:$0xff]  }
  0x3c   :  { %847 = vmatprep.subr.bf16.mxu0 %v2500_v7  ;;  %v2588_v7 = vld [vmem:[%s3569_s1 + $0x324] ss:$28 sps:$4 sm:$0xff]  }
  0x3d   :  { %948 = vmatpush1.bf16.msra.mxu1 %v2491_v2  ;;  %v2582_v2 = vld [vmem:[%s3569_s1 + $0x2ec] ss:$28 sps:$4 sm:$0xff]  }
  0x3e   :  { %949 = vmatprep.subr.bf16.mxu1 %v2499_v5  ;;  %v2580_v5 = vld [vmem:[%s3569_s1 + $0x2e8] ss:$28 sps:$4 sm:$0xff]  }
  0x3f   :  { %848 = vmatpush1.bf16.msra.mxu0 %v2503_v9  ;;  %v159_v9 = vld [vmem:[%s3569_s1 + $0x390] sm:$0x33] }
  0x40   :  { %1029 = vmatprep.subr.bf16.mxu0 %v2520_v11  ;;  %v2586_v11 = vld [vmem:[%s3569_s1 + $0x320] ss:$28 sps:$4 sm:$0xff]   ;;  %v2241_v14 = vcombine.high %v159_v9, %v159_v9  ;;  %v2240_v18 = vcombine.low %v159_v9, %v159_v9 }
  0x41   :  { %950 = vmatpush1.bf16.msra.mxu1 %v2497_v8  ;;  %v815_v8 = vand.u32 %v2567_v0, %v2772_v6  ;;  %v2641_v0 = vld [vmem:[%s3571_s3 + $0x1e4] ss:$16 sps:$4 sm:$0xff]  }
  0x42   :  { %951 = vmatprep.subr.bf16.mxu1 %v2506_v10  ;;  %850 = vmatmul.mubr.bf16.vlgmr.msra.gmra.mrb[0].mxu0 %v2987_v15  ;;  %v2573_v10 = vld [vmem:[%s3571_s3 + $0x4] ss:$16 sps:$4 sm:$0xff]  }
  0x43   :  { %859 = vmatprep.mubr.bf16.mxu0 %v2995_v17  ;;  %1030 = vmatpush1.bf16.msra.mxu0 %v2518_v19  ;;  %v812_v19 = vand.u32 %v2241_v14, %v2772_v6  ;;  %v1235_v14 = vlaneseq }
  0x44   :  { %1031 = vmatprep.subr.bf16.mxu0 %v2525_v20  ;;  %v809_v20 = vand.u32 %v2240_v18, %v2772_v6  ;;  %v2579_v6 = vld [vmem:[%s3571_s3 + $0x24] ss:$16 sps:$4 sm:$0xff]  }
  0x45   :  { %952 = vmatpush1.bf16.msra.mxu1 %v2504_v12  ;;  %v2594_v12 = vld [vmem:[%s3569_s1 + $0x35c] ss:$28 sps:$4 sm:$0xff]  }
  0x46   :  { %953 = vmatprep.subr.bf16.mxu1 %v2512_v16  ;;  %v2592_v16 = vld [vmem:[%s3569_s1 + $0x358] ss:$28 sps:$4 sm:$0xff]  }
  0x47   :  { %1032 = vmatpush1.bf16.msra.mxu0 %v2523_v24  ;;  %v2624_v24 = vld [vmem:[%s3571_s3 + $0x200] ss:$16 sps:$4 sm:$0xff]  }
  0x48   :  { %1033 = vmatprep.subr.bf16.mxu0 %v2530_v25  ;;  %v2589_v25 = vld [vmem:[%s3571_s3 + $0x60] ss:$16 sps:$4 sm:$0xff]  }
  0x49   :  { %954 = vmatpush1.bf16.msra.mxu1 %v2510_v21  ;;  %v2626_v21 = vld [vmem:[%s3571_s3 + $0x204] ss:$16 sps:$4 sm:$0xff]  }
  0x4a   :  { %976 = vmatprep.subr.bf16.mxu1 %v806_v23  ;;  %860 = vmatmul.mubr.bf16.gmra.mrb[4].mxu0 %v3018_v26  ;;  %v2577_v23 = vld [vmem:[%s3571_s3 + $0x20] ss:$16 sps:$4 sm:$0xff]  }
  0x4b   :  { %1034 = vmatpush1.bf16.msra.mxu0 %v2528_v29  ;;  %1061 = vmatprep.mubr.bf16.mxu0 %v2924_v57  ;;  %v2632_v29 = vld [vmem:[%s3571_s3 + $0x224] ss:$16 sps:$4 sm:$0xff]  }
  0x4c   :  { %956 = vmatmul.mubr.bf16.vlgmr.msra.gmra.mrb[8].mxu1 %v2987_v15  ;;  %1035 = vmatprep.subr.bf16.mxu0 %v2535_v30  ;;  %v2600_v30 = vld [vmem:[%s3571_s3 + $0xa4] ss:$16 sps:$4 sm:$0xff]  }
  0x4d   :  { %977 = vmatpush1.bf16.msra.mxu1 %v803_v27  ;;  %965 = vmatprep.mubr.bf16.mxu1 %v2995_v17  ;;  %v2597_v27 = vld [vmem:[%s3571_s3 + $0x84] ss:$16 sps:$4 sm:$0xff]  }
  0x4e   :  { %2347 = vmatprep.subr.bf16.mxu1 %v2521_v28  ;;  %v2595_v28 = vld [vmem:[%s3571_s3 + $0x80] ss:$16 sps:$4 sm:$0xff]  }
  0x4f   :  { %1036 = vmatpush1.bf16.msra.mxu0 %v2533_v31  ;;  %v2630_v31 = vld [vmem:[%s3571_s3 + $0x220] ss:$16 sps:$4 sm:$0xff]  }
  0x50   :  { %1037 = vmatprep.subr.bf16.mxu0 %v2540_v32  ;;  %v2598_v32 = vld [vmem:[%s3571_s3 + $0xa0] ss:$16 sps:$4 sm:$0xff]  }
  0x53   :  { %1038 = vmatpush1.bf16.msra.mxu0 %v2538_v33  ;;  %v2638_v33 = vld [vmem:[%s3571_s3 + $0x244] ss:$16 sps:$4 sm:$0xff]  }
  0x54   :  { %966 = vmatmul.mubr.bf16.gmra.mrb[12].mxu1 %v3018_v26  ;;  %1039 = vmatprep.subr.bf16.mxu0 %v2545_v34  ;;  %v2603_v34 = vld [vmem:[%s3571_s3 + $0xc4] ss:$16 sps:$4 sm:$0xff]  }
  0x55   :  { %1008 = vmatprep.mubr.bf16.mxu1 %v2731_v3 }
  0x57   :  { %1040 = vmatpush1.bf16.msra.mxu0 %v2543_v35  ;;  %v2636_v35 = vld [vmem:[%s3571_s3 + $0x240] ss:$16 sps:$4 sm:$0xff]  }
  0x58   :  { %1041 = vmatprep.subr.bf16.mxu0 %v2550_v36  ;;  %v2644_v36 = vld [vmem:[%s3571_s3 + $0x264] ss:$16 sps:$4 sm:$0xff]  }
  0x5b   :  { %1042 = vmatpush1.bf16.msra.mxu0 %v2548_v39  ;;  %v2604_v39 = vld [vmem:[%s3571_s3 + $0xe0] ss:$16 sps:$4 sm:$0xff]  }
  0x5c   :  { %2245 = vmatmul.mubr.msk.bf16.vlgmr.msra.gmra.mrb[8].mxu1 %vm785_vm2, %v2785_v13  ;;  %1043 = vmatprep.subr.bf16.mxu0 %v2555_v40  ;;  %v2650_v40 = vld [vmem:[%s3571_s3 + $0x284] ss:$16 sps:$4 sm:$0xff]  }
  0x5d   :  { %1018 = vmatprep.mubr.bf16.mxu1 %v2731_v3  ;;  %2348 = vmatpush3.bf16.msra.mxu1 %v2522_v37  ;;  %v2606_v37 = vld [vmem:[%s3571_s3 + $0xe4] ss:$16 sps:$4 sm:$0xff]  }
  0x5e   :  { %2349 = vmatprep.subr.bf16.mxu1 %v2526_v38  ;;  %v2642_v38 = vld [vmem:[%s3571_s3 + $0x260] ss:$16 sps:$4 sm:$0xff]  }
  0x5f   :  { %1044 = vmatpush1.bf16.msra.mxu0 %v2553_v43  ;;  %v2609_v43 = vld [vmem:[%s3571_s3 + $0x100] ss:$16 sps:$4 sm:$0xff]  }
  0x60   :  { %1045 = vmatprep.subr.bf16.mxu0 %v2560_v44  ;;  %v2654_v44 = vld [vmem:[%s3571_s3 + $0x2a0] ss:$16 sps:$4 sm:$0xff]  }
  0x61   :  { %2350 = vmatpush3.bf16.msra.mxu1 %v2527_v41  ;;  %v2611_v41 = vld [vmem:[%s3571_s3 + $0x104] ss:$16 sps:$4 sm:$0xff]  }
  0x62   :  { %2351 = vmatprep.subr.bf16.mxu1 %v2531_v42  ;;  %v2648_v42 = vld [vmem:[%s3571_s3 + $0x280] ss:$16 sps:$4 sm:$0xff]  }
  0x63   :  { %1046 = vmatpush1.bf16.msra.mxu0 %v2558_v47  ;;  %v2612_v47 = vld [vmem:[%s3571_s3 + $0x120] ss:$16 sps:$4 sm:$0xff]  }
  0x64   :  { %2246 = vmatmul.mubr.msk.bf16.gmra.mrb[12].mxu1 %vm785_vm2, %v2907_v52  ;;  %1047 = vmatprep.subr.bf16.mxu0 %v2563_v48  ;;  %v2662_v48 = vld [vmem:[%s3571_s3 + $0x2c4] ss:$16 sps:$4 sm:$0xff]  }
  0x65   :  { %2352 = vmatpush3.bf16.msra.mxu1 %v2532_v45  ;;  %1167 = vmatprep.mubr.bf16.mxu1 %v2924_v57  ;;  %v2570_v57 = vld [vmem:[%s3569_s1 + $0x27c] ss:$28 sps:$4 sm:$0xff]   ;;  %v2656_v45 = vld [vmem:[%s3571_s3 + $0x2a4] ss:$16 sps:$4 sm:$0xff]  }
  0x66   :  { %2353 = vmatprep.subr.bf16.mxu1 %v2536_v46  ;;  %v2614_v46 = vld [vmem:[%s3571_s3 + $0x124] ss:$16 sps:$4 sm:$0xff]  }
  0x67   :  { %1048 = vmatpush1.bf16.msra.mxu0 %v2561_v51  ;;  %v2615_v51 = vld [vmem:[%s3571_s3 + $0x140] ss:$16 sps:$4 sm:$0xff]  }
  0x68   :  { %1049 = vmatprep.subr.bf16.mxu0 %v2566_v53  ;;  %v2668_v53 = vld [vmem:[%s3571_s3 + $0x2e4] ss:$16 sps:$4 sm:$0xff]  }
  0x69   :  { %2354 = vmatpush3.bf16.msra.mxu1 %v2537_v49  ;;  %v2617_v49 = vld [vmem:[%s3571_s3 + $0x144] ss:$16 sps:$4 sm:$0xff]  }
  0x6a   :  { %2355 = vmatprep.subr.bf16.mxu1 %v2541_v50  ;;  %v2660_v50 = vld [vmem:[%s3571_s3 + $0x2c0] ss:$16 sps:$4 sm:$0xff]  }
  0x6b   :  { %1050 = vmatpush1.bf16.msra.mxu0 %v2564_v56  ;;  %v2618_v56 = vld [vmem:[%s3571_s3 + $0x160] ss:$16 sps:$4 sm:$0xff]  }
  0x6c   :  { %1051 = vmatprep.subr.bf16.mxu0 %v2570_v57  ;;  %v2674_v57 = vld [vmem:[%s3571_s3 + $0xc] ss:$16 sps:$4 sm:$0xff]  }
  0x6d   :  { %2356 = vmatpush3.bf16.msra.mxu1 %v2542_v54  ;;  %v2620_v54 = vld [vmem:[%s3571_s3 + $0x164] ss:$16 sps:$4 sm:$0xff]  }
  0x6e   :  { %2357 = vmatprep.subr.bf16.mxu1 %v2546_v55  ;;  %v2666_v55 = vld [vmem:[%s3571_s3 + $0x2e0] ss:$16 sps:$4 sm:$0xff]  }
  0x6f   :  { %1052 = vmatpush1.bf16.msra.mxu0 %v2568_v60  ;;  %v2629_v60 = vld [vmem:[%s3571_s3 + $0x1a4] ss:$16 sps:$4 sm:$0xff]  }
  0x70   :  { %1053 = vmatprep.subr.bf16.mxu0 %v2576_v61  ;;  %v2627_v61 = vld [vmem:[%s3571_s3 + $0x1a0] ss:$16 sps:$4 sm:$0xff]  }
  0x71   :  { %2358 = vmatpush3.bf16.msra.mxu1 %v2547_v58  ;;  %v2623_v58 = vld [vmem:[%s3571_s3 + $0x184] ss:$16 sps:$4 sm:$0xff]  }
  0x72   :  { %2359 = vmatprep.subr.bf16.mxu1 %v2551_v59  ;;  %v2621_v59 = vld [vmem:[%s3571_s3 + $0x180] ss:$16 sps:$4 sm:$0xff]  }
  0x73   :  { %1054 = vmatpush1.bf16.msra.mxu0 %v2574_v1  ;;  %v2639_v1 = vld [vmem:[%s3571_s3 + $0x1e0] ss:$16 sps:$4 sm:$0xff]  }
  0x74   :  { %1055 = vmatprep.subr.bf16.mxu0 %v2582_v2  ;;  %v2647_v2 = vld [vmem:[%s3571_s3 + $0x20c] ss:$16 sps:$4 sm:$0xff]  }
  0x75   :  { %2360 = vmatpush3.bf16.msra.mxu1 %v2552_v62  ;;  %v2635_v62 = vld [vmem:[%s3571_s3 + $0x1c4] ss:$16 sps:$4 sm:$0xff]  }
  0x76   :  { %2361 = vmatprep.subr.bf16.mxu1 %v2556_v63  ;;  %v2633_v63 = vld [vmem:[%s3571_s3 + $0x1c0] ss:$16 sps:$4 sm:$0xff]  }
  0x77   :  { %1056 = vmatpush1.bf16.msra.mxu0 %v2580_v5 }
  0x78   :  { %1057 = vmatprep.subr.bf16.mxu0 %v2588_v7 }
  0x79   :  { %2362 = vmatpush3.bf16.msra.mxu1 %v2557_v4 }
  0x7a   :  { %2378 = vmatprep.subr.bf16.mxu1 %v815_v8 }
  0x7b   :  { %1058 = vmatpush1.bf16.msra.mxu0 %v2586_v11 }
  0x7c   :  { %1168 = vmatmul.mubr.bf16.vlgmr.msra.gmra.mrb[16].mxu1 %v2987_v15  ;;  %1059 = vmatprep.subr.bf16.mxu0 %v2594_v12 }
  0x7d   :  { %1175 = vmatprep.mubr.bf16.mxu1 %v2995_v17  ;;  %2379 = vmatpush3.bf16.msra.mxu1 %v815_v8 }
  0x7e   :  { %1856 = vmatprep.subr.bf16.mxu1 %v2573_v10 }
  0x7f   :  { %1060 = vmatpush1.bf16.msra.mxu0 %v2592_v16  ;;  %v3340_v16 = vshrl.u32 %v1235_v14, 7  ;;  %v2672_v14 = vld [vmem:[%s3571_s3 + $0x8] ss:$16 sps:$4 sm:$0xff]  }
  0x80   :  { %1082 = vmatprep.subr.bf16.mxu0 %v812_v19  ;;  %v1233_v19 = vld [vmem:[%s3572_s2] sm:$0x7] }
  0x81   :  { %v1237_v18 = vsub.s32 0, %v3340_v16 }
  0x82   :  { %1062 = vmatmul.mubr.bf16.vlgmr.msra.gmra.mrb[8].mxu0 %v2987_v15  ;;  %v2583_v15 = vld [vmem:[%s3571_s3 + $0x40] ss:$16 sps:$4 sm:$0xff]  }
  0x83   :  { %1071 = vmatprep.mubr.bf16.mxu0 %v2995_v17  ;;  %1083 = vmatpush1.bf16.msra.mxu0 %v809_v20  ;;  %v2591_v17 = vld [vmem:[%s3571_s3 + $0x64] ss:$16 sps:$4 sm:$0xff]   ;;  %v1241_v20 = vsub.s32 1, %v3340_v16 }
  0x84   :  { %1176 = vmatmul.mubr.bf16.gmra.mrb[20].mxu1 %v3018_v26  ;;  %1909 = vmatprep.subr.bf16.mxu0 %v2626_v21  ;;  %v1238_v21 = vrot.slane %v1233_v19, %v1237_v18 }
  0x85   :  { %2380 = vmatprep.mubr.msk.bf16.mxu1 %vm785_vm2, %v2785_v13  ;;  %v2585_v13 = vld [vmem:[%s3571_s3 + $0x44] ss:$16 sps:$4 sm:$0xff]  }
  0x8a   :  { %1072 = vmatmul.mubr.bf16.gmra.mrb[12].mxu0 %v3018_v26  ;;  %v2729_v26 = vld [vmem:[%s3570_s0 + $0x8] ss:$12 sps:$4 sm:$0xff]  }
  0x8b   :  { %1114 = vmatprep.mubr.bf16.mxu0 %v2731_v3 }
  0x8c   :  { %2381 = vmatmul.mubr.msk.bf16.vlgmr.msra.gmra.mrb[24].mxu1 %vm785_vm2, %v2907_v52 }
  0x8d   :  { %1857 = vmatpush1.bf16.msra.mxu1 %v2571_v22 }
  0x8e   :  { %1858 = vmatprep.subr.bf16.mxu1 %v2579_v6  ;;  %v1242_v6 = vrot.slane %v1233_v19, %v1241_v20 }
  0x91   :  { %1859 = vmatpush1.bf16.msra.mxu1 %v2577_v23 }
  0x92   :  { %1860 = vmatprep.subr.bf16.mxu1 %v2585_v13  ;;  %2247 = vmatmul.mubr.msk.bf16.vlgmr.msra.gmra.mrb[8].mxu0 %vm785_vm2, %v2729_v26 }
  0x93   :  { %1124 = vmatprep.mubr.bf16.mxu0 %v2731_v3  ;;  %1910 = vmatpush1.bf16.msra.mxu0 %v2624_v24 }
  0x94   :  { %1911 = vmatprep.subr.bf16.mxu0 %v2632_v29 }
  0x95   :  { %1861 = vmatpush1.bf16.msra.mxu1 %v2583_v15 }
  0x96   :  { %1862 = vmatprep.subr.bf16.mxu1 %v2591_v17 }
  0x97   :  { %1912 = vmatpush1.bf16.msra.mxu0 %v2630_v31 }
  0x98   :  { %1913 = vmatprep.subr.bf16.mxu0 %v2638_v33 }
  0x99   :  { %1863 = vmatpush1.bf16.msra.mxu1 %v2589_v25 }
  0x9a   :  { %1864 = vmatprep.subr.bf16.mxu1 %v2597_v27  ;;  %2248 = vmatmul.mubr.msk.bf16.gmra.mrb[12].mxu0 %vm785_vm2, %v2907_v52  ;;  %v2601_v52 = vld [vmem:[%s3571_s3 + $0xc0] ss:$16 sps:$4 sm:$0xff]  }
  0x9b   :  { %1941 = vmatprep.mubr.bf16.mxu0 %v2731_v3  ;;  %1914 = vmatpush1.bf16.msra.mxu0 %v2636_v35 }
  0x9c   :  { %1915 = vmatprep.subr.bf16.mxu0 %v2644_v36 }
  0x9d   :  { %1865 = vmatpush1.bf16.msra.mxu1 %v2595_v28 }
  0x9e   :  { %1866 = vmatprep.subr.bf16.mxu1 %v2600_v30 }
  0x9f   :  { %1916 = vmatpush1.bf16.msra.mxu0 %v2642_v38 }
  0xa0   :  { %1917 = vmatprep.subr.bf16.mxu0 %v2650_v40 }
  0xa1   :  { %1867 = vmatpush1.bf16.msra.mxu1 %v2598_v32 }
  0xa2   :  { %1868 = vmatprep.subr.bf16.mxu1 %v2603_v34 }
  0xa3   :  { %1918 = vmatpush1.bf16.msra.mxu0 %v2648_v42 }
  0xa4   :  { %1919 = vmatprep.subr.bf16.mxu0 %v2656_v45  ;;  %v2653_v45 = vld [vmem:[%s3571_s3 + $0x22c] ss:$16 sps:$4 sm:$0xff]  }
  0xa5   :  { %1869 = vmatpush1.bf16.msra.mxu1 %v2601_v52 }
  0xa6   :  { %1870 = vmatprep.subr.bf16.mxu1 %v2606_v37 }
  0xa7   :  { %1920 = vmatpush1.bf16.msra.mxu0 %v2654_v44 }
  0xa8   :  { %1921 = vmatprep.subr.bf16.mxu0 %v2662_v48 }
  0xa9   :  { %1871 = vmatpush1.bf16.msra.mxu1 %v2604_v39 }
  0xaa   :  { %1872 = vmatprep.subr.bf16.mxu1 %v2611_v41  ;;  %v2645_v41 = vld [vmem:[%s3571_s3 + $0x208] ss:$16 sps:$4 sm:$0xff]  }
  0xab   :  { %1922 = vmatpush1.bf16.msra.mxu0 %v2660_v50  ;;  %v2651_v50 = vld [vmem:[%s3571_s3 + $0x228] ss:$16 sps:$4 sm:$0xff]  }
  0xac   :  { %1923 = vmatprep.subr.bf16.mxu0 %v2668_v53 }
  0xad   :  { %1873 = vmatpush1.bf16.msra.mxu1 %v2609_v43 }
  0xae   :  { %1874 = vmatprep.subr.bf16.mxu1 %v2614_v46 }
  0xaf   :  { %1924 = vmatpush1.bf16.msra.mxu0 %v2666_v55 }
  0xb0   :  { %1962 = vmatprep.subr.bf16.mxu0 %v2674_v57 }
  0xb1   :  { %1875 = vmatpush1.bf16.msra.mxu1 %v2612_v47 }
  0xb2   :  { %1876 = vmatprep.subr.bf16.mxu1 %v2617_v49 }
  0xb5   :  { %1877 = vmatpush1.bf16.msra.mxu1 %v2615_v51 }
  0xb6   :  { %1878 = vmatprep.subr.bf16.mxu1 %v2620_v54  ;;  %v2659_v54 = vld [vmem:[%s3571_s3 + $0x24c] ss:$16 sps:$4 sm:$0xff]  }
  0xb9   :  { %1879 = vmatpush1.bf16.msra.mxu1 %v2618_v56 }
  0xba   :  { %1880 = vmatprep.subr.bf16.mxu1 %v2623_v58  ;;  %v1245_v58 = vsub.s32 2, %v3340_v16 }
  0xbd   :  { %1881 = vmatpush1.bf16.msra.mxu1 %v2621_v59 }
  0xbe   :  { %1882 = vmatprep.subr.bf16.mxu1 %v2629_v60  ;;  %v2657_v60 = vld [vmem:[%s3571_s3 + $0x248] ss:$16 sps:$4 sm:$0xff]  }
  0xc1   :  { %1883 = vmatpush1.bf16.msra.mxu1 %v2627_v61  ;;  %v2665_v61 = vld [vmem:[%s3571_s3 + $0x26c] ss:$16 sps:$4 sm:$0xff]  }
  0xc2   :  { %1884 = vmatprep.subr.bf16.mxu1 %v2635_v62  ;;  %v1246_v62 = vrot.slane %v1233_v19, %v1245_v58  ;;  %v2675_v19 = vld [vmem:[%s3571_s3 + $0x2a8] ss:$16 sps:$4 sm:$0xff]  }
  0xc5   :  { %1885 = vmatpush1.bf16.msra.mxu1 %v2633_v63  ;;  %v2663_v63 = vld [vmem:[%s3571_s3 + $0x268] ss:$16 sps:$4 sm:$0xff]  }
  0xc6   :  { %1886 = vmatprep.subr.bf16.mxu1 %v2641_v0  ;;  %v2671_v0 = vld [vmem:[%s3571_s3 + $0x28c] ss:$16 sps:$4 sm:$0xff]  }
  0xc9   :  { %1887 = vmatpush1.bf16.msra.mxu1 %v2639_v1 }
  0xca   :  { %2015 = vmatprep.subr.bf16.mxu1 %v2647_v2 }
  0xdf   :  { %v904_v4 = vpop.f32.mrb[0].mxu1 }
  0xe0   :  { %v906_v5 = vpop.f32.mrb[1].mxu1 }
  0xe1   :  { %v908_v7 = vpop.f32.mrb[2].mxu1 }
  0xe2   :  { %v910_v8 = vpop.f32.mrb[3].mxu1 }
  0xe7   :  { %v914_v9 = vpop.f32.mrb[4].mxu1 }
  0xe8   :  { %v916_v10 = vpop.f32.mrb[5].mxu1 }
  0xe9   :  { %v918_v11 = vpop.f32.mrb[6].mxu1 }
  0xea   :  { %v920_v12 = vpop.f32.mrb[7].mxu1 }
 0x115   :  { %v851_v22 = vpop.f32.mrb[0].mxu0 }
 0x116   :  { %v905_v23 = vadd.f32 %v904_v4, %v851_v22  ;;  %v853_v13 = vpop.f32.mrb[1].mxu0  ;;  %v2680_v22 = vld [vmem:[%s3571_s3 + $0x2c] ss:$16 sps:$4 sm:$0xff]  }
 0x117   :  { %v907_v15 = vadd.f32 %v906_v5, %v853_v13  ;;  %v855_v17 = vpop.f32.mrb[2].mxu0 }
 0x118   :  { %v1250_v24 = vadd.f32 %v1238_v21, %v905_v23  ;;  %v909_v25 = vadd.f32 %v908_v7, %v855_v17  ;;  %v857_v26 = vpop.f32.mrb[3].mxu0  ;;  %v2669_v7 = vld [vmem:[%s3571_s3 + $0x288] ss:$16 sps:$4 sm:$0xff]  }
 0x119   :  { %v1251_v27 = vadd.f32 %v1242_v6, %v907_v15  ;;  %v911_v28 = vadd.f32 %v910_v8, %v857_v26 }
 0x11a   :  { %v1253_v29 = vadd.f32 %v1238_v21, %v909_v25  ;;  %v1262_v31 = vmax.f32 %v1250_v24, 0.0  ;;  %v2678_v24 = vld [vmem:[%s3571_s3 + $0x28] ss:$16 sps:$4 sm:$0xff]  }
 0x11b   :  { %v1254_v30 = vadd.f32 %v1242_v6, %v911_v28  ;;  %v1263_v33 = vmax.f32 %v1251_v27, 0.0  ;;  %v2681_v25 = vld [vmem:[%s3571_s3 + $0x2c8] ss:$16 sps:$4 sm:$0xff]   ;;  %v2686_v28 = vld [vmem:[%s3571_s3 + $0x4c] ss:$16 sps:$4 sm:$0xff]  }
 0x11c   :  { %v1265_v32 = vmax.f32 %v1253_v29, 0.0  ;;  %v2689_v29 = vld [vmem:[%s3571_s3 + $0x2ec] ss:$16 sps:$4 sm:$0xff]  }
 0x11d   :  { %v1266_v34 = vmax.f32 %v1254_v30, 0.0  ;;  %v861_v35 = vpop.f32.mrb[4].mxu0 }
 0x11e   :  { %v3351_v52 = vpack.c.bf16 %v1265_v32, %v1262_v31  ;;  %v915_v36 = vadd.f32 %v914_v9, %v861_v35  ;;  %v863_v37 = vpop.f32.mrb[5].mxu0  ;;  %v2684_v32 = vld [vmem:[%s3571_s3 + $0x48] ss:$16 sps:$4 sm:$0xff]   ;;  %v2692_v35 = vld [vmem:[%s3571_s3 + $0x6c] ss:$16 sps:$4 sm:$0xff]  }
 0x11f   :  { %v917_v38 = vadd.f32 %v916_v10, %v863_v37  ;;  %v865_v39 = vpop.f32.mrb[6].mxu0  ;;  %v3353_v40 = vpack.c.bf16 %v1266_v34, %v1263_v33  ;;  %v2677_v10 = vld [vmem:[%s3571_s3 + $0x2ac] ss:$16 sps:$4 sm:$0xff]   ;;  %v2687_v34 = vld [vmem:[%s3571_s3 + $0x2e8] ss:$16 sps:$4 sm:$0xff]  }
 0x120   :  { %v1256_v42 = vadd.f32 %v1238_v21, %v915_v36  ;;  %v919_v43 = vadd.f32 %v918_v11, %v865_v39  ;;  %v867_v44 = vpop.f32.mrb[7].mxu0  ;;  %v2690_v36 = vld [vmem:[%s3571_s3 + $0x68] ss:$16 sps:$4 sm:$0xff]   ;;  %v2695_v37 = vld [vmem:[%s3571_s3 + $0x8c] ss:$16 sps:$4 sm:$0xff]  }
 0x121   :  { %v1257_v46 = vadd.f32 %v1242_v6, %v917_v38  ;;  %v921_v47 = vadd.f32 %v920_v12, %v867_v44  ;;  %1888 = vmatprep.mubr.bf16.mxu1 %v3353_v40  ;;  %v2693_v38 = vld [vmem:[%s3571_s3 + $0x88] ss:$16 sps:$4 sm:$0xff]   ;;  %v2698_v39 = vld [vmem:[%s3571_s3 + $0xac] ss:$16 sps:$4 sm:$0xff]  }
 0x122   :  { %v1259_v48 = vadd.f32 %v1238_v21, %v919_v43  ;;  %1889 = vmatmul.mubr.bf16.vlgmr.msra.gmra.mrb[28].mxu1 %v3351_v52  ;;  %v1268_v51 = vmax.f32 %v1256_v42, 0.0  ;;  %v2699_v42 = vld [vmem:[%s3571_s3 + $0xc8] ss:$16 sps:$4 sm:$0xff]  }
 0x123   :  { %v1260_v49 = vadd.f32 %v1242_v6, %v921_v47  ;;  %2016 = vmatpush1.bf16.msra.mxu1 %v2645_v41  ;;  %v1269_v55 = vmax.f32 %v1257_v46, 0.0  ;;  %v2683_v6 = vld [vmem:[%s3571_s3 + $0x2cc] ss:$16 sps:$4 sm:$0xff]  }
 0x124   :  { %v1271_v53 = vmax.f32 %v1259_v48, 0.0  ;;  %2017 = vmatprep.subr.bf16.mxu1 %v2653_v45  ;;  %v2701_v41 = vld [vmem:[%s3571_s3 + $0xcc] ss:$16 sps:$4 sm:$0xff]   ;;  %v2702_v45 = vld [vmem:[%s3571_s3 + $0xe8] ss:$16 sps:$4 sm:$0xff]  }
 0x125   :  { %v1272_v56 = vmax.f32 %v1260_v49, 0.0  ;;  %v2707_v48 = vld [vmem:[%s3571_s3 + $0x10c] ss:$16 sps:$4 sm:$0xff]  }
 0x126   :  { %v3369_v57 = vpack.c.bf16 %v1271_v53, %v1268_v51  ;;  %v2705_v51 = vld [vmem:[%s3571_s3 + $0x108] ss:$16 sps:$4 sm:$0xff]   ;;  %v2710_v53 = vld [vmem:[%s3571_s3 + $0x12c] ss:$16 sps:$4 sm:$0xff]  }
 0x127   :  { %2018 = vmatpush1.bf16.msra.mxu1 %v2651_v50  ;;  %v3372_v59 = vpack.c.bf16 %v1272_v56, %v1269_v55  ;;  %v2708_v56 = vld [vmem:[%s3571_s3 + $0x128] ss:$16 sps:$4 sm:$0xff]  }
 0x128   :  { %2019 = vmatprep.subr.bf16.mxu1 %v2659_v54 }
 0x129   :  { %1898 = vmatprep.mubr.bf16.mxu1 %v3372_v59 }
 0x12a   :  { %1899 = vmatmul.mubr.bf16.gmra.mrb[32].mxu1 %v3369_v57 }
 0x12b   :  { %2020 = vmatpush1.bf16.msra.mxu1 %v2657_v60  ;;  %2047 = vmatprep.mubr.bf16.mxu1 %v2731_v3 }
 0x12c   :  { %2021 = vmatprep.subr.bf16.mxu1 %v2665_v61 }
 0x12f   :  { %v1010_v1 = vpop.f32.mrb[8].mxu1  ;;  %2022 = vmatpush1.bf16.msra.mxu1 %v2663_v63 }
 0x130   :  { %v1252_v2 = vadd.f32 %v1246_v62, %v1010_v1  ;;  %v3391_v4 = vpop.f32.mrb[9].mxu1  ;;  %2023 = vmatprep.subr.bf16.mxu1 %v2671_v0  ;;  %v2711_v1 = vld [vmem:[%s3571_s3 + $0x148] ss:$16 sps:$4 sm:$0xff]  }
 0x131   :  { %v1014_v5 = vpop.f32.mrb[10].mxu1 }
 0x132   :  { %v1255_v8 = vadd.f32 %v1246_v62, %v1014_v5  ;;  %v3396_v9 = vpop.f32.mrb[11].mxu1  ;;  %v1264_v11 = vmax.f32 %v1252_v2, 0.0  ;;  %v2716_v2 = vld [vmem:[%s3571_s3 + $0x16c] ss:$16 sps:$4 sm:$0xff]  }
 0x133   :  { %2024 = vmatpush1.bf16.msra.mxu1 %v2669_v7 }
 0x134   :  { %v1267_v12 = vmax.f32 %v1255_v8, 0.0  ;;  %2025 = vmatprep.subr.bf16.mxu1 %v2677_v10  ;;  %v2714_v10 = vld [vmem:[%s3571_s3 + $0x168] ss:$16 sps:$4 sm:$0xff]  }
 0x136   :  { %v1276_v21 = vpack.c.bf16 %v1267_v12, %v1264_v11 }
 0x137   :  { %v1020_v23 = vpop.f32.mrb[12].mxu1  ;;  %2026 = vmatpush1.bf16.msra.mxu1 %v2675_v19 }
 0x138   :  { %v1258_v13 = vadd.f32 %v1246_v62, %v1020_v23  ;;  %v3413_v15 = vpop.f32.mrb[13].mxu1  ;;  %1942 = vmatmul.mubr.bf16.vlgmr.msra.gmra.mrb[16].mxu0 %v1276_v21  ;;  %2027 = vmatprep.subr.bf16.mxu1 %v2683_v6  ;;  %v2717_v6 = vld [vmem:[%s3571_s3 + $0x188] ss:$16 sps:$4 sm:$0xff]   ;;  %v2722_v23 = vld [vmem:[%s3571_s3 + $0x1ac] ss:$16 sps:$4 sm:$0xff]  }
 0x139   :  { %1963 = vmatpush1.bf16.msra.mxu0 %v2672_v14  ;;  %v1024_v17 = vpop.f32.mrb[14].mxu1  ;;  %1951 = vmatprep.mubr.bf16.mxu0 %v2731_v3  ;;  %v2719_v14 = vld [vmem:[%s3571_s3 + $0x18c] ss:$16 sps:$4 sm:$0xff]  }
 0x13a   :  { %v1261_v26 = vadd.f32 %v1246_v62, %v1024_v17  ;;  %v3421_v27 = vpop.f32.mrb[15].mxu1  ;;  %1964 = vmatprep.subr.bf16.mxu0 %v2680_v22  ;;  %v1270_v30 = vmax.f32 %v1258_v13, 0.0  ;;  %v2713_v62 = vld [vmem:[%s3571_s3 + $0x14c] ss:$16 sps:$4 sm:$0xff]   ;;  %v2720_v17 = vld [vmem:[%s3571_s3 + $0x1a8] ss:$16 sps:$4 sm:$0xff]  }
 0x13b   :  { %2028 = vmatpush1.bf16.msra.mxu1 %v2681_v25  ;;  %v2725_v25 = vld [vmem:[%s3571_s3 + $0x1cc] ss:$16 sps:$4 sm:$0xff]  }
 0x13c   :  { %v1273_v31 = vmax.f32 %v1261_v26, 0.0  ;;  %2029 = vmatprep.subr.bf16.mxu1 %v2689_v29  ;;  %v2723_v29 = vld [vmem:[%s3571_s3 + $0x1c8] ss:$16 sps:$4 sm:$0xff]  }
 0x13d   :  { %1965 = vmatpush1.bf16.msra.mxu0 %v2678_v24 }
 0x13e   :  { %v1279_v33 = vpack.c.bf16 %v1273_v31, %v1270_v30  ;;  %1966 = vmatprep.subr.bf16.mxu0 %v2686_v28  ;;  %v2728_v30 = vld [vmem:[%s3571_s3 + $0x1ec] ss:$16 sps:$4 sm:$0xff]  }
 0x13f   :  { %2030 = vmatpush1.bf16.msra.mxu1 %v2687_v34 }
 0x140   :  { %1952 = vmatmul.mubr.bf16.gmra.mrb[20].mxu0 %v1279_v33 }
 0x141   :  { %1967 = vmatpush1.bf16.msra.mxu0 %v2684_v32  ;;  %1994 = vmatprep.mubr.bf16.mxu0 %v3353_v40  ;;  %v2696_v40 = vld [vmem:[%s3571_s3 + $0xa8] ss:$16 sps:$4 sm:$0xff]  }
 0x142   :  { %1968 = vmatprep.subr.bf16.mxu0 %v2692_v35  ;;  %2048 = vmatmul.mubr.bf16.vlgmr.msra.gmra.mrb[36].mxu1 %v1276_v21  ;;  %v2726_v32 = vld [vmem:[%s3571_s3 + $0x1e8] ss:$16 sps:$4 sm:$0xff]  }
 0x143   :  { %2057 = vmatprep.mubr.bf16.mxu1 %v2731_v3  ;;  %v2704_v3 = vld [vmem:[%s3571_s3 + $0xec] ss:$16 sps:$4 sm:$0xff]  }
 0x145   :  { %1969 = vmatpush1.bf16.msra.mxu0 %v2690_v36 }
 0x146   :  { %1970 = vmatprep.subr.bf16.mxu0 %v2695_v37 }
 0x149   :  { %1971 = vmatpush1.bf16.msra.mxu0 %v2693_v38 }
 0x14a   :  { %1972 = vmatprep.subr.bf16.mxu0 %v2698_v39  ;;  %2058 = vmatmul.mubr.bf16.gmra.mrb[40].mxu1 %v1279_v33 }
 0x14d   :  { %1973 = vmatpush1.bf16.msra.mxu0 %v2696_v40 }
 0x14e   :  { %1974 = vmatprep.subr.bf16.mxu0 %v2701_v41 }
 0x14f   :  { %v2363_v43 = vpop.f32.mrb[16].mxu1 }
 0x150   :  { %v2364_v44 = vpop.f32.mrb[17].mxu1 }
 0x151   :  { %1975 = vmatpush1.bf16.msra.mxu0 %v2699_v42  ;;  %v2365_v46 = vadd.f32 %v2364_v44, %v2363_v43  ;;  %v2366_v47 = vpop.f32.mrb[18].mxu1 }
 0x152   :  { %1976 = vmatprep.subr.bf16.mxu0 %v2704_v3  ;;  %v2367_v49 = vpop.f32.mrb[19].mxu1 }
 0x153   :  { %v2368_v50 = vadd.f32 %v2367_v49, %v2366_v47 }
 0x155   :  { %1977 = vmatpush1.bf16.msra.mxu0 %v2702_v45 }
 0x156   :  { %1978 = vmatprep.subr.bf16.mxu0 %v2707_v48 }
 0x157   :  { %v2369_v54 = vpop.f32.mrb[20].mxu1 }
 0x158   :  { %v2370_v55 = vpop.f32.mrb[21].mxu1 }
 0x159   :  { %1979 = vmatpush1.bf16.msra.mxu0 %v2705_v51  ;;  %v2371_v60 = vadd.f32 %v2370_v55, %v2369_v54  ;;  %v2372_v61 = vpop.f32.mrb[22].mxu1 }
 0x15a   :  { %1980 = vmatprep.subr.bf16.mxu0 %v2710_v53  ;;  %v2373_v63 = vpop.f32.mrb[23].mxu1 }
 0x15b   :  { %v2374_v0 = vadd.f32 %v2373_v63, %v2372_v61 }
 0x15d   :  { %1981 = vmatpush1.bf16.msra.mxu0 %v2708_v56 }
 0x15e   :  { %1982 = vmatprep.subr.bf16.mxu0 %v2713_v62 }
 0x15f   :  { %v2382_v5 = vpop.f32.mrb[24].mxu1 }
 0x160   :  { %v3489_v7 = vadd.f32 %v2382_v5, %v2371_v60  ;;  %v1218_v8 = vpop.f32.mrb[25].mxu1 }
 0x161   :  { %1983 = vmatpush1.bf16.msra.mxu0 %v2711_v1  ;;  %v3494_v11 = vadd.f32 %v2365_v46, %v1218_v8  ;;  %v2383_v12 = vpop.f32.mrb[26].mxu1 }
 0x162   :  { %1984 = vmatprep.subr.bf16.mxu0 %v2716_v2  ;;  %v3499_v19 = vadd.f32 %v2383_v12, %v2374_v0  ;;  %v1221_v21 = vpop.f32.mrb[27].mxu1 }
 0x163   :  { %v3501_v22 = vadd.f32 %v2368_v50, %v1221_v21 }
 0x165   :  { %1985 = vmatpush1.bf16.msra.mxu0 %v2714_v10  ;;  %v1116_v13 = vpop.f32.mrb[8].mxu0 }
 0x166   :  { %1986 = vmatprep.subr.bf16.mxu0 %v2719_v14  ;;  %v3512_v24 = vpop.f32.mrb[9].mxu0 }
 0x167   :  { %v1120_v26 = vpop.f32.mrb[10].mxu0 }
 0x168   :  { %v3517_v28 = vpop.f32.mrb[11].mxu0 }
 0x169   :  { %1987 = vmatpush1.bf16.msra.mxu0 %v2717_v6 }
 0x16a   :  { %1988 = vmatprep.subr.bf16.mxu0 %v2722_v23 }
 0x16d   :  { %1989 = vmatpush1.bf16.msra.mxu0 %v2720_v17  ;;  %v1126_v31 = vpop.f32.mrb[12].mxu0 }
 0x16e   :  { %1990 = vmatprep.subr.bf16.mxu0 %v2725_v25  ;;  %v3528_v33 = vpop.f32.mrb[13].mxu0 }
 0x16f   :  { %v1130_v34 = vpop.f32.mrb[14].mxu0 }
 0x170   :  { %v3530_v35 = vpop.f32.mrb[15].mxu0 }
 0x171   :  { %1991 = vmatpush1.bf16.msra.mxu0 %v2723_v29 }
 0x172   :  { %1992 = vmatprep.subr.bf16.mxu0 %v2728_v30 }
 0x175   :  { %1993 = vmatpush1.bf16.msra.mxu0 %v2726_v32 }
 0x178   :  { %1995 = vmatmul.mubr.bf16.vlgmr.msra.gmra.mrb[24].mxu0 %v3351_v52 }
 0x179   :  { %2004 = vmatprep.mubr.bf16.mxu0 %v3372_v59 }
 0x180   :  { %2005 = vmatmul.mubr.bf16.gmra.mrb[28].mxu0 %v3369_v57 }
 0x1f5   :  { %v1890_v36 = vpop.f32.mrb[28].mxu1 }
 0x1f6   :  { %v1891_v37 = vadd.f32 %v1890_v36, %v3391_v4  ;;  %v1892_v38 = vpop.f32.mrb[29].mxu1 }
 0x1f7   :  { %v1893_v39 = vadd.f32 %v1892_v38, %v1116_v13  ;;  %v1894_v40 = vpop.f32.mrb[30].mxu1 }
 0x1f8   :  { %v1895_v41 = vadd.f32 %v1894_v40, %v3396_v9  ;;  %v1896_v42 = vpop.f32.mrb[31].mxu1 }
 0x1f9   :  { %v1897_v3 = vadd.f32 %v1896_v42, %v1120_v26 }
 0x1fd   :  { %v1900_v43 = vpop.f32.mrb[32].mxu1 }
 0x1fe   :  { %v1901_v44 = vadd.f32 %v1900_v43, %v3413_v15  ;;  %v1902_v45 = vpop.f32.mrb[33].mxu1  ;;  %v2080_v15 = vld [vmem:[%s3573_s4] sm:$0xf] }
 0x1ff   :  { %v1903_v46 = vadd.f32 %v1902_v45, %v1126_v31  ;;  %v1904_v52 = vpop.f32.mrb[34].mxu1  ;;  %v2085_v2 = vrot.slane %v2080_v15, %v1237_v18  ;;  %v2089_v12 = vrot.slane %v2080_v15, %v1241_v20 }
 0x200   :  { %v1905_v59 = vadd.f32 %v1904_v52, %v3421_v27  ;;  %v1906_v47 = vpop.f32.mrb[35].mxu1 }
 0x201   :  { %v1907_v57 = vadd.f32 %v1906_v47, %v1130_v34 }
 0x20b   :  { %v1943_v48 = vpop.f32.mrb[16].mxu0 }
 0x20c   :  { %v1944_v49 = vadd.f32 %v1943_v48, %v1891_v37  ;;  %v1945_v4 = vpop.f32.mrb[17].mxu0 }
 0x20d   :  { %v1946_v50 = vadd.f32 %v1945_v4, %v1893_v39  ;;  %v1947_v51 = vpop.f32.mrb[18].mxu0 }
 0x20e   :  { %v1948_v53 = vadd.f32 %v1947_v51, %v1895_v41  ;;  %v1949_v54 = vpop.f32.mrb[19].mxu0 }
 0x20f   :  { %v1950_v9 = vadd.f32 %v1949_v54, %v1897_v3  ;;  %v2093_v54 = vrot.slane %v2080_v15, %v1245_v58 }
 0x210   :  { %v2068_v55 = vmax.f32 %v1944_v49, %v1948_v53 }
 0x211   :  { %v2071_v56 = vmax.f32 %v1946_v50, %v1950_v9 }
 0x213   :  { %v1953_v60 = vpop.f32.mrb[20].mxu0 }
 0x214   :  { %v1954_v61 = vadd.f32 %v1953_v60, %v1901_v44  ;;  %v1955_v62 = vpop.f32.mrb[21].mxu0 }
 0x215   :  { %v1956_v27 = vadd.f32 %v1955_v62, %v1903_v46  ;;  %v1957_v63 = vpop.f32.mrb[22].mxu0  ;;  %v2049_v21 = vpop.f32.mrb[36].mxu1 }
 0x216   :  { %v2069_v0 = vmax.f32 %v2068_v55, %v1954_v61  ;;  %v1958_v1 = vadd.f32 %v1957_v63, %v1905_v59  ;;  %v1959_v5 = vpop.f32.mrb[23].mxu0  ;;  %v2051_v23 = vpop.f32.mrb[37].mxu1 }
 0x217   :  { %v2072_v8 = vmax.f32 %v2071_v56, %v1956_v27  ;;  %v1960_v10 = vadd.f32 %v1959_v5, %v1907_v57  ;;  %v2053_v17 = vpop.f32.mrb[38].mxu1 }
 0x218   :  { %v2070_v14 = vmax.f32 %v2069_v0, %v1958_v1  ;;  %v2055_v26 = vpop.f32.mrb[39].mxu1 }
 0x219   :  { %v2073_v6 = vmax.f32 %v2072_v8, %v1960_v10 }
 0x21a   :  { %v2102_v13 = vadd.f32 %v2085_v2, %v2070_v14 }
 0x21b   :  { %v2103_v25 = vadd.f32 %v2089_v12, %v2073_v6 }
 0x21c   :  { %v2106_v29 = vmax.f32 %v2102_v13, 0.0 }
 0x21d   :  { %v2107_v30 = vmax.f32 %v2103_v25, 0.0  ;;  %v2059_v18 = vpop.f32.mrb[40].mxu1 }
 0x21e   :  { %2110 = vst [vmem:[%s3574_s5] sm:$0xff] %v2106_v29  ;;  %v2061_v20 = vpop.f32.mrb[41].mxu1 }
 0x21f   :  { %2111 = vst [vmem:[%s3574_s5 + $0x8] sm:$0xff] %v2107_v30  ;;  %v2063_v31 = vpop.f32.mrb[42].mxu1 }
 0x220   :  { %v2065_v32 = vpop.f32.mrb[43].mxu1 }
 0x24b   :  { %v1996_v34 = vpop.f32.mrb[24].mxu0 }
 0x24c   :  { %v1997_v36 = vadd.f32 %v1996_v34, %v3512_v24  ;;  %v1998_v37 = vpop.f32.mrb[25].mxu0 }
 0x24d   :  { %v1999_v38 = vadd.f32 %v1998_v37, %v3494_v11  ;;  %v2000_v39 = vpop.f32.mrb[26].mxu0  ;;  %v2096_v11 = vsub.s32 3, %v3340_v16 }
 0x24e   :  { %v2050_v40 = vadd.f32 %v2049_v21, %v1997_v36  ;;  %v2001_v41 = vadd.f32 %v2000_v39, %v3517_v28  ;;  %v2002_v42 = vpop.f32.mrb[27].mxu0 }
 0x24f   :  { %v2052_v3 = vadd.f32 %v2051_v23, %v1999_v38  ;;  %v2003_v43 = vadd.f32 %v2002_v42, %v3501_v22  ;;  %v2097_v55 = vrot.slane %v2080_v15, %v2096_v11 }
 0x250   :  { %v2054_v44 = vadd.f32 %v2053_v17, %v2001_v41 }
 0x251   :  { %v2056_v45 = vadd.f32 %v2055_v26, %v2003_v43 }
 0x252   :  { %v2074_v46 = vmax.f32 %v2050_v40, %v2054_v44 }
 0x253   :  { %v2077_v52 = vmax.f32 %v2052_v3, %v2056_v45  ;;  %v2006_v59 = vpop.f32.mrb[28].mxu0 }
 0x254   :  { %v2007_v47 = vadd.f32 %v2006_v59, %v3528_v33  ;;  %v2008_v57 = vpop.f32.mrb[29].mxu0 }
 0x255   :  { %v2009_v24 = vadd.f32 %v2008_v57, %v3489_v7  ;;  %v2010_v48 = vpop.f32.mrb[30].mxu0 }
 0x256   :  { %v2060_v49 = vadd.f32 %v2059_v18, %v2007_v47  ;;  %v2011_v28 = vadd.f32 %v2010_v48, %v3530_v35  ;;  %v2012_v4 = vpop.f32.mrb[31].mxu0 }
 0x257   :  { %v2062_v50 = vadd.f32 %v2061_v20, %v2009_v24  ;;  %v2013_v22 = vadd.f32 %v2012_v4, %v3499_v19 }
 0x258   :  { %v2075_v51 = vmax.f32 %v2074_v46, %v2060_v49  ;;  %v2064_v53 = vadd.f32 %v2063_v31, %v2011_v28 }
 0x259   :  { %v2078_v9 = vmax.f32 %v2077_v52, %v2062_v50  ;;  %v2066_v33 = vadd.f32 %v2065_v32, %v2013_v22 }
 0x25a   :  { %v2076_v56 = vmax.f32 %v2075_v51, %v2064_v53 }
 0x25b   :  { %v2079_v7 = vmax.f32 %v2078_v9, %v2066_v33 }
 0x25c   :  { %v2104_v60 = vadd.f32 %v2093_v54, %v2076_v56 }
 0x25d   :  { %v2105_v61 = vadd.f32 %v2097_v55, %v2079_v7 }
 0x25e   :  { %v2108_v62 = vmax.f32 %v2104_v60, 0.0 }
 0x25f   :  { %v2109_v27 = vmax.f32 %v2105_v61, 0.0 }
 0x260   :  { %2112 = vst [vmem:[%s3574_s5 + $0x10] sm:$0xff] %v2108_v62 }
 0x261   :  { %2113 = vst [vmem:[%s3574_s5 + $0x18] sm:$0xff] %v2109_v27 }

</bundles_post_ra>
